<compile_context>
chip_gen: v5e
topology: v5e:2x2
jax: 0.10.0
libtpu: 0.0.40
codegen_flags: <defaults>
</compile_context>

<pallas_src>
import jax
import jax.numpy as jnp
from jax.experimental import pallas as pl
from jax.experimental.pallas import tpu as pltpu

LATENT_DIM = 100
EMB_DIM = 10
IMG_SIZE = 28
CHANNELS = 1
IN_DIM = LATENT_DIM + EMB_DIM          # 110
IN_PAD = 128                           # 110 -> 128 (lane-aligned K for layer 1)
H1, H2, H3 = 256, 512, 1024
OUT_DIM = IMG_SIZE * IMG_SIZE          # 784
OUT_PAD = 896                          # 784 -> 7*128 (lane-dense output slab)


def _leaky_relu(x, slope=0.2):
    return jnp.where(x > 0, x, slope * x)


def generator_kernel(x_ref,
                     w1_ref, b1_ref,
                     w2_ref, b2_ref,
                     w3_ref, b3_ref,
                     w4_ref, b4_ref,
                     out_ref):
    # Entire MLP hot path (4 MXU matmuls + activations) runs on-chip in one
    # pass. Matmul operands are bf16, accumulation and element-wise math f32.
    x = x_ref[...]                                                    # (TB, 128) f32
    h = jnp.dot(x.astype(jnp.bfloat16), w1_ref[...],
                preferred_element_type=jnp.float32) + b1_ref[...]
    h = _leaky_relu(h)
    h = jnp.dot(h.astype(jnp.bfloat16), w2_ref[...],
                preferred_element_type=jnp.float32) + b2_ref[...]
    h = _leaky_relu(h)
    h = jnp.dot(h.astype(jnp.bfloat16), w3_ref[...],
                preferred_element_type=jnp.float32) + b3_ref[...]
    h = _leaky_relu(h)
    h = jnp.dot(h.astype(jnp.bfloat16), w4_ref[...],
                preferred_element_type=jnp.float32) + b4_ref[...]
    # jnp.tanh lowers to a single EUP transcendental per vreg -> hides under
    # the MXU rather than competing with the VALU slot.
    out_ref[...] = jnp.tanh(h).astype(out_ref.dtype)                  # (TB, 896)


def _prepare_params(params):
    """Pad + cast raw f32 params into the kernel layout (bf16 weights)."""
    w1 = jnp.zeros((IN_PAD, H1), jnp.bfloat16)
    w1 = w1.at[:IN_DIM, :].set(params["w1"].astype(jnp.bfloat16))
    w2 = params["w2"].astype(jnp.bfloat16)
    w3 = params["w3"].astype(jnp.bfloat16)
    w4 = jnp.zeros((H3, OUT_PAD), jnp.bfloat16)
    w4 = w4.at[:, :OUT_DIM].set(params["w4"].astype(jnp.bfloat16))

    b1 = params["b1"].reshape(1, H1).astype(jnp.float32)
    b2 = params["b2"].reshape(1, H2).astype(jnp.float32)
    b3 = params["b3"].reshape(1, H3).astype(jnp.float32)
    b4 = jnp.zeros((1, OUT_PAD), jnp.float32)
    b4 = b4.at[:, :OUT_DIM].set(params["b4"].reshape(1, OUT_DIM).astype(jnp.float32))
    return w1, b1, w2, b2, w3, b3, w4, b4


def _round_up(x, m):
    return (x + m - 1) // m * m


def _pick_tile_b(B):
    """Batch (matmul M) tile size.

    - B <= 128: one grid step, padded only to a 16-row multiple (bf16 sublane
      packing).  Weight-fetch bound; splitting across cores or padding to 128
      rows buys nothing and costs MXU cycles + output writeback.
    - B >= 512 and a multiple of 256: 256-row tiles (zero padding, >= 2 steps,
      best amortization of the ~0.35 us per-grid-step overhead).
    - otherwise: <=128-row tiles rounded to 16 rows -> minimal B_pad and
      >= 2 "parallel" grid steps so both v7x TensorCores get work.
    """
    if B <= 128:
        return _round_up(max(B, 8), 16)
    if B >= 512 and B % 256 == 0:
        return 256
    n_tiles = pl.cdiv(B, 128)
    return _round_up(pl.cdiv(B, n_tiles), 16)


def generator_forward(z, labels, params, *, tile_b=None):
    """z: (B, 100) f32, labels: (B,) int32 -> (B, 1, 28, 28) f32."""
    B = z.shape[0]
    if tile_b is None:
        tile_b = _pick_tile_b(B)
    assert tile_b % 8 == 0, "tile_b must be a multiple of the sublane count (8)"
    n_tiles = pl.cdiv(B, tile_b)
    B_pad = n_tiles * tile_b

    # Glue (tiny, not the hot path): embedding lookup + concat, then zero-pad
    # the batch to B_pad rows and the feature dim to IN_PAD lanes.
    c = jnp.take(params["emb"], labels, axis=0)                       # (B, 10)
    x = jnp.concatenate([z, c], axis=1).astype(jnp.float32)           # (B, 110)
    x = jnp.zeros((B_pad, IN_PAD), jnp.float32).at[:B, :IN_DIM].set(x)

    w1, b1, w2, b2, w3, b3, w4, b4 = _prepare_params(params)

    # Weights/biases (~3.2 MiB bf16 total) stay fully resident in VMEM;
    # constant index map + Buffered(1) => fetched once, single buffer.
    def resident(arr):
        return pl.BlockSpec(arr.shape, lambda i: (0, 0),
                            pipeline_mode=pl.Buffered(1))

    mm_macs = IN_PAD * H1 + H1 * H2 + H2 * H3 + H3 * OUT_PAD
    flops = 2 * B_pad * mm_macs
    weight_bytes = 2 * mm_macs + 4 * (H1 + H2 + H3 + OUT_PAD)
    bytes_accessed = weight_bytes + 4 * B_pad * (IN_PAD + OUT_PAD)

    flat = pl.pallas_call(
        generator_kernel,
        out_shape=jax.ShapeDtypeStruct((B_pad, OUT_PAD), jnp.float32),
        grid=(n_tiles,),
        in_specs=[
            pl.BlockSpec((tile_b, IN_PAD), lambda i: (i, 0)),
            resident(w1), resident(b1),
            resident(w2), resident(b2),
            resident(w3), resident(b3),
            resident(w4), resident(b4),
        ],
        out_specs=pl.BlockSpec((tile_b, OUT_PAD), lambda i: (i, 0)),
        compiler_params=pltpu.CompilerParams(
            dimension_semantics=("parallel",)),
        cost_estimate=pl.CostEstimate(
            flops=flops,
            transcendentals=B_pad * OUT_PAD,
            bytes_accessed=bytes_accessed),
    )(x, w1, b1, w2, b2, w3, b3, w4, b4)

    # Drop batch padding and the 784->896 lane padding, then NCHW reshape.
    return flat[:B, :OUT_DIM].reshape(B, CHANNELS, IMG_SIZE, IMG_SIZE)


def init_params(key):
    """Deterministic synthetic parameters with the same shapes as the torch module."""
    ks = jax.random.split(key, 9)

    def lin(kw, fan_in, fan_out):
        bound = 1.0 / jnp.sqrt(fan_in)
        return jax.random.uniform(kw, (fan_in, fan_out), jnp.float32, -bound, bound)

    return {
        "emb": jax.random.normal(ks[0], (10, EMB_DIM), jnp.float32),
        "w1": lin(ks[1], IN_DIM, H1),
        "b1": jax.random.uniform(ks[2], (1, H1), jnp.float32, -0.1, 0.1),
        "w2": lin(ks[3], H1, H2),
        "b2": jax.random.uniform(ks[4], (1, H2), jnp.float32, -0.1, 0.1),
        "w3": lin(ks[5], H2, H3),
        "b3": jax.random.uniform(ks[6], (1, H3), jnp.float32, -0.1, 0.1),
        "w4": lin(ks[7], H3, OUT_DIM),
        "b4": jax.random.uniform(ks[8], (1, OUT_DIM), jnp.float32, -0.1, 0.1),
    }


def _reference_forward(z, labels, params):
    """Pure-JAX reference mirroring the kernel numerics (bf16 matmul operands,
    f32 accumulation and element-wise math).  Note: versus the true f32
    PyTorch module the bf16 weights introduce ~1e-2-level relative error,
    which is acceptable for a GAN generator."""
    c = jnp.take(params["emb"], labels, axis=0)
    x = jnp.concatenate([z, c], axis=1).astype(jnp.float32)

    def layer(h, w, b):
        return jnp.dot(h.astype(jnp.bfloat16), w.astype(jnp.bfloat16),
                       preferred_element_type=jnp.float32) + b.reshape(1, -1)

    h = _leaky_relu(layer(x, params["w1"], params["b1"]))
    h = _leaky_relu(layer(h, params["w2"], params["b2"]))
    h = _leaky_relu(layer(h, params["w3"], params["b3"]))
    out = jnp.tanh(layer(h, params["w4"], params["b4"]))
    return out.reshape(z.shape[0], CHANNELS, IMG_SIZE, IMG_SIZE)


if __name__ == "__main__":
    key = jax.random.PRNGKey(0)
    k_params, k_z, k_lbl = jax.random.split(key, 3)

    B = 8
    params = init_params(k_params)
    z = jax.random.normal(k_z, (B, LATENT_DIM), jnp.float32)
    labels = jax.random.randint(k_lbl, (B,), 0, 10, jnp.int32)

    img = jax.block_until_ready(generator_forward(z, labels, params))
    assert img.shape == (B, CHANNELS, IMG_SIZE, IMG_SIZE), img.shape

    ref = jax.block_until_ready(_reference_forward(z, labels, params))
    max_err = float(jnp.max(jnp.abs(img - ref)))
    assert jnp.allclose(img, ref, atol=5e-3, rtol=0), f"mismatch vs reference: {max_err}"

    print("KERNEL_OK")
</pallas_src>

<mosaic_0001>
module attributes {stable_mosaic.version = 11 : i64} {
  func.func @generator_kernel(%arg0: i32, %arg1: memref<16x128xf32, #tpu.memory_space<vmem>>, %arg2: memref<128x256xbf16, #tpu.memory_space<vmem>>, %arg3: memref<1x256xf32, #tpu.memory_space<vmem>>, %arg4: memref<256x512xbf16, #tpu.memory_space<vmem>>, %arg5: memref<1x512xf32, #tpu.memory_space<vmem>>, %arg6: memref<512x1024xbf16, #tpu.memory_space<vmem>>, %arg7: memref<1x1024xf32, #tpu.memory_space<vmem>>, %arg8: memref<1024x896xbf16, #tpu.memory_space<vmem>>, %arg9: memref<1x896xf32, #tpu.memory_space<vmem>>, %arg10: memref<16x896xf32, #tpu.memory_space<vmem>>) attributes {dimension_semantics = [#tpu.dimension_semantics<parallel>], iteration_bounds = array<i64: 1>, scalar_prefetch = 0 : i64, scratch_operands = 0 : i64, tpu.core_type = #tpu.core_type<tc>, window_params = [{transform_indices = @transform_0, window_bounds = array<i64: 16, 128>}, {pipeline_mode = #tpu.pipeline_mode<synchronous>, transform_indices = @transform_1, window_bounds = array<i64: 128, 256>}, {pipeline_mode = #tpu.pipeline_mode<synchronous>, transform_indices = @transform_2, window_bounds = array<i64: 1, 256>}, {pipeline_mode = #tpu.pipeline_mode<synchronous>, transform_indices = @transform_3, window_bounds = array<i64: 256, 512>}, {pipeline_mode = #tpu.pipeline_mode<synchronous>, transform_indices = @transform_4, window_bounds = array<i64: 1, 512>}, {pipeline_mode = #tpu.pipeline_mode<synchronous>, transform_indices = @transform_5, window_bounds = array<i64: 512, 1024>}, {pipeline_mode = #tpu.pipeline_mode<synchronous>, transform_indices = @transform_6, window_bounds = array<i64: 1, 1024>}, {pipeline_mode = #tpu.pipeline_mode<synchronous>, transform_indices = @transform_7, window_bounds = array<i64: 1024, 896>}, {pipeline_mode = #tpu.pipeline_mode<synchronous>, transform_indices = @transform_8, window_bounds = array<i64: 1, 896>}, {transform_indices = @transform_9, window_bounds = array<i64: 16, 896>}]} {
    %c0 = arith.constant 0 : index
    %c0_0 = arith.constant 0 : index
    %0 = vector.load %arg1[%c0, %c0_0] : memref<16x128xf32, #tpu.memory_space<vmem>>, vector<16x128xf32>
    %1 = arith.truncf %0 : vector<16x128xf32> to vector<16x128xbf16>
    %c0_1 = arith.constant 0 : index
    %c0_2 = arith.constant 0 : index
    %2 = vector.load %arg2[%c0_1, %c0_2] : memref<128x256xbf16, #tpu.memory_space<vmem>>, vector<128x256xbf16>
    %cst = arith.constant dense<0.000000e+00> : vector<16x256xf32>
    %3 = tpu.matmul %1, %2, %cst {dimension_numbers = #tpu.dot_dimension_numbers<[1], [0], [0], [1], [0, 0, 1, 1], [], []>} : vector<16x128xbf16>, vector<128x256xbf16>, vector<16x256xf32> -> vector<16x256xf32>
    %c0_3 = arith.constant 0 : index
    %c0_4 = arith.constant 0 : index
    %4 = vector.load %arg3[%c0_3, %c0_4] : memref<1x256xf32, #tpu.memory_space<vmem>>, vector<1x256xf32>
    %5 = vector.broadcast %4 : vector<1x256xf32> to vector<16x256xf32>
    %6 = arith.addf %3, %5 : vector<16x256xf32>
    %cst_5 = arith.constant 0.000000e+00 : f32
    %7 = vector.broadcast %cst_5 : f32 to vector<16x256xf32>
    %8 = arith.cmpf ogt, %6, %7 : vector<16x256xf32>
    %cst_6 = arith.constant 2.000000e-01 : f32
    %9 = vector.broadcast %cst_6 : f32 to vector<16x256xf32>
    %10 = arith.mulf %9, %6 : vector<16x256xf32>
    %11 = arith.select %8, %6, %10 : vector<16x256xi1>, vector<16x256xf32>
    %12 = arith.truncf %11 : vector<16x256xf32> to vector<16x256xbf16>
    %c0_7 = arith.constant 0 : index
    %c0_8 = arith.constant 0 : index
    %13 = vector.load %arg4[%c0_7, %c0_8] : memref<256x512xbf16, #tpu.memory_space<vmem>>, vector<256x512xbf16>
    %cst_9 = arith.constant dense<0.000000e+00> : vector<16x512xf32>
    %14 = tpu.matmul %12, %13, %cst_9 {dimension_numbers = #tpu.dot_dimension_numbers<[1], [0], [0], [1], [0, 0, 1, 1], [], []>} : vector<16x256xbf16>, vector<256x512xbf16>, vector<16x512xf32> -> vector<16x512xf32>
    %c0_10 = arith.constant 0 : index
    %c0_11 = arith.constant 0 : index
    %15 = vector.load %arg5[%c0_10, %c0_11] : memref<1x512xf32, #tpu.memory_space<vmem>>, vector<1x512xf32>
    %16 = vector.broadcast %15 : vector<1x512xf32> to vector<16x512xf32>
    %17 = arith.addf %14, %16 : vector<16x512xf32>
    %cst_12 = arith.constant 0.000000e+00 : f32
    %18 = vector.broadcast %cst_12 : f32 to vector<16x512xf32>
    %19 = arith.cmpf ogt, %17, %18 : vector<16x512xf32>
    %cst_13 = arith.constant 2.000000e-01 : f32
    %20 = vector.broadcast %cst_13 : f32 to vector<16x512xf32>
    %21 = arith.mulf %20, %17 : vector<16x512xf32>
    %22 = arith.select %19, %17, %21 : vector<16x512xi1>, vector<16x512xf32>
    %23 = arith.truncf %22 : vector<16x512xf32> to vector<16x512xbf16>
    %c0_14 = arith.constant 0 : index
    %c0_15 = arith.constant 0 : index
    %24 = vector.load %arg6[%c0_14, %c0_15] : memref<512x1024xbf16, #tpu.memory_space<vmem>>, vector<512x1024xbf16>
    %cst_16 = arith.constant dense<0.000000e+00> : vector<16x1024xf32>
    %25 = tpu.matmul %23, %24, %cst_16 {dimension_numbers = #tpu.dot_dimension_numbers<[1], [0], [0], [1], [0, 0, 1, 1], [], []>} : vector<16x512xbf16>, vector<512x1024xbf16>, vector<16x1024xf32> -> vector<16x1024xf32>
    %c0_17 = arith.constant 0 : index
    %c0_18 = arith.constant 0 : index
    %26 = vector.load %arg7[%c0_17, %c0_18] : memref<1x1024xf32, #tpu.memory_space<vmem>>, vector<1x1024xf32>
    %27 = vector.broadcast %26 : vector<1x1024xf32> to vector<16x1024xf32>
    %28 = arith.addf %25, %27 : vector<16x1024xf32>
    %cst_19 = arith.constant 0.000000e+00 : f32
    %29 = vector.broadcast %cst_19 : f32 to vector<16x1024xf32>
    %30 = arith.cmpf ogt, %28, %29 : vector<16x1024xf32>
    %cst_20 = arith.constant 2.000000e-01 : f32
    %31 = vector.broadcast %cst_20 : f32 to vector<16x1024xf32>
    %32 = arith.mulf %31, %28 : vector<16x1024xf32>
    %33 = arith.select %30, %28, %32 : vector<16x1024xi1>, vector<16x1024xf32>
    %34 = arith.truncf %33 : vector<16x1024xf32> to vector<16x1024xbf16>
    %c0_21 = arith.constant 0 : index
    %c0_22 = arith.constant 0 : index
    %35 = vector.load %arg8[%c0_21, %c0_22] : memref<1024x896xbf16, #tpu.memory_space<vmem>>, vector<1024x896xbf16>
    %cst_23 = arith.constant dense<0.000000e+00> : vector<16x896xf32>
    %36 = tpu.matmul %34, %35, %cst_23 {dimension_numbers = #tpu.dot_dimension_numbers<[1], [0], [0], [1], [0, 0, 1, 1], [], []>} : vector<16x1024xbf16>, vector<1024x896xbf16>, vector<16x896xf32> -> vector<16x896xf32>
    %c0_24 = arith.constant 0 : index
    %c0_25 = arith.constant 0 : index
    %37 = vector.load %arg9[%c0_24, %c0_25] : memref<1x896xf32, #tpu.memory_space<vmem>>, vector<1x896xf32>
    %38 = vector.broadcast %37 : vector<1x896xf32> to vector<16x896xf32>
    %39 = arith.addf %36, %38 : vector<16x896xf32>
    %40 = math.tanh %39 : vector<16x896xf32>
    %c0_26 = arith.constant 0 : index
    %c0_27 = arith.constant 0 : index
    %41 = vector.load %arg10[%c0_26, %c0_27] : memref<16x896xf32, #tpu.memory_space<vmem>>, vector<16x896xf32>
    tpu.vector_store %arg10[%c0_26, %c0_27], %40 {strides = array<i32>} : memref<16x896xf32, #tpu.memory_space<vmem>>, vector<16x896xf32>,
    return
  }
  func.func @transform_0(%arg0: i32) -> (i32, i32) {
    %c0_i32 = arith.constant 0 : i32
    %c0_i32_0 = arith.constant 0 : i32
    return %arg0, %c0_i32 : i32, i32
  }
  func.func @transform_1(%arg0: i32) -> (i32, i32) {
    %c0_i32 = arith.constant 0 : i32
    %c0_i32_0 = arith.constant 0 : i32
    %c0_i32_1 = arith.constant 0 : i32
    return %c0_i32, %c0_i32_0 : i32, i32
  }
  func.func @transform_2(%arg0: i32) -> (i32, i32) {
    %c0_i32 = arith.constant 0 : i32
    %c0_i32_0 = arith.constant 0 : i32
    %c0_i32_1 = arith.constant 0 : i32
    return %c0_i32, %c0_i32_0 : i32, i32
  }
  func.func @transform_3(%arg0: i32) -> (i32, i32) {
    %c0_i32 = arith.constant 0 : i32
    %c0_i32_0 = arith.constant 0 : i32
    %c0_i32_1 = arith.constant 0 : i32
    return %c0_i32, %c0_i32_0 : i32, i32
  }
  func.func @transform_4(%arg0: i32) -> (i32, i32) {
    %c0_i32 = arith.constant 0 : i32
    %c0_i32_0 = arith.constant 0 : i32
    %c0_i32_1 = arith.constant 0 : i32
    return %c0_i32, %c0_i32_0 : i32, i32
  }
  func.func @transform_5(%arg0: i32) -> (i32, i32) {
    %c0_i32 = arith.constant 0 : i32
    %c0_i32_0 = arith.constant 0 : i32
    %c0_i32_1 = arith.constant 0 : i32
    return %c0_i32, %c0_i32_0 : i32, i32
  }
  func.func @transform_6(%arg0: i32) -> (i32, i32) {
    %c0_i32 = arith.constant 0 : i32
    %c0_i32_0 = arith.constant 0 : i32
    %c0_i32_1 = arith.constant 0 : i32
    return %c0_i32, %c0_i32_0 : i32, i32
  }
  func.func @transform_7(%arg0: i32) -> (i32, i32) {
    %c0_i32 = arith.constant 0 : i32
    %c0_i32_0 = arith.constant 0 : i32
    %c0_i32_1 = arith.constant 0 : i32
    return %c0_i32, %c0_i32_0 : i32, i32
  }
  func.func @transform_8(%arg0: i32) -> (i32, i32) {
    %c0_i32 = arith.constant 0 : i32
    %c0_i32_0 = arith.constant 0 : i32
    %c0_i32_1 = arith.constant 0 : i32
    return %c0_i32, %c0_i32_0 : i32, i32
  }
  func.func @transform_9(%arg0: i32) -> (i32, i32) {
    %c0_i32 = arith.constant 0 : i32
    %c0_i32_0 = arith.constant 0 : i32
    return %arg0, %c0_i32 : i32, i32
  }
}

</mosaic_0001>

<bundles_post_ra>
// kernel: tpu_custom_call.1
= control target key start
LH: loop header
LB: loop body
LE: loop exit
PB: predicated region body
PF: predicated region fallthrough
CT: control target
= control target key end

     0   :  { %14 = vsyncpa [#allocation3], 0  ;;  %s11186_s0 = inlined_call_operand.hbm [shape: f32[16,128], index: 0, kind: input, shape index: {}]   ;;  %s11187_s1 = inlined_call_operand.hbm [shape: bf16[128,256], index: 1, kind: input, shape index: {}]   ;;  %s11188_s2 = inlined_call_operand.hbm [shape: f32[1,256], index: 2, kind: input, shape index: {}]   ;;  %s11189_s3 = inlined_call_operand.hbm [shape: bf16[256,512], index: 3, kind: input, shape index: {}]   ;;  %s11190_s4 = inlined_call_operand.hbm [shape: f32[1,512], index: 4, kind: input, shape index: {}]   ;;  %s11191_s5 = inlined_call_operand.hbm [shape: bf16[512,1024], index: 5, kind: input, shape index: {}]   ;;  %s11192_s6 = inlined_call_operand.hbm [shape: f32[1,1024], index: 6, kind: input, shape index: {}]   ;;  %s11193_s7 = inlined_call_operand.hbm [shape: bf16[1024,896], index: 7, kind: input, shape index: {}]   ;;  %s11194_s8 = inlined_call_operand.hbm [shape: f32[1,896], index: 8, kind: input, shape index: {}]   ;;  %s11195_s9 = inlined_call_operand.hbm [shape: f32[16,896], index: 9, kind: output, shape index: {}]  }
   0x1   :  { %15 = vsyncpa [#allocation6], 0 }
   0x2   :  { %16 = vsyncpa [#allocation9], 0 }
   0x3   :  { %17 = vsyncpa [#allocation12], 0 }
   0x4   :  { %18 = vsyncpa [#allocation15], 0 }
   0x5   :  { %19 = vsyncpa [#allocation4], 0  ;;  %s37_s11 = sshll.u32 %s11187_s1, 4  ;;  %s10793_s12 = smov [#allocation5]   ;;  %s38_s11 = int_to_ptr.hbm [resolvable:$true] %s37_s11 }
   0x6   :  { %s39_s13 = sshll.u32 %s10793_s12, 4  ;;  %s61_s16 = sshll.u32 %s11189_s3, 4  ;;  %s40_s13 = int_to_ptr.vmem [resolvable:$true] %s39_s13  ;;  %s62_s16 = int_to_ptr.hbm [resolvable:$true] %s61_s16 }
   0x7   :  { %s10794_s17 = smov 128   ;;  %s10795_s18 = smov 8  }
   0x8   :  { %45 = dma.hbm_to_vmem [thread:$0]  %s38_s11, 2048, %s40_s13, [#allocation6], %s10794_s17, %s10794_s17, %s10795_s18  }
   0x9   :  { %s10796_s19 = smov [#allocation8]   ;;  %s10797_s21 = smov 256  }
   0xa   :  { %s63_s20 = sshll.u32 %s10796_s19, 4  ;;  %s10798_s1 = smov 16   ;;  %s64_s20 = int_to_ptr.vmem [resolvable:$true] %s63_s20 }
   0xb   :  { %69 = dma.hbm_to_vmem [thread:$0]  %s62_s16, 8192, %s64_s20, [#allocation9], %s10797_s21, %s10797_s21, %s10798_s1  }
   0xc   :  { %s85_s24 = sshll.u32 %s11191_s5, 4  ;;  %s10799_s25 = smov [#allocation11]   ;;  %s86_s24 = int_to_ptr.hbm [resolvable:$true] %s85_s24 }
   0xd   :  { %s87_s3 = sshll.u32 %s10799_s25, 4  ;;  %s109_s28 = sshll.u32 %s11193_s7, 4  ;;  %s88_s3 = int_to_ptr.vmem [resolvable:$true] %s87_s3  ;;  %s110_s28 = int_to_ptr.hbm [resolvable:$true] %s109_s28 }
   0xe   :  { %s10800_s29 = smov 512   ;;  %s10801_s30 = smov 32  }
   0xf   :  { %93 = dma.hbm_to_vmem [thread:$0]  %s86_s24, 32768, %s88_s3, [#allocation12], %s10800_s29, %s10800_s29, %s10801_s30  }
  0x10   :  { %s10802_s10 = smov [#allocation14]   ;;  %s10803_s12 = smov 448  }
  0x11   :  { %s111_s11 = sshll.u32 %s10802_s10, 4  ;;  %s10804_s13 = smov 28   ;;  %s112_s11 = int_to_ptr.vmem [resolvable:$true] %s111_s11 }
  0x12   :  { %117 = dma.hbm_to_vmem [thread:$0]  %s110_s28, 57344, %s112_s11, [#allocation15], %s10803_s12, %s10803_s12, %s10804_s13  }
  0x13   :  { %s24_s15 = sshll.u32 %s11186_s0, 4  ;;  %s10805_s16 = smov [#allocation2]   ;;  %s25_s15 = int_to_ptr.hbm [resolvable:$true] %s24_s15 }
  0x14   :  { %s26_s19 = sshll.u32 %s10805_s16, 4  ;;  %s51_s21 = sshll.u32 %s11188_s2, 4  ;;  %s27_s19 = int_to_ptr.vmem [resolvable:$true] %s26_s19  ;;  %s52_s21 = int_to_ptr.hbm [resolvable:$true] %s51_s21 }
  0x15   :  { %32 = dma.hbm_to_vmem [thread:$0]  %s25_s15, 256, %s27_s19, [#allocation3], %s10794_s17, %s10794_s17, %s10795_s18  }
  0x16   :  { %s10806_s1 = smov [#allocation7]   ;;  %s75_s25 = sshll.u32 %s11190_s4, 4  ;;  %s76_s25 = int_to_ptr.hbm [resolvable:$true] %s75_s25 }
  0x17   :  { %s53_s22 = sshll.u32 %s10806_s1, 4  ;;  %s99_s26 = sshll.u32 %s11192_s6, 4  ;;  %s54_s22 = int_to_ptr.vmem [resolvable:$true] %s53_s22  ;;  %s100_s26 = int_to_ptr.hbm [resolvable:$true] %s99_s26 }
  0x18   :  { %56 = dma.hbm_to_vmem [thread:$0]  %s52_s21, 32, %s54_s22, [#allocation6]  }
  0x19   :  { %s10807_s27 = smov [#allocation10]   ;;  %s10808_s17 = smov [#allocation13]  }
  0x1a   :  { %s77_s2 = sshll.u32 %s10807_s27, 4  ;;  %s101_s18 = sshll.u32 %s10808_s17, 4  ;;  %s78_s2 = int_to_ptr.vmem [resolvable:$true] %s77_s2  ;;  %s102_s18 = int_to_ptr.vmem [resolvable:$true] %s101_s18 }
  0x1b   :  { %80 = dma.hbm_to_vmem [thread:$0]  %s76_s25, 64, %s78_s2, [#allocation9]  }
  0x1c   :  { %s123_s30 = sshll.u32 %s11194_s8, 4  ;;  %s10809_s4 = smov [#allocation16]   ;;  %s124_s30 = int_to_ptr.hbm [resolvable:$true] %s123_s30 }
  0x1d   :  { %104 = dma.hbm_to_vmem [thread:$0]  %s100_s26, 128, %s102_s18, [#allocation12]  }
  0x1e   :  { %s125_s10 = sshll.u32 %s10809_s4, 4  ;;  %s126_s10 = int_to_ptr.vmem [resolvable:$true] %s125_s10 }
  0x1f   :  { %128 = dma.hbm_to_vmem [thread:$0]  %s124_s30, 112, %s126_s10, [#allocation15]  }
  0x20   :  { %10781 = dma.done.wait [#allocation3], 256  }
  0x21   :  { %10782 = vsyncadd [#allocation3], 4294967040 }
  0x22   :  { %10783 = dma.done.wait [#allocation6], 2080  }
  0x23   :  { %10784 = vsyncadd [#allocation6], 4294965216 }
  0x24   :  { %10785 = dma.done.wait [#allocation9], 8256  }
  0x25   :  { %10786 = vsyncadd [#allocation9], 4294959040 }
  0x26   :  { %10787 = dma.done.wait [#allocation12], 32896  }
  0x27   :  { %10788 = vsyncadd [#allocation12], 4294934400 }
  0x28   :  { %10789 = dma.done.wait [#allocation15], 57456  }
  0x29   :  { %10790 = vsyncadd [#allocation15], 4294909840  ;;  %v6629_v0 = vld [vmem:[#allocation5 + $0x70] sm:$0xf]  ;;  %v9722_v1 = vld [vmem:[#allocation5 + $0x74] sm:$0xf0] }
  0x2a   :  { %v9721_v2 = vld [vmem:[#allocation5 + $0x74] sm:$0xf]  ;;  %v6630_v3 = vor.u32 %v9722_v1, %v6629_v0  ;;  %v6631_v4 = vld [vmem:[#allocation5 + $0x78] sm:$0xf0]  ;;  %v6621_v5 = vld [vmem:[#allocation5 + $0x60] sm:$0xf] }
  0x2b   :  { %v9720_v6 = vld [vmem:[#allocation5 + $0x64] sm:$0xf0]  ;;  %v6634_v7 = vor.u32 %v9721_v2, %v6631_v4  ;;  %v9719_v8 = vld [vmem:[#allocation5 + $0x64] sm:$0xf]  ;;  %v6623_v9 = vld [vmem:[#allocation5 + $0x68] sm:$0xf0] }
  0x2c   :  { %270 = vmatpush.bf16.msra.mxu0 %v6630_v3  ;;  %v6622_v10 = vor.u32 %v9720_v6, %v6621_v5  ;;  %v6626_v11 = vor.u32 %v9719_v8, %v6623_v9  ;;  %v6613_v12 = vld [vmem:[#allocation5 + $0x50] sm:$0xf]  ;;  %v9718_v13 = vld [vmem:[#allocation5 + $0x54] sm:$0xf0]  ;;  %v9717_v14 = vld [vmem:[#allocation5 + $0x54] sm:$0xf] }
  0x2d   :  { %284 = vmatpush.bf16.msra.mxu1 %v6634_v7  ;;  %v6615_v15 = vld [vmem:[#allocation5 + $0x58] sm:$0xf0]  ;;  %v6614_v16 = vor.u32 %v9718_v13, %v6613_v12  ;;  %v6605_v18 = vld [vmem:[#allocation5 + $0x40] sm:$0xf]  ;;  %v9716_v19 = vld [vmem:[#allocation5 + $0x44] sm:$0xf0] }
  0x2e   :  { %v6618_v17 = vor.u32 %v9717_v14, %v6615_v15  ;;  %v9715_v20 = vld [vmem:[#allocation5 + $0x44] sm:$0xf]  ;;  %v6607_v21 = vld [vmem:[#allocation5 + $0x48] sm:$0xf0]  ;;  %v6606_v22 = vor.u32 %v9716_v19, %v6605_v18  ;;  %v6597_v23 = vld [vmem:[#allocation5 + $0x30] sm:$0xf] }
  0x2f   :  { %v6749_v24 = vld [vmem:[#allocation8 + $0xe0] sm:$0xf]  ;;  %v9753_v25 = vld [vmem:[#allocation8 + $0xec] sm:$0xf0]  ;;  %v6610_v26 = vor.u32 %v9715_v20, %v6607_v21  ;;  %v9714_v27 = vld [vmem:[#allocation5 + $0x34] sm:$0xf0] }
  0x30   :  { %271 = vmatpush.bf16.msra.mxu0 %v6622_v10  ;;  %v6750_v28 = vor.u32 %v9753_v25, %v6749_v24  ;;  %v6877_v29 = vld [vmem:[#allocation8 + $0x1e0] sm:$0xf]  ;;  %v9785_v30 = vld [vmem:[#allocation8 + $0x1ec] sm:$0xf0]  ;;  %v6599_v32 = vld [vmem:[#allocation5 + $0x38] sm:$0xf0]  ;;  %v6598_v37 = vor.u32 %v9714_v27, %v6597_v23 }
  0x31   :  { %285 = vmatpush.bf16.msra.mxu1 %v6626_v11  ;;  %v9713_v31 = vld [vmem:[#allocation5 + $0x34] sm:$0xf]  ;;  %v6878_v33 = vor.u32 %v9785_v30, %v6877_v29  ;;  %v6733_v34 = vld [vmem:[#allocation8 + $0xc0] sm:$0xf]  ;;  %v9712_v39 = vld [vmem:[#allocation5 + $0x24] sm:$0xf0] }
  0x32   :  { %706 = vmatpush.bf16.msra.mxu2 %v6750_v28  ;;  %v9749_v35 = vld [vmem:[#allocation8 + $0xcc] sm:$0xf0]  ;;  %v6861_v36 = vld [vmem:[#allocation8 + $0x1c0] sm:$0xf]  ;;  %v6602_v42 = vor.u32 %v9713_v31, %v6599_v32  ;;  %v6591_v44 = vld [vmem:[#allocation5 + $0x28] sm:$0xf0] }
  0x33   :  { %v6589_v38 = vld [vmem:[#allocation5 + $0x20] sm:$0xf]  ;;  %720 = vmatpush.bf16.msra.mxu3 %v6878_v33  ;;  %v6734_v40 = vor.u32 %v9749_v35, %v6733_v34  ;;  %v9781_v41 = vld [vmem:[#allocation8 + $0x1cc] sm:$0xf0]  ;;  %v9711_v43 = vld [vmem:[#allocation5 + $0x24] sm:$0xf] }
  0x34   :  { %272 = vmatpush.bf16.msra.mxu0 %v6614_v16  ;;  %v6862_v45 = vor.u32 %v9781_v41, %v6861_v36  ;;  %v6717_v46 = vld [vmem:[#allocation8 + $0xa0] sm:$0xf]  ;;  %v9745_v47 = vld [vmem:[#allocation8 + $0xac] sm:$0xf0]  ;;  %v6590_v51 = vor.u32 %v9712_v39, %v6589_v38  ;;  %v6594_v56 = vor.u32 %v9711_v43, %v6591_v44  ;;  %v9710_v57 = vld [vmem:[#allocation5 + $0x14] sm:$0xf0] }
  0x35   :  { %286 = vmatpush.bf16.msra.mxu1 %v6618_v17  ;;  %v6845_v48 = vld [vmem:[#allocation8 + $0x1a0] sm:$0xf]  ;;  %v9777_v49 = vld [vmem:[#allocation8 + $0x1ac] sm:$0xf0]  ;;  %v6718_v50 = vor.u32 %v9745_v47, %v6717_v46  ;;  %v6583_v61 = vld [vmem:[#allocation5 + $0x18] sm:$0xf0] }
  0x36   :  { %707 = vmatpush.bf16.msra.mxu2 %v6734_v40  ;;  %v6581_v52 = vld [vmem:[#allocation5 + $0x10] sm:$0xf]  ;;  %v6846_v53 = vor.u32 %v9777_v49, %v6845_v48  ;;  %v6701_v54 = vld [vmem:[#allocation8 + $0x80] sm:$0xf]  ;;  %v9709_v60 = vld [vmem:[#allocation5 + $0x14] sm:$0xf] }
  0x37   :  { %721 = vmatpush.bf16.msra.mxu3 %v6862_v45  ;;  %v9741_v55 = vld [vmem:[#allocation8 + $0x8c] sm:$0xf0]  ;;  %v6829_v58 = vld [vmem:[#allocation8 + $0x180] sm:$0xf]  ;;  %v6582_v0 = vor.u32 %v9710_v57, %v6581_v52  ;;  %v9708_v1 = vld [vmem:[#allocation5 + $0x4] sm:$0xf0]  ;;  %v6586_v5 = vor.u32 %v9709_v60, %v6583_v61 }
  0x38   :  { %273 = vmatpush.bf16.msra.mxu0 %v6606_v22  ;;  %v9773_v59 = vld [vmem:[#allocation8 + $0x18c] sm:$0xf0]  ;;  %v6573_v62 = vld [vmem:[#allocation5] sm:$0xf]  ;;  %v6702_v63 = vor.u32 %v9741_v55, %v6701_v54  ;;  %v9707_v6 = vld [vmem:[#allocation5 + $0x4] sm:$0xf] }
  0x39   :  { %287 = vmatpush.bf16.msra.mxu1 %v6610_v26  ;;  %v6830_v2 = vor.u32 %v9773_v59, %v6829_v58  ;;  %v6685_v3 = vld [vmem:[#allocation8 + $0x60] sm:$0xf]  ;;  %v9737_v4 = vld [vmem:[#allocation8 + $0x6c] sm:$0xf0]  ;;  %v6575_v9 = vld [vmem:[#allocation5 + $0x8] sm:$0xf0]  ;;  %v6574_v16 = vor.u32 %v9708_v1, %v6573_v62 }
  0x3a   :  { %708 = vmatpush.bf16.msra.mxu2 %v6718_v50  ;;  %v6813_v7 = vld [vmem:[#allocation8 + $0x160] sm:$0xf]  ;;  %v9769_v8 = vld [vmem:[#allocation8 + $0x16c] sm:$0xf0]  ;;  %v9751_v10 = vld [vmem:[#allocation8 + $0xe4] sm:$0xf]  ;;  %v6686_v15 = vor.u32 %v9737_v4, %v6685_v3  ;;  %v6578_v21 = vor.u32 %v9707_v6, %v6575_v9 }
  0x3b   :  { %722 = vmatpush.bf16.msra.mxu3 %v6846_v53  ;;  %v6751_v11 = vld [vmem:[#allocation8 + $0xf0] sm:$0xf0]  ;;  %v9783_v13 = vld [vmem:[#allocation8 + $0x1e4] sm:$0xf]  ;;  %v6814_v18 = vor.u32 %v9769_v8, %v6813_v7  ;;  %v6669_v19 = vld [vmem:[#allocation8 + $0x40] sm:$0xf] }
  0x3c   :  { %274 = vmatpush.bf16.msra.mxu0 %v6598_v37  ;;  %v165_v12 = vld [vmem:[#allocation2] sm:$0xff]  ;;  %v166_v17 = vld [vmem:[#allocation2 + $0x8] sm:$0xff]  ;;  %v6754_v22 = vor.u32 %v9751_v10, %v6751_v11  ;;  %v6797_v23 = vld [vmem:[#allocation8 + $0x140] sm:$0xf]  ;;  %s10810_s6 = smov [#allocation17]   ;;  %s6554_s13 = sshll.u32 %s11195_s9, 4  ;;  %s6555_s13 = int_to_ptr.hbm [resolvable:$true] %s6554_s13 }
  0x3d   :  { %288 = vmatpush.bf16.msra.mxu1 %v6602_v42  ;;  %v6879_v14 = vld [vmem:[#allocation8 + $0x1f0] sm:$0xf0]  ;;  %v9733_v20 = vld [vmem:[#allocation8 + $0x4c] sm:$0xf0]  ;;  %v9747_v26 = vld [vmem:[#allocation8 + $0xc4] sm:$0xf]  ;;  %v167_v28 = vpack.c.bf16 %v166_v17, %v165_v12 }
  0x3e   :  { %709 = vmatpush.bf16.msra.mxu2 %v6702_v63  ;;  %v9765_v24 = vld [vmem:[#allocation8 + $0x14c] sm:$0xf0]  ;;  %v6882_v25 = vor.u32 %v9783_v13, %v6879_v14  ;;  %v6735_v27 = vld [vmem:[#allocation8 + $0xd0] sm:$0xf0]  ;;  %v9779_v29 = vld [vmem:[#allocation8 + $0x1c4] sm:$0xf]  ;;  %v6670_v31 = vor.u32 %v9733_v20, %v6669_v19 }
  0x3f   :  { %723 = vmatpush.bf16.msra.mxu3 %v6830_v2  ;;  %v6863_v30 = vld [vmem:[#allocation8 + $0x1d0] sm:$0xf0]  ;;  %v6798_v32 = vor.u32 %v9765_v24, %v6797_v23  ;;  %v6653_v33 = vld [vmem:[#allocation8 + $0x20] sm:$0xf]  ;;  %v9729_v34 = vld [vmem:[#allocation8 + $0x2c] sm:$0xf0]  ;;  %v6738_v35 = vor.u32 %v9747_v26, %v6735_v27 }
  0x40   :  { %275 = vmatpush.bf16.msra.mxu0 %v6590_v51  ;;  %v6781_v36 = vld [vmem:[#allocation8 + $0x120] sm:$0xf]  ;;  %v9761_v37 = vld [vmem:[#allocation8 + $0x12c] sm:$0xf0]  ;;  %v6866_v38 = vor.u32 %v9779_v29, %v6863_v30  ;;  %v9743_v39 = vld [vmem:[#allocation8 + $0xa4] sm:$0xf]  ;;  %v6654_v43 = vor.u32 %v9729_v34, %v6653_v33 }
  0x41   :  { %289 = vmatpush.bf16.msra.mxu1 %v6594_v56  ;;  %v6719_v40 = vld [vmem:[#allocation8 + $0xb0] sm:$0xf0]  ;;  %v9775_v41 = vld [vmem:[#allocation8 + $0x1a4] sm:$0xf]  ;;  %v6782_v44 = vor.u32 %v9761_v37, %v6781_v36  ;;  %v6637_v7 = vld [vmem:[#allocation8] sm:$0xf] }
  0x42   :  { %710 = vmatpush.bf16.msra.mxu2 %v6686_v15  ;;  %v6847_v42 = vld [vmem:[#allocation8 + $0x1b0] sm:$0xf0]  ;;  %v6722_v45 = vor.u32 %v9743_v39, %v6719_v40  ;;  %v9739_v47 = vld [vmem:[#allocation8 + $0x84] sm:$0xf]  ;;  %v9725_v8 = vld [vmem:[#allocation8 + $0xc] sm:$0xf0] }
  0x43   :  { %724 = vmatpush.bf16.msra.mxu3 %v6814_v18  ;;  %v6850_v46 = vor.u32 %v9775_v41, %v6847_v42  ;;  %v6703_v48 = vld [vmem:[#allocation8 + $0x90] sm:$0xf0]  ;;  %v9771_v49 = vld [vmem:[#allocation8 + $0x184] sm:$0xf]  ;;  %v6765_v9 = vld [vmem:[#allocation8 + $0x100] sm:$0xf]  ;;  %v6638_v10 = vor.u32 %v9725_v8, %v6637_v7 }
  0x44   :  { %276 = vmatpush.bf16.msra.mxu0 %v6582_v0  ;;  %v6831_v50 = vld [vmem:[#allocation8 + $0x190] sm:$0xf0]  ;;  %v6706_v51 = vor.u32 %v9739_v47, %v6703_v48  ;;  %v9735_v53 = vld [vmem:[#allocation8 + $0x64] sm:$0xf]  ;;  %v9757_v11 = vld [vmem:[#allocation8 + $0x10c] sm:$0xf0] }
  0x45   :  { %290 = vmatpush.bf16.msra.mxu1 %v6586_v5  ;;  %v6834_v52 = vor.u32 %v9771_v49, %v6831_v50  ;;  %v6687_v54 = vld [vmem:[#allocation8 + $0x70] sm:$0xf0]  ;;  %v9767_v55 = vld [vmem:[#allocation8 + $0x164] sm:$0xf]  ;;  %v6766_v14 = vor.u32 %v9757_v11, %v6765_v9  ;;  %v6757_v19 = vld [vmem:[#allocation8 + $0xe8] sm:$0xf] }
  0x46   :  { %711 = vmatpush.bf16.msra.mxu2 %v6670_v31  ;;  %v6815_v56 = vld [vmem:[#allocation8 + $0x170] sm:$0xf0]  ;;  %v6690_v57 = vor.u32 %v9735_v53, %v6687_v54  ;;  %v9731_v59 = vld [vmem:[#allocation8 + $0x44] sm:$0xf]  ;;  %v9754_v20 = vld [vmem:[#allocation8 + $0xf4] sm:$0xf0] }
  0x47   :  { %725 = vmatpush.bf16.msra.mxu3 %v6798_v32  ;;  %v6818_v58 = vor.u32 %v9767_v55, %v6815_v56  ;;  %v6671_v60 = vld [vmem:[#allocation8 + $0x50] sm:$0xf0]  ;;  %v9763_v61 = vld [vmem:[#allocation8 + $0x144] sm:$0xf]  ;;  %v9786_v23 = vld [vmem:[#allocation8 + $0x1f4] sm:$0xf0] }
  0x48   :  { %277 = vmatpush.bf16.msra.mxu0 %v6574_v16  ;;  %v6799_v62 = vld [vmem:[#allocation8 + $0x150] sm:$0xf0]  ;;  %v6674_v63 = vor.u32 %v9731_v59, %v6671_v60  ;;  %v9727_v1 = vld [vmem:[#allocation8 + $0x24] sm:$0xf]  ;;  %v9752_v24 = vld [vmem:[#allocation8 + $0xec] sm:$0xf] }
  0x49   :  { %291 = vmatpush.bf16.msra.mxu1 %v6578_v21  ;;  %v6802_v0 = vor.u32 %v9763_v61, %v6799_v62  ;;  %v6655_v2 = vld [vmem:[#allocation8 + $0x30] sm:$0xf0]  ;;  %v9759_v3 = vld [vmem:[#allocation8 + $0x124] sm:$0xf]  ;;  %v6885_v21 = vld [vmem:[#allocation8 + $0x1e8] sm:$0xf] }
  0x4a   :  { %712 = vmatpush.bf16.msra.mxu2 %v6654_v43  ;;  %v6783_v4 = vld [vmem:[#allocation8 + $0x130] sm:$0xf0]  ;;  %v6658_v5 = vor.u32 %v9727_v1, %v6655_v2  ;;  %v9723_v12 = vld [vmem:[#allocation8 + $0x4] sm:$0xf]  ;;  %v6886_v26 = vor.u32 %v9786_v23, %v6885_v21  ;;  %v6887_v29 = vld [vmem:[#allocation8 + $0x1f8] sm:$0xf0] }
  0x4b   :  { %278 = vmatmul.bf16.vlgmr.msra.gmra.mxu0 %v167_v28  ;;  %726 = vmatpush.bf16.msra.mxu3 %v6782_v44  ;;  %v6786_v6 = vor.u32 %v9759_v3, %v6783_v4  ;;  %v6639_v13 = vld [vmem:[#allocation8 + $0x10] sm:$0xf0]  ;;  %v9755_v16 = vld [vmem:[#allocation8 + $0x104] sm:$0xf]  ;;  %v6741_v30 = vld [vmem:[#allocation8 + $0xc8] sm:$0xf] }
  0x4c   :  { %734 = vmatpush.bf16.msrb.mxu0 %v6754_v22  ;;  %292 = vmatmul.bf16.vlgmr.msra.gmra.mxu1 %v167_v28  ;;  %v6642_v15 = vor.u32 %v9723_v12, %v6639_v13  ;;  %v6767_v17 = vld [vmem:[#allocation8 + $0x110] sm:$0xf0]  ;;  %v6758_v22 = vor.u32 %v9754_v20, %v6757_v19  ;;  %v9784_v28 = vld [vmem:[#allocation8 + $0x1ec] sm:$0xf]  ;;  %v9750_v32 = vld [vmem:[#allocation8 + $0xd4] sm:$0xf0] }
  0x4d   :  { %748 = vmatpush.bf16.msrb.mxu1 %v6882_v25  ;;  %v6770_v18 = vor.u32 %v9755_v16, %v6767_v17  ;;  %v6759_v25 = vld [vmem:[#allocation8 + $0xf8] sm:$0xf0]  ;;  %v6890_v31 = vor.u32 %v9784_v28, %v6887_v29  ;;  %v6869_v33 = vld [vmem:[#allocation8 + $0x1c8] sm:$0xf]  ;;  %v9782_v34 = vld [vmem:[#allocation8 + $0x1d4] sm:$0xf0] }
  0x4e   :  { %713 = vmatpush.bf16.msra.mxu2 %v6638_v10  ;;  %v6762_v27 = vor.u32 %v9752_v24, %v6759_v25  ;;  %v6870_v36 = vor.u32 %v9782_v34, %v6869_v33  ;;  %v9748_v37 = vld [vmem:[#allocation8 + $0xcc] sm:$0xf]  ;;  %v6871_v41 = vld [vmem:[#allocation8 + $0x1d8] sm:$0xf0]  ;;  %v6725_v43 = vld [vmem:[#allocation8 + $0xa8] sm:$0xf] }
  0x4f   :  { %727 = vmatpush.bf16.msra.mxu3 %v6766_v14  ;;  %v9780_v39 = vld [vmem:[#allocation8 + $0x1cc] sm:$0xf]  ;;  %v9746_v44 = vld [vmem:[#allocation8 + $0xb4] sm:$0xf0]  ;;  %v6727_v49 = vld [vmem:[#allocation8 + $0xb8] sm:$0xf0] }
  0x50   :  { %735 = vmatpush.bf16.msrb.mxu0 %v6738_v35  ;;  %v6742_v35 = vor.u32 %v9750_v32, %v6741_v30  ;;  %v6874_v42 = vor.u32 %v9780_v39, %v6871_v41  ;;  %v9778_v47 = vld [vmem:[#allocation8 + $0x1b4] sm:$0xf0]  ;;  %v9744_v48 = vld [vmem:[#allocation8 + $0xac] sm:$0xf]  ;;  %v6855_v53 = vld [vmem:[#allocation8 + $0x1b8] sm:$0xf0] }
  0x51   :  { %749 = vmatpush.bf16.msrb.mxu1 %v6866_v38  ;;  %v6743_v38 = vld [vmem:[#allocation8 + $0xd8] sm:$0xf0]  ;;  %v6709_v55 = vld [vmem:[#allocation8 + $0x88] sm:$0xf]  ;;  %v9742_v56 = vld [vmem:[#allocation8 + $0x94] sm:$0xf0] }
  0x52   :  { %762 = vmatpush.bf16.msrb.mxu2 %v6758_v22  ;;  %v6746_v40 = vor.u32 %v9748_v37, %v6743_v38  ;;  %v9774_v59 = vld [vmem:[#allocation8 + $0x194] sm:$0xf0]  ;;  %v9740_v60 = vld [vmem:[#allocation8 + $0x8c] sm:$0xf]  ;;  %v6711_v61 = vld [vmem:[#allocation8 + $0x98] sm:$0xf0] }
  0x53   :  { %776 = vmatpush.bf16.msrb.mxu3 %v6886_v26  ;;  %v6839_v1 = vld [vmem:[#allocation8 + $0x198] sm:$0xf0]  ;;  %v6693_v3 = vld [vmem:[#allocation8 + $0x68] sm:$0xf]  ;;  %v9738_v4 = vld [vmem:[#allocation8 + $0x74] sm:$0xf0] }
  0x54   :  { %736 = vmatpush.bf16.msrb.mxu0 %v6722_v45  ;;  %v6853_v45 = vld [vmem:[#allocation8 + $0x1a8] sm:$0xf]  ;;  %v9770_v7 = vld [vmem:[#allocation8 + $0x174] sm:$0xf0]  ;;  %v9736_v8 = vld [vmem:[#allocation8 + $0x6c] sm:$0xf] }
  0x55   :  { %750 = vmatpush.bf16.msrb.mxu1 %v6850_v46  ;;  %v6726_v46 = vor.u32 %v9746_v44, %v6725_v43  ;;  %v6854_v50 = vor.u32 %v9778_v47, %v6853_v45  ;;  %v6695_v9 = vld [vmem:[#allocation8 + $0x78] sm:$0xf0]  ;;  %v9768_v12 = vld [vmem:[#allocation8 + $0x16c] sm:$0xf]  ;;  %v6677_v14 = vld [vmem:[#allocation8 + $0x48] sm:$0xf] }
  0x56   :  { %763 = vmatpush.bf16.msrb.mxu2 %v6742_v35  ;;  %v6698_v11 = vor.u32 %v9736_v8, %v6695_v9  ;;  %v6823_v13 = vld [vmem:[#allocation8 + $0x178] sm:$0xf0]  ;;  %v9734_v16 = vld [vmem:[#allocation8 + $0x54] sm:$0xf0]  ;;  %v6805_v17 = vld [vmem:[#allocation8 + $0x148] sm:$0xf] }
  0x57   :  { %777 = vmatpush.bf16.msrb.mxu3 %v6870_v36  ;;  %v9732_v19 = vld [vmem:[#allocation8 + $0x4c] sm:$0xf]  ;;  %v6679_v20 = vld [vmem:[#allocation8 + $0x58] sm:$0xf0]  ;;  %v6678_v22 = vor.u32 %v9734_v16, %v6677_v14  ;;  %v6661_v26 = vld [vmem:[#allocation8 + $0x28] sm:$0xf] }
  0x58   :  { %737 = vmatpush.bf16.msrb.mxu0 %v6706_v51  ;;  %v6730_v51 = vor.u32 %v9744_v48, %v6727_v49  ;;  %v9764_v21 = vld [vmem:[#allocation8 + $0x14c] sm:$0xf]  ;;  %v6807_v23 = vld [vmem:[#allocation8 + $0x158] sm:$0xf0]  ;;  %v6682_v25 = vor.u32 %v9732_v19, %v6679_v20  ;;  %v6789_v28 = vld [vmem:[#allocation8 + $0x128] sm:$0xf] }
  0x59   :  { %751 = vmatpush.bf16.msrb.mxu1 %v6834_v52  ;;  %v9776_v52 = vld [vmem:[#allocation8 + $0x1ac] sm:$0xf]  ;;  %v6810_v29 = vor.u32 %v9764_v21, %v6807_v23  ;;  %v9762_v30 = vld [vmem:[#allocation8 + $0x134] sm:$0xf0]  ;;  %v6663_v32 = vld [vmem:[#allocation8 + $0x38] sm:$0xf0] }
  0x5a   :  { %v6858_v54 = vor.u32 %v9776_v52, %v6855_v53  ;;  %764 = vmatpush.bf16.msrb.mxu2 %v6726_v46  ;;  %v9760_v33 = vld [vmem:[#allocation8 + $0x12c] sm:$0xf]  ;;  %v6791_v34 = vld [vmem:[#allocation8 + $0x138] sm:$0xf0]  ;;  %v6790_v36 = vor.u32 %v9762_v30, %v6789_v28  ;;  %v6645_v38 = vld [vmem:[#allocation8 + $0x8] sm:$0xf] }
  0x5b   :  { %778 = vmatpush.bf16.msrb.mxu3 %v6854_v50  ;;  %v9726_v39 = vld [vmem:[#allocation8 + $0x14] sm:$0xf0]  ;;  %v6794_v41 = vor.u32 %v9760_v33, %v6791_v34  ;;  %v9724_v43 = vld [vmem:[#allocation8 + $0xc] sm:$0xf]  ;;  %v6647_v44 = vld [vmem:[#allocation8 + $0x18] sm:$0xf0] }
  0x5c   :  { %738 = vmatpush.bf16.msrb.mxu0 %v6690_v57  ;;  %v6837_v57 = vld [vmem:[#allocation8 + $0x188] sm:$0xf]  ;;  %v9756_v45 = vld [vmem:[#allocation8 + $0x10c] sm:$0xf]  ;;  %v6775_v46 = vld [vmem:[#allocation8 + $0x118] sm:$0xf0]  ;;  %v6646_v47 = vor.u32 %v9726_v39, %v6645_v38  ;;  %v6650_v49 = vor.u32 %v9724_v43, %v6647_v44 }
  0x5d   :  { %752 = vmatpush.bf16.msrb.mxu1 %v6818_v58  ;;  %v6710_v58 = vor.u32 %v9742_v56, %v6709_v55  ;;  %v6838_v62 = vor.u32 %v9774_v59, %v6837_v57  ;;  %v184_v50 = vld [vmem:[#allocation7] sm:$0x3]  ;;  %v7373_v59 = vld [vmem:[#allocation11 + $0x3c0] sm:$0xf]  ;;  %s6552_s8 = sshll.u32 %s10810_s6, 4  ;;  %s10811_s14 = smov 896   ;;  %s6553_s8 = int_to_ptr.vmem [resolvable:$true] %s6552_s8 }
  0x5e   :  { %v186_v53 = vperm.slane %v184_v50, 0  ;;  %v187_v55 = vperm.slane %v184_v50, 1  ;;  %v9975_v9 = vld [vmem:[#allocation11 + $0x5dc] sm:$0xf0]  ;;  %s10812_s5 = smov 56  }
  0x5f   :  { %765 = vmatpush.bf16.msrb.mxu2 %v6710_v58  ;;  %779 = vmatpush.bf16.msrb.mxu3 %v6838_v62  ;;  %v7341_v16 = vld [vmem:[#allocation11 + $0x380] sm:$0xf] }
  0x60   :  { %739 = vmatpush.bf16.msrb.mxu0 %v6674_v63  ;;  %v6714_v63 = vor.u32 %v9740_v60, %v6711_v61  ;;  %v9911_v60 = vld [vmem:[#allocation11 + $0x3dc] sm:$0xf0] }
  0x61   :  { %753 = vmatpush.bf16.msrb.mxu1 %v6802_v0  ;;  %v9772_v0 = vld [vmem:[#allocation8 + $0x18c] sm:$0xf]  ;;  %v7085_v20 = vld [vmem:[#allocation11 + $0x180] sm:$0xf] }
  0x62   :  { %v6842_v2 = vor.u32 %v9772_v0, %v6839_v1  ;;  %v7117_v0 = vld [vmem:[#allocation11 + $0x1c0] sm:$0xf] }
  0x63   :  { %v9847_v1 = vld [vmem:[#allocation11 + $0x1dc] sm:$0xf0] }
  0x64   :  { %740 = vmatpush.bf16.msrb.mxu0 %v6658_v5  ;;  %v6821_v5 = vld [vmem:[#allocation8 + $0x168] sm:$0xf]  ;;  %v9839_v21 = vld [vmem:[#allocation11 + $0x19c] sm:$0xf0] }
  0x65   :  { %754 = vmatpush.bf16.msrb.mxu1 %v6786_v6  ;;  %v6694_v6 = vor.u32 %v9738_v4, %v6693_v3  ;;  %v6822_v10 = vor.u32 %v9770_v7, %v6821_v5  ;;  %v7885_v4 = vld [vmem:[#allocation11 + $0x7c0] sm:$0xf] }
  0x66   :  { %v10039_v5 = vld [vmem:[#allocation11 + $0x7dc] sm:$0xf0] }
  0x67   :  { %766 = vmatpush.bf16.msrb.mxu2 %v6694_v6  ;;  %780 = vmatpush.bf16.msrb.mxu3 %v6822_v10  ;;  %v7629_v7 = vld [vmem:[#allocation11 + $0x5c0] sm:$0xf] }
  0x68   :  { %741 = vmatpush.bf16.msrb.mxu0 %v6642_v15  ;;  %v6826_v15 = vor.u32 %v9768_v12, %v6823_v13  ;;  %v7374_v12 = vor.u32 %v9911_v60, %v7373_v59  ;;  %v7853_v23 = vld [vmem:[#allocation11 + $0x780] sm:$0xf] }
  0x69   :  { %755 = vmatpush.bf16.msrb.mxu1 %v6770_v18  ;;  %v9766_v18 = vld [vmem:[#allocation8 + $0x154] sm:$0xf0]  ;;  %v9895_v30 = vld [vmem:[#allocation11 + $0x35c] sm:$0xf0] }
  0x6a   :  { %v6806_v24 = vor.u32 %v9766_v18, %v6805_v17  ;;  %v9903_v17 = vld [vmem:[#allocation11 + $0x39c] sm:$0xf0]  ;;  %v7118_v18 = vor.u32 %v9847_v1, %v7117_v0 }
  0x6b   :  { %767 = vmatpush.bf16.msrb.mxu2 %v6678_v22  ;;  %v7886_v22 = vor.u32 %v10039_v5, %v7885_v4  ;;  %v7342_v28 = vor.u32 %v9903_v17, %v7341_v16  ;;  %v9831_v33 = vld [vmem:[#allocation11 + $0x15c] sm:$0xf0] }
  0x6c   :  { %790 = vmatpush.bf16.msra.mxu0 %v6762_v27  ;;  %v9730_v27 = vld [vmem:[#allocation8 + $0x34] sm:$0xf0]  ;;  %781 = vmatpush.bf16.msrb.mxu3 %v6806_v24  ;;  %v7630_v24 = vor.u32 %v9975_v9, %v7629_v7  ;;  %v7565_v38 = vld [vmem:[#allocation11 + $0x540] sm:$0xf] }
  0x6d   :  { %804 = vmatpush.bf16.msra.mxu1 %v6890_v31  ;;  %v9728_v31 = vld [vmem:[#allocation8 + $0x2c] sm:$0xf]  ;;  %v6662_v35 = vor.u32 %v9730_v27, %v6661_v26  ;;  %v7597_v26 = vld [vmem:[#allocation11 + $0x580] sm:$0xf] }
  0x6e   :  { %v6666_v37 = vor.u32 %v9728_v31, %v6663_v32  ;;  %v9967_v27 = vld [vmem:[#allocation11 + $0x59c] sm:$0xf0]  ;;  %v7086_v31 = vor.u32 %v9839_v21, %v7085_v20 }
  0x6f   :  { %768 = vmatpush.bf16.msrb.mxu2 %v6662_v35  ;;  %v7053_v32 = vld [vmem:[#allocation11 + $0x140] sm:$0xf] }
  0x70   :  { %791 = vmatpush.bf16.msra.mxu0 %v6746_v40  ;;  %v6773_v40 = vld [vmem:[#allocation8 + $0x108] sm:$0xf]  ;;  %782 = vmatpush.bf16.msrb.mxu3 %v6790_v36  ;;  %v7821_v35 = vld [vmem:[#allocation11 + $0x740] sm:$0xf]  ;;  %v7598_v36 = vor.u32 %v9967_v27, %v7597_v26  ;;  %v7054_v43 = vor.u32 %v9831_v33, %v7053_v32 }
  0x71   :  { %805 = vmatpush.bf16.msra.mxu1 %v6874_v42  ;;  %v9758_v42 = vld [vmem:[#allocation8 + $0x114] sm:$0xf0]  ;;  %v9959_v39 = vld [vmem:[#allocation11 + $0x55c] sm:$0xf0]  ;;  %v7119_v26 = vld [vmem:[#allocation11 + $0x1e0] sm:$0xf0] }
  0x72   :  { %v6774_v48 = vor.u32 %v9758_v42, %v6773_v40  ;;  %v9887_v42 = vld [vmem:[#allocation11 + $0x31c] sm:$0xf0]  ;;  %v7343_v32 = vld [vmem:[#allocation11 + $0x3a0] sm:$0xf0] }
  0x73   :  { %769 = vmatpush.bf16.msrb.mxu2 %v6646_v47  ;;  %v7021_v44 = vld [vmem:[#allocation11 + $0x100] sm:$0xf]  ;;  %v9835_v33 = vld [vmem:[#allocation11 + $0x184] sm:$0xf] }
  0x74   :  { %792 = vmatpush.bf16.msra.mxu0 %v6730_v51  ;;  %v6778_v51 = vor.u32 %v9756_v45, %v6775_v46  ;;  %783 = vmatpush.bf16.msrb.mxu3 %v6774_v48  ;;  %v9823_v45 = vld [vmem:[#allocation11 + $0x11c] sm:$0xf0]  ;;  %v7566_v48 = vor.u32 %v9959_v39, %v7565_v38  ;;  %v7311_v38 = vld [vmem:[#allocation11 + $0x360] sm:$0xf0] }
  0x75   :  { %806 = vmatpush.bf16.msra.mxu1 %v6858_v54  ;;  %v7789_v47 = vld [vmem:[#allocation11 + $0x700] sm:$0xf] }
  0x76   :  { %v7533_v50 = vld [vmem:[#allocation11 + $0x500] sm:$0xf] }
  0x77   :  { %v7757_v59 = vld [vmem:[#allocation11 + $0x6c0] sm:$0xf] }
  0x78   :  { %793 = vmatpush.bf16.msra.mxu0 %v6714_v63  ;;  %v7213_v1 = vld [vmem:[#allocation11 + $0x280] sm:$0xf] }
  0x79   :  { %807 = vmatpush.bf16.msra.mxu1 %v6842_v2  ;;  %v6957_v4 = vld [vmem:[#allocation11 + $0x80] sm:$0xf] }
  0x7a   :  { %v9807_v5 = vld [vmem:[#allocation11 + $0x9c] sm:$0xf0] }
  0x7b   :  { %v9999_v9 = vld [vmem:[#allocation11 + $0x69c] sm:$0xf0] }
  0x7c   :  { %794 = vmatpush.bf16.msra.mxu0 %v6698_v11  ;;  %v9799_v16 = vld [vmem:[#allocation11 + $0x5c] sm:$0xf0] }
  0x7d   :  { %808 = vmatpush.bf16.msra.mxu1 %v6826_v15  ;;  %v9855_v20 = vld [vmem:[#allocation11 + $0x21c] sm:$0xf0] }
  0x80   :  { %795 = vmatpush.bf16.msra.mxu0 %v6682_v25  ;;  %v10031_v25 = vld [vmem:[#allocation11 + $0x79c] sm:$0xf0] }
  0x81   :  { %809 = vmatpush.bf16.msra.mxu1 %v6810_v29  ;;  %v7309_v29 = vld [vmem:[#allocation11 + $0x340] sm:$0xf]  ;;  %v7854_v34 = vor.u32 %v10031_v25, %v7853_v23  ;;  %v9843_v25 = vld [vmem:[#allocation11 + $0x1c4] sm:$0xf] }
  0x82   :  { %v7310_v40 = vor.u32 %v9895_v30, %v7309_v29  ;;  %v6893_v23 = vld [vmem:[#allocation11] sm:$0xf]  ;;  %v9899_v30 = vld [vmem:[#allocation11 + $0x384] sm:$0xf] }
  0x84   :  { %796 = vmatpush.bf16.msra.mxu0 %v6666_v37  ;;  %v10023_v37 = vld [vmem:[#allocation11 + $0x75c] sm:$0xf0] }
  0x85   :  { %810 = vmatpush.bf16.msra.mxu1 %v6794_v41  ;;  %v7277_v41 = vld [vmem:[#allocation11 + $0x300] sm:$0xf]  ;;  %v7822_v46 = vor.u32 %v10023_v37, %v7821_v35  ;;  %v7346_v35 = vor.u32 %v9899_v30, %v7343_v32  ;;  %v9891_v37 = vld [vmem:[#allocation11 + $0x344] sm:$0xf] }
  0x86   :  { %v7314_v39 = vor.u32 %v9891_v37, %v7311_v38  ;;  %v9851_v30 = vld [vmem:[#allocation11 + $0x204] sm:$0xf] }
  0x87   :  { %v10011_v32 = vld [vmem:[#allocation11 + $0x704] sm:$0xf] }
  0x88   :  { %797 = vmatpush.bf16.msra.mxu0 %v6650_v49  ;;  %v10015_v49 = vld [vmem:[#allocation11 + $0x71c] sm:$0xf0]  ;;  %v6927_v37 = vld [vmem:[#allocation11 + $0x60] sm:$0xf0] }
  0x89   :  { %811 = vmatpush.bf16.msra.mxu1 %v6778_v51  ;;  %v9951_v51 = vld [vmem:[#allocation11 + $0x51c] sm:$0xf0] }
  0x8a   :  { %v7534_v60 = vor.u32 %v9951_v51, %v7533_v50  ;;  %v7055_v50 = vld [vmem:[#allocation11 + $0x160] sm:$0xf0] }
  0xc8   :  { %v279_v52 = vpop.f32.mrf.mxu0 }
  0xc9   :  { %v293_v54 = vpop.f32.mrf.mxu1  ;;  %v280_v56 = vadd.f32 %v279_v52, %v186_v53  ;;  %v7278_v52 = vor.u32 %v9887_v42, %v7277_v41  ;;  %v9991_v41 = vld [vmem:[#allocation11 + $0x65c] sm:$0xf0] }
  0xca   :  { %v294_v57 = vadd.f32 %v293_v54, %v187_v55  ;;  %v9879_v54 = vld [vmem:[#allocation11 + $0x2dc] sm:$0xf0] }
  0xcb   :  { %vm298_vm0 = vcmp.gt.f32.partialorder %v280_v56, 0.0  ;;  %v302_v61 = vmul.f32 0.2, %v280_v56 }
  0xcc   :  { %v303_v2 = vmul.f32 0.2, %v294_v57  ;;  %vm299_vm1 = vcmp.gt.f32.partialorder %v294_v57, 0.0 }
  0xcd   :  { %v306_v10 = vsel %vm298_vm0, %v280_v56, %v302_v61  ;;  %v6989_v56 = vld [vmem:[#allocation11 + $0xc0] sm:$0xf] }
  0xce   :  { %v307_v13 = vsel %vm299_vm1, %v294_v57, %v303_v2  ;;  %v9815_v57 = vld [vmem:[#allocation11 + $0xdc] sm:$0xf0] }
  0xcf   :  { %v10007_v61 = vld [vmem:[#allocation11 + $0x6dc] sm:$0xf0]  ;;  %v6990_v2 = vor.u32 %v9815_v57, %v6989_v56  ;;  %v7247_v56 = vld [vmem:[#allocation11 + $0x2e0] sm:$0xf0] }
  0xd0   :  { %v281_v58 = vpop.f32.mrf.mxu0  ;;  %v10035_v57 = vld [vmem:[#allocation11 + $0x7c4] sm:$0xf] }
  0xd1   :  { %v282_v62 = vadd.f32 %v281_v58, %v186_v53  ;;  %v295_v63 = vpop.f32.mrf.mxu1  ;;  %v7245_v53 = vld [vmem:[#allocation11 + $0x2c0] sm:$0xf]  ;;  %v7790_v58 = vor.u32 %v10015_v49, %v7789_v47  ;;  %v9827_v49 = vld [vmem:[#allocation11 + $0x144] sm:$0xf] }
  0xd2   :  { %v296_v3 = vadd.f32 %v295_v63, %v187_v55  ;;  %v7022_v55 = vor.u32 %v9823_v45, %v7021_v44  ;;  %v9943_v63 = vld [vmem:[#allocation11 + $0x4dc] sm:$0xf0]  ;;  %v7246_v0 = vor.u32 %v9879_v54, %v7245_v53  ;;  %v7279_v44 = vld [vmem:[#allocation11 + $0x320] sm:$0xf0]  ;;  %v7058_v51 = vor.u32 %v9827_v49, %v7055_v50 }
  0xd3   :  { %vm300_vm2 = vcmp.gt.f32.partialorder %v282_v62, 0.0  ;;  %v304_v6 = vmul.f32 0.2, %v282_v62  ;;  %v9935_v47 = vld [vmem:[#allocation11 + $0x49c] sm:$0xf0] }
  0xd4   :  { %vm301_vm3 = vcmp.gt.f32.partialorder %v296_v3, 0.0  ;;  %v305_v8 = vmul.f32 0.2, %v296_v3  ;;  %v9983_v53 = vld [vmem:[#allocation11 + $0x61c] sm:$0xf0] }
  0xd5   :  { %v308_v11 = vsel %vm300_vm2, %v282_v62, %v304_v6  ;;  %v7501_v62 = vld [vmem:[#allocation11 + $0x4c0] sm:$0xf]  ;;  %v7758_v6 = vor.u32 %v10007_v61, %v7757_v59  ;;  %v7887_v59 = vld [vmem:[#allocation11 + $0x7e0] sm:$0xf0] }
  0xd6   :  { %v10897_v14 = vpack.c.bf16 %v308_v11, %v306_v10  ;;  %v309_v15 = vsel %vm301_vm3, %v296_v3, %v305_v8  ;;  %v9871_v3 = vld [vmem:[#allocation11 + $0x29c] sm:$0xf0]  ;;  %v7502_v7 = vor.u32 %v9943_v63, %v7501_v62  ;;  %v7890_v62 = vor.u32 %v10035_v57, %v7887_v59  ;;  %v7535_v49 = vld [vmem:[#allocation11 + $0x520] sm:$0xf0]  ;;  %v10909_v59 = vld [vmem:[#allocation10] sm:$0xf] }
  0xd7   :  { %v10899_v19 = vpack.c.bf16 %v309_v15, %v307_v13  ;;  %v7725_v8 = vld [vmem:[#allocation11 + $0x680] sm:$0xf]  ;;  %v7214_v10 = vor.u32 %v9871_v3, %v7213_v1  ;;  %v7023_v1 = vld [vmem:[#allocation11 + $0x120] sm:$0xf0] }
  0xd8   :  { %714 = vmatmul.bf16.vlgmr.msra.gmra.mxu2 %v10897_v14  ;;  %742 = vmatmul.bf16.vlgmr.msrb.gmra.mxu0 %v10897_v14  ;;  %v7181_v11 = vld [vmem:[#allocation11 + $0x240] sm:$0xf]  ;;  %v7726_v17 = vor.u32 %v9999_v9, %v7725_v8  ;;  %v9867_v3 = vld [vmem:[#allocation11 + $0x284] sm:$0xf] }
  0xd9   :  { %728 = vmatmul.bf16.vlgmr.msra.gmra.mxu3 %v10899_v19  ;;  %756 = vmatmul.bf16.vlgmr.msrb.gmra.mxu1 %v10899_v19  ;;  %v9863_v13 = vld [vmem:[#allocation11 + $0x25c] sm:$0xf0]  ;;  %v9987_v57 = vld [vmem:[#allocation11 + $0x644] sm:$0xf] }
  0xda   :  { %2414 = vmatpush.bf16.msra.mxu3 %v7374_v12  ;;  %2400 = vmatpush.bf16.msra.mxu2 %v7118_v18  ;;  %v6958_v12 = vor.u32 %v9807_v5, %v6957_v4  ;;  %v6925_v15 = vld [vmem:[#allocation11 + $0x40] sm:$0xf]  ;;  %v7182_v18 = vor.u32 %v9863_v13, %v7181_v11  ;;  %v7215_v4 = vld [vmem:[#allocation11 + $0x2a0] sm:$0xf0] }
  0xdb   :  { %2442 = vmatpush.bf16.msrb.mxu1 %v7886_v22  ;;  %2428 = vmatpush.bf16.msrb.mxu0 %v7630_v24  ;;  %v6926_v21 = vor.u32 %v9799_v16, %v6925_v15  ;;  %v9907_v22 = vld [vmem:[#allocation11 + $0x3c4] sm:$0xf]  ;;  %v9927_v61 = vld [vmem:[#allocation11 + $0x45c] sm:$0xf0] }
  0xdc   :  { %v7375_v24 = vld [vmem:[#allocation11 + $0x3e0] sm:$0xf0]  ;;  %v7405_v8 = vld [vmem:[#allocation11 + $0x400] sm:$0xf] }
  0xdd   :  { %v7378_v29 = vor.u32 %v9907_v22, %v7375_v24  ;;  %v10027_v5 = vld [vmem:[#allocation11 + $0x784] sm:$0xf]  ;;  %v9919_v9 = vld [vmem:[#allocation11 + $0x41c] sm:$0xf0] }
  0xde   :  { %2415 = vmatpush.bf16.msra.mxu3 %v7342_v28  ;;  %2401 = vmatpush.bf16.msra.mxu2 %v7086_v31  ;;  %v7122_v31 = vor.u32 %v9843_v25, %v7119_v26  ;;  %v7406_v11 = vor.u32 %v9919_v9, %v7405_v8  ;;  %v6991_v13 = vld [vmem:[#allocation11 + $0xe0] sm:$0xf0] }
  0xdf   :  { %2443 = vmatpush.bf16.msrb.mxu1 %v7854_v34  ;;  %2429 = vmatpush.bf16.msrb.mxu0 %v7598_v36  ;;  %v7087_v34 = vld [vmem:[#allocation11 + $0x1a0] sm:$0xf0] }
  0xe0   :  { %v7090_v36 = vor.u32 %v9835_v33, %v7087_v34  ;;  %v9971_v15 = vld [vmem:[#allocation11 + $0x5c4] sm:$0xf] }
  0xe1   :  { %v9803_v24 = vld [vmem:[#allocation11 + $0x84] sm:$0xf] }
  0xe2   :  { %2416 = vmatpush.bf16.msra.mxu3 %v7310_v40  ;;  %2402 = vmatpush.bf16.msra.mxu2 %v7054_v43  ;;  %v7693_v40 = vld [vmem:[#allocation11 + $0x640] sm:$0xf]  ;;  %v9883_v43 = vld [vmem:[#allocation11 + $0x304] sm:$0xf] }
  0xe3   :  { %2444 = vmatpush.bf16.msrb.mxu1 %v7822_v46  ;;  %2430 = vmatpush.bf16.msrb.mxu0 %v7566_v48  ;;  %v7694_v42 = vor.u32 %v9991_v41, %v7693_v40  ;;  %v7282_v45 = vor.u32 %v9883_v43, %v7279_v44  ;;  %v7469_v46 = vld [vmem:[#allocation11 + $0x480] sm:$0xf]  ;;  %v6959_v25 = vld [vmem:[#allocation11 + $0xa0] sm:$0xf0] }
  0xe4   :  { %v7470_v48 = vor.u32 %v9935_v47, %v7469_v46  ;;  %v9963_v26 = vld [vmem:[#allocation11 + $0x584] sm:$0xf] }
  0xe5   :  { %v7791_v34 = vld [vmem:[#allocation11 + $0x720] sm:$0xf0] }
  0xe6   :  { %2417 = vmatpush.bf16.msra.mxu3 %v7278_v52  ;;  %2403 = vmatpush.bf16.msra.mxu2 %v7022_v55  ;;  %v7661_v52 = vld [vmem:[#allocation11 + $0x600] sm:$0xf]  ;;  %v9875_v55 = vld [vmem:[#allocation11 + $0x2c4] sm:$0xf] }
  0xe7   :  { %2445 = vmatpush.bf16.msrb.mxu1 %v7790_v58  ;;  %2431 = vmatpush.bf16.msrb.mxu0 %v7534_v60  ;;  %v7662_v54 = vor.u32 %v9983_v53, %v7661_v52  ;;  %v7250_v58 = vor.u32 %v9875_v55, %v7247_v56  ;;  %v7437_v60 = vld [vmem:[#allocation11 + $0x440] sm:$0xf]  ;;  %v7567_v40 = vld [vmem:[#allocation11 + $0x560] sm:$0xf0] }
  0xe8   :  { %770 = vmatmul.bf16.vlgmr.msrb.gmra.mxu2 %v10897_v14  ;;  %798 = vmatmul.bf16.vlgmr.msra.gmra.mxu0 %v10897_v14  ;;  %v7149_v14 = vld [vmem:[#allocation11 + $0x200] sm:$0xf]  ;;  %v7438_v63 = vor.u32 %v9927_v61, %v7437_v60  ;;  %v7759_v43 = vld [vmem:[#allocation11 + $0x6e0] sm:$0xf0] }
  0xe9   :  { %784 = vmatmul.bf16.vlgmr.msrb.gmra.mxu3 %v10899_v19  ;;  %812 = vmatmul.bf16.vlgmr.msra.gmra.mxu1 %v10899_v19  ;;  %v9791_v19 = vld [vmem:[#allocation11 + $0x1c] sm:$0xf0]  ;;  %v7150_v27 = vor.u32 %v9855_v20, %v7149_v14  ;;  %v9859_v14 = vld [vmem:[#allocation11 + $0x244] sm:$0xf] }
  0xea   :  { %2418 = vmatpush.bf16.msra.mxu3 %v7246_v0  ;;  %2404 = vmatpush.bf16.msra.mxu2 %v6990_v2  ;;  %v6894_v28 = vor.u32 %v9791_v19, %v6893_v23  ;;  %v9819_v0 = vld [vmem:[#allocation11 + $0x104] sm:$0xf] }
  0xeb   :  { %2446 = vmatpush.bf16.msrb.mxu1 %v7758_v6  ;;  %2432 = vmatpush.bf16.msrb.mxu0 %v7502_v7  ;;  %v7026_v2 = vor.u32 %v9819_v0, %v7023_v1  ;;  %v7218_v6 = vor.u32 %v9867_v3, %v7215_v4  ;;  %v7855_v7 = vld [vmem:[#allocation11 + $0x7a0] sm:$0xf0]  ;;  %v379_v0 = vperm.slane %v10909_v59, 1 }
  0xec   :  { %v7183_v20 = vld [vmem:[#allocation11 + $0x260] sm:$0xf0] }
  0xed   :  { %v7186_v22 = vor.u32 %v9859_v14, %v7183_v20  ;;  %v7823_v23 = vld [vmem:[#allocation11 + $0x760] sm:$0xf0] }
  0xee   :  { %2419 = vmatpush.bf16.msra.mxu3 %v7214_v10  ;;  %2405 = vmatpush.bf16.msra.mxu2 %v6958_v12  ;;  %v7858_v10 = vor.u32 %v10027_v5, %v7855_v7  ;;  %v9811_v12 = vld [vmem:[#allocation11 + $0xc4] sm:$0xf] }
  0xef   :  { %2447 = vmatpush.bf16.msrb.mxu1 %v7726_v17  ;;  %2433 = vmatpush.bf16.msrb.mxu0 %v7470_v48  ;;  %v6994_v16 = vor.u32 %v9811_v12, %v6991_v13  ;;  %v7631_v17 = vld [vmem:[#allocation11 + $0x5e0] sm:$0xf0] }
  0xf0   :  { %v6895_v46 = vld [vmem:[#allocation11 + $0x20] sm:$0xf0] }
  0xf1   :  { %v9947_v47 = vld [vmem:[#allocation11 + $0x504] sm:$0xf] }
  0xf2   :  { %2420 = vmatpush.bf16.msra.mxu3 %v7182_v18  ;;  %2406 = vmatpush.bf16.msra.mxu2 %v6926_v21  ;;  %v7634_v18 = vor.u32 %v9971_v15, %v7631_v17  ;;  %v10019_v21 = vld [vmem:[#allocation11 + $0x744] sm:$0xf]  ;;  %v7538_v50 = vor.u32 %v9947_v47, %v7535_v49  ;;  %v9896_v47 = vld [vmem:[#allocation11 + $0x364] sm:$0xf0] }
  0xf3   :  { %2448 = vmatpush.bf16.msrb.mxu1 %v7694_v42  ;;  %2434 = vmatpush.bf16.msrb.mxu0 %v7438_v63  ;;  %v7826_v19 = vor.u32 %v10019_v21, %v7823_v23  ;;  %v10003_v42 = vld [vmem:[#allocation11 + $0x6c4] sm:$0xf] }
  0xf4   :  { %v7762_v44 = vor.u32 %v10003_v42, %v7759_v43  ;;  %v7727_v52 = vld [vmem:[#allocation11 + $0x6a0] sm:$0xf0]  ;;  %v9848_v42 = vld [vmem:[#allocation11 + $0x1e4] sm:$0xf0] }
  0xf5   :  { %v7503_v55 = vld [vmem:[#allocation11 + $0x4e0] sm:$0xf0] }
  0xf6   :  { %2421 = vmatpush.bf16.msra.mxu3 %v7150_v27  ;;  %2407 = vmatpush.bf16.msra.mxu2 %v6894_v28  ;;  %v6962_v27 = vor.u32 %v9803_v24, %v6959_v25  ;;  %v7599_v28 = vld [vmem:[#allocation11 + $0x5a0] sm:$0xf0]  ;;  %v9912_v24 = vld [vmem:[#allocation11 + $0x3e4] sm:$0xf0] }
  0xf7   :  { %2449 = vmatpush.bf16.msrb.mxu1 %v7662_v54  ;;  %2435 = vmatpush.bf16.msrb.mxu0 %v7406_v11  ;;  %v9939_v54 = vld [vmem:[#allocation11 + $0x4c4] sm:$0xf] }
  0xf8   :  { %v7506_v56 = vor.u32 %v9939_v54, %v7503_v55  ;;  %v9931_v61 = vld [vmem:[#allocation11 + $0x484] sm:$0xf]  ;;  %v7093_v54 = vld [vmem:[#allocation11 + $0x188] sm:$0xf] }
  0xf9   :  { %v9979_v1 = vld [vmem:[#allocation11 + $0x604] sm:$0xf]  ;;  %v9840_v55 = vld [vmem:[#allocation11 + $0x1a4] sm:$0xf0] }
  0xfa   :  { %2470 = vmatpush.bf16.msrb.mxu3 %v7378_v29  ;;  %2456 = vmatpush.bf16.msrb.mxu2 %v7122_v31  ;;  %v7602_v29 = vor.u32 %v9963_v26, %v7599_v28  ;;  %v7151_v31 = vld [vmem:[#allocation11 + $0x220] sm:$0xf0]  ;;  %v381_v28 = vperm.slane %v10909_v59, 3 }
  0xfb   :  { %2498 = vmatpush.bf16.msra.mxu1 %v7890_v62  ;;  %2484 = vmatpush.bf16.msra.mxu0 %v7634_v18  ;;  %v7154_v33 = vor.u32 %v9851_v30, %v7151_v31  ;;  %v7471_v62 = vld [vmem:[#allocation11 + $0x4a0] sm:$0xf0] }
  0xfc   :  { %v7474_v63 = vor.u32 %v9931_v61, %v7471_v62  ;;  %v7439_v7 = vld [vmem:[#allocation11 + $0x460] sm:$0xf0]  ;;  %v7285_v61 = vld [vmem:[#allocation11 + $0x308] sm:$0xf] }
  0xfd   :  { %v9915_v12 = vld [vmem:[#allocation11 + $0x404] sm:$0xf]  ;;  %v9888_v62 = vld [vmem:[#allocation11 + $0x324] sm:$0xf0] }
  0xfe   :  { %2471 = vmatpush.bf16.msrb.mxu3 %v7346_v35  ;;  %2457 = vmatpush.bf16.msrb.mxu2 %v7090_v36  ;;  %v7794_v35 = vor.u32 %v10011_v32, %v7791_v34  ;;  %v9795_v36 = vld [vmem:[#allocation11 + $0x44] sm:$0xf] }
  0xff   :  { %2499 = vmatpush.bf16.msra.mxu1 %v7858_v10  ;;  %2485 = vmatpush.bf16.msra.mxu0 %v7602_v29  ;;  %v6930_v38 = vor.u32 %v9795_v36, %v6927_v37  ;;  %v378_v10 = vperm.slane %v10909_v59, 0  ;;  %v7407_v13 = vld [vmem:[#allocation11 + $0x420] sm:$0xf0]  ;;  %v7349_v36 = vld [vmem:[#allocation11 + $0x388] sm:$0xf] }
 0x100   :  { %v7410_v17 = vor.u32 %v9915_v12, %v7407_v13  ;;  %v9904_v37 = vld [vmem:[#allocation11 + $0x3a4] sm:$0xf0] }
 0x102   :  { %2472 = vmatpush.bf16.msrb.mxu3 %v7314_v39  ;;  %2458 = vmatpush.bf16.msrb.mxu2 %v7058_v51  ;;  %v9955_v39 = vld [vmem:[#allocation11 + $0x544] sm:$0xf] }
 0x103   :  { %2500 = vmatpush.bf16.msra.mxu1 %v7826_v19  ;;  %v7570_v41 = vor.u32 %v9955_v39, %v7567_v40  ;;  %v9995_v51 = vld [vmem:[#allocation11 + $0x684] sm:$0xf]  ;;  %v7381_v19 = vld [vmem:[#allocation11 + $0x3c8] sm:$0xf] }
 0x104   :  { %v7730_v53 = vor.u32 %v9995_v51, %v7727_v52 }
 0x105   :  { %2486 = vmatpush.bf16.msra.mxu0 %v7570_v41  ;;  %v7125_v41 = vld [vmem:[#allocation11 + $0x1c8] sm:$0xf] }
 0x106   :  { %2473 = vmatpush.bf16.msrb.mxu3 %v7282_v45  ;;  %2459 = vmatpush.bf16.msrb.mxu2 %v7026_v2  ;;  %v9787_v45 = vld [vmem:[#allocation11 + $0x4] sm:$0xf]  ;;  %v7126_v51 = vor.u32 %v9848_v42, %v7125_v41  ;;  %v7829_v41 = vld [vmem:[#allocation11 + $0x748] sm:$0xf] }
 0x107   :  { %2501 = vmatpush.bf16.msra.mxu1 %v7794_v35  ;;  %v6898_v48 = vor.u32 %v9787_v45, %v6895_v46  ;;  %v7663_v2 = vld [vmem:[#allocation11 + $0x620] sm:$0xf0]  ;;  %v7350_v45 = vor.u32 %v9904_v37, %v7349_v36  ;;  %v7317_v46 = vld [vmem:[#allocation11 + $0x348] sm:$0xf] }
 0x108   :  { %v7666_v4 = vor.u32 %v9979_v1, %v7663_v2  ;;  %v7094_v1 = vor.u32 %v9840_v55, %v7093_v54  ;;  %v7061_v2 = vld [vmem:[#allocation11 + $0x148] sm:$0xf] }
 0x109   :  { %2487 = vmatpush.bf16.msra.mxu0 %v7538_v50  ;;  %v380_v50 = vperm.slane %v10909_v59, 2  ;;  %v10024_v42 = vld [vmem:[#allocation11 + $0x764] sm:$0xf0] }
 0x10a   :  { %2474 = vmatpush.bf16.msrb.mxu3 %v7250_v58  ;;  %2460 = vmatpush.bf16.msrb.mxu2 %v6994_v16  ;;  %v7695_v58 = vld [vmem:[#allocation11 + $0x660] sm:$0xf0]  ;;  %v7830_v54 = vor.u32 %v10024_v42, %v7829_v41  ;;  %v7157_v55 = vld [vmem:[#allocation11 + $0x208] sm:$0xf] }
 0x10b   :  { %2502 = vmatpush.bf16.msra.mxu1 %v7762_v44  ;;  %v7698_v60 = vor.u32 %v9987_v57, %v7695_v58  ;;  %v7318_v58 = vor.u32 %v9896_v47, %v7317_v46  ;;  %v6965_v47 = vld [vmem:[#allocation11 + $0x88] sm:$0xf] }
 0x10c   :  { %v7477_v41 = vld [vmem:[#allocation11 + $0x488] sm:$0xf] }
 0x10d   :  { %2488 = vmatpush.bf16.msra.mxu0 %v7506_v56  ;;  %v9936_v42 = vld [vmem:[#allocation11 + $0x4a4] sm:$0xf0] }
 0x10e   :  { %2475 = vmatpush.bf16.msrb.mxu3 %v7218_v6  ;;  %2461 = vmatpush.bf16.msrb.mxu2 %v6962_v27  ;;  %v9923_v6 = vld [vmem:[#allocation11 + $0x444] sm:$0xf] }
 0x10f   :  { %2503 = vmatpush.bf16.msra.mxu1 %v7730_v53  ;;  %v7442_v8 = vor.u32 %v9923_v6, %v7439_v7  ;;  %v7286_v6 = vor.u32 %v9888_v62, %v7285_v61  ;;  %v7253_v7 = vld [vmem:[#allocation11 + $0x2c8] sm:$0xf]  ;;  %v9908_v62 = vld [vmem:[#allocation11 + $0x3cc] sm:$0xf] }
 0x111   :  { %2489 = vmatpush.bf16.msra.mxu0 %v7474_v63 }
 0x112   :  { %2476 = vmatpush.bf16.msrb.mxu3 %v7186_v22  ;;  %2462 = vmatpush.bf16.msrb.mxu2 %v6930_v38 }
 0x113   :  { %2504 = vmatpush.bf16.msra.mxu1 %v7698_v60 }
 0x115   :  { %2490 = vmatpush.bf16.msra.mxu0 %v7442_v8  ;;  %v9880_v8 = vld [vmem:[#allocation11 + $0x2e4] sm:$0xf0] }
 0x116   :  { %2477 = vmatpush.bf16.msrb.mxu3 %v7154_v33  ;;  %2463 = vmatpush.bf16.msrb.mxu2 %v6898_v48  ;;  %v7382_v33 = vor.u32 %v9912_v24, %v7381_v19 }
 0x117   :  { %2505 = vmatpush.bf16.msra.mxu1 %v7666_v4 }
 0x119   :  { %2491 = vmatpush.bf16.msra.mxu0 %v7410_v17  ;;  %v7029_v17 = vld [vmem:[#allocation11 + $0x108] sm:$0xf] }
 0x155   :  { %v743_v3 = vpop.f32.mrf.mxu0 }
 0x156   :  { %v757_v5 = vpop.f32.mrf.mxu1  ;;  %v744_v9 = vadd.f32 %v743_v3, %v379_v0  ;;  %v9832_v3 = vld [vmem:[#allocation11 + $0x164] sm:$0xf0] }
 0x157   :  { %v7062_v13 = vor.u32 %v9832_v3, %v7061_v2  ;;  %v9960_v2 = vld [vmem:[#allocation11 + $0x564] sm:$0xf0] }
 0x158   :  { %v758_v15 = vadd.f32 %v757_v5, %v744_v9  ;;  %v7893_v9 = vld [vmem:[#allocation11 + $0x7c8] sm:$0xf] }
 0x15a   :  { %v827_v22 = vmul.f32 0.2, %v758_v15  ;;  %vm819_vm4 = vcmp.gt.f32.partialorder %v758_v15, 0.0 }
 0x15b   :  { %v715_v11 = vpop.f32.mrf.mxu2 }
 0x15c   :  { %v729_v16 = vpop.f32.mrf.mxu3  ;;  %v716_v14 = vadd.f32 %v715_v11, %v378_v10  ;;  %v835_v29 = vsel %vm819_vm4, %v758_v15, %v827_v22 }
 0x15d   :  { %v745_v18 = vpop.f32.mrf.mxu0 }
 0x15e   :  { %v746_v20 = vadd.f32 %v745_v18, %v379_v0  ;;  %v759_v21 = vpop.f32.mrf.mxu1  ;;  %v730_v25 = vadd.f32 %v729_v16, %v716_v14  ;;  %v7254_v16 = vor.u32 %v9880_v8, %v7253_v7  ;;  %v9824_v18 = vld [vmem:[#allocation11 + $0x124] sm:$0xf0] }
 0x15f   :  { %v10008_v7 = vld [vmem:[#allocation11 + $0x6e4] sm:$0xf0] }
 0x160   :  { %v760_v23 = vadd.f32 %v759_v21, %v746_v20  ;;  %v826_v38 = vmul.f32 0.2, %v730_v25  ;;  %vm818_vm6 = vcmp.gt.f32.partialorder %v730_v25, 0.0 }
 0x162   :  { %vm823_vm5 = vcmp.gt.f32.partialorder %v760_v23, 0.0  ;;  %v831_v26 = vmul.f32 0.2, %v760_v23  ;;  %v834_v48 = vsel %vm818_vm6, %v730_v25, %v826_v38  ;;  %v9872_v25 = vld [vmem:[#allocation11 + $0x2a4] sm:$0xf0] }
 0x163   :  { %v717_v27 = vpop.f32.mrf.mxu2 }
 0x164   :  { %v839_v30 = vsel %vm823_vm5, %v760_v23, %v831_v26  ;;  %v718_v31 = vadd.f32 %v717_v27, %v378_v10  ;;  %v731_v32 = vpop.f32.mrf.mxu3  ;;  %v10040_v10 = vld [vmem:[#allocation11 + $0x7e4] sm:$0xf0] }
 0x165   :  { %v10914_v34 = vpack.c.bf16 %v839_v30, %v835_v29  ;;  %v799_v35 = vpop.f32.mrf.mxu0  ;;  %v7894_v22 = vor.u32 %v10040_v10, %v7893_v9  ;;  %v7221_v23 = vld [vmem:[#allocation11 + $0x288] sm:$0xf]  ;;  %v7030_v30 = vor.u32 %v9824_v18, %v7029_v17  ;;  %v9900_v10 = vld [vmem:[#allocation11 + $0x38c] sm:$0xf] }
 0x166   :  { %v732_v39 = vadd.f32 %v731_v32, %v718_v31  ;;  %v813_v40 = vpop.f32.mrf.mxu1  ;;  %v800_v44 = vadd.f32 %v799_v35, %v381_v28  ;;  %v7861_v26 = vld [vmem:[#allocation11 + $0x788] sm:$0xf]  ;;  %v7222_v37 = vor.u32 %v9872_v25, %v7221_v23  ;;  %v9844_v18 = vld [vmem:[#allocation11 + $0x1cc] sm:$0xf] }
 0x167   :  { %2422 = vmatmul.bf16.vlgmr.msra.gmra.mxu3 %v10914_v34  ;;  %v10032_v27 = vld [vmem:[#allocation11 + $0x7a4] sm:$0xf0]  ;;  %v9892_v25 = vld [vmem:[#allocation11 + $0x34c] sm:$0xf] }
 0x168   :  { %vm822_vm7 = vcmp.gt.f32.partialorder %v732_v39, 0.0  ;;  %v830_v43 = vmul.f32 0.2, %v732_v39  ;;  %2526 = vmatpush.bf16.msra.mxu3 %v7382_v33  ;;  %v814_v56 = vadd.f32 %v813_v40, %v800_v44  ;;  %v6997_v31 = vld [vmem:[#allocation11 + $0xc8] sm:$0xf]  ;;  %v7862_v38 = vor.u32 %v10032_v27, %v7861_v26 }
 0x169   :  { %v9816_v32 = vld [vmem:[#allocation11 + $0xe4] sm:$0xf0]  ;;  %v7319_v26 = vld [vmem:[#allocation11 + $0x368] sm:$0xf0] }
 0x16a   :  { %v838_v49 = vsel %vm822_vm7, %v732_v39, %v830_v43  ;;  %v829_v4 = vmul.f32 0.2, %v814_v56  ;;  %vm821_vm8 = vcmp.gt.f32.partialorder %v814_v56, 0.0  ;;  %v7637_v33 = vld [vmem:[#allocation11 + $0x5c8] sm:$0xf] }
 0x16b   :  { %v10918_v52 = vpack.c.bf16 %v838_v49, %v834_v48  ;;  %v771_v53 = vpop.f32.mrf.mxu2  ;;  %v9976_v35 = vld [vmem:[#allocation11 + $0x5e4] sm:$0xf0] }
 0x16c   :  { %v785_v57 = vpop.f32.mrf.mxu3  ;;  %2527 = vmatpush.bf16.msra.mxu3 %v7350_v45  ;;  %v772_v63 = vadd.f32 %v771_v53, %v380_v50  ;;  %v837_v14 = vsel %vm821_vm8, %v814_v56, %v829_v4  ;;  %v7189_v39 = vld [vmem:[#allocation11 + $0x248] sm:$0xf]  ;;  %v6998_v45 = vor.u32 %v9816_v32, %v6997_v31  ;;  %v7638_v46 = vor.u32 %v9976_v35, %v7637_v33  ;;  %v9836_v31 = vld [vmem:[#allocation11 + $0x18c] sm:$0xf] }
 0x16d   :  { %v801_v60 = vpop.f32.mrf.mxu0  ;;  %2408 = vmatmul.bf16.vlgmr.msra.gmra.mxu2 %v10918_v52  ;;  %v9864_v40 = vld [vmem:[#allocation11 + $0x264] sm:$0xf0]  ;;  %v7095_v32 = vld [vmem:[#allocation11 + $0x1a8] sm:$0xf0]  ;;  %v7322_v33 = vor.u32 %v9892_v25, %v7319_v26 }
 0x16e   :  { %v802_v0 = vadd.f32 %v801_v60, %v381_v28  ;;  %2512 = vmatpush.bf16.msra.mxu2 %v7126_v51  ;;  %v815_v59 = vpop.f32.mrf.mxu1  ;;  %v786_v11 = vadd.f32 %v785_v57, %v772_v63  ;;  %v9808_v49 = vld [vmem:[#allocation11 + $0xa4] sm:$0xf0]  ;;  %v7190_v53 = vor.u32 %v9864_v40, %v7189_v39  ;;  %v7383_v63 = vld [vmem:[#allocation11 + $0x3e8] sm:$0xf0]  ;;  %v7098_v40 = vor.u32 %v9836_v31, %v7095_v32 }
 0x16f   :  { %v9968_v51 = vld [vmem:[#allocation11 + $0x5a4] sm:$0xf0]  ;;  %v6966_v60 = vor.u32 %v9808_v49, %v6965_v47  ;;  %v7287_v39 = vld [vmem:[#allocation11 + $0x328] sm:$0xf0] }
 0x170   :  { %v816_v5 = vadd.f32 %v815_v59, %v802_v0  ;;  %2528 = vmatpush.bf16.msra.mxu3 %v7318_v58  ;;  %v828_v28 = vmul.f32 0.2, %v786_v11  ;;  %vm820_vm10 = vcmp.gt.f32.partialorder %v786_v11, 0.0  ;;  %v9856_v56 = vld [vmem:[#allocation11 + $0x224] sm:$0xf0] }
 0x171   :  { %v7797_v57 = vld [vmem:[#allocation11 + $0x708] sm:$0xf]  ;;  %v7158_v3 = vor.u32 %v9856_v56, %v7157_v55  ;;  %v7895_v55 = vld [vmem:[#allocation11 + $0x7e8] sm:$0xf0] }
 0x172   :  { %vm825_vm9 = vcmp.gt.f32.partialorder %v816_v5, 0.0  ;;  %v833_v12 = vmul.f32 0.2, %v816_v5  ;;  %2513 = vmatpush.bf16.msra.mxu2 %v7094_v1  ;;  %v836_v43 = vsel %vm820_vm10, %v786_v11, %v828_v28  ;;  %v10016_v58 = vld [vmem:[#allocation11 + $0x724] sm:$0xf0] }
 0x173   :  { %v773_v15 = vpop.f32.mrf.mxu2  ;;  %v6933_v0 = vld [vmem:[#allocation11 + $0x48] sm:$0xf]  ;;  %v7798_v4 = vor.u32 %v10016_v58, %v7797_v57  ;;  %v7351_v11 = vld [vmem:[#allocation11 + $0x3a8] sm:$0xf0] }
 0x174   :  { %v841_v20 = vsel %vm825_vm9, %v816_v5, %v833_v12  ;;  %v774_v21 = vadd.f32 %v773_v15, %v380_v50  ;;  %2529 = vmatpush.bf16.msra.mxu3 %v7286_v6  ;;  %v787_v24 = vpop.f32.mrf.mxu3  ;;  %v7605_v50 = vld [vmem:[#allocation11 + $0x588] sm:$0xf]  ;;  %v7386_v5 = vor.u32 %v9908_v62, %v7383_v63  ;;  %v7031_v62 = vld [vmem:[#allocation11 + $0x128] sm:$0xf0] }
 0x175   :  { %v10921_v19 = vpack.c.bf16 %v841_v20, %v837_v14  ;;  %v7606_v61 = vor.u32 %v9968_v51, %v7605_v50  ;;  %v9800_v1 = vld [vmem:[#allocation11 + $0x64] sm:$0xf0]  ;;  %v7127_v14 = vld [vmem:[#allocation11 + $0x1e8] sm:$0xf0]  ;;  %v7354_v20 = vor.u32 %v9900_v10, %v7351_v11  ;;  %v7478_v51 = vor.u32 %v9936_v42, %v7477_v41 }
 0x176   :  { %v788_v29 = vadd.f32 %v787_v24, %v774_v21  ;;  %2514 = vmatpush.bf16.msra.mxu2 %v7062_v13  ;;  %v7573_v59 = vld [vmem:[#allocation11 + $0x548] sm:$0xf]  ;;  %v6934_v8 = vor.u32 %v9800_v1, %v6933_v0  ;;  %v7130_v27 = vor.u32 %v9844_v18, %v7127_v14  ;;  %v9876_v50 = vld [vmem:[#allocation11 + $0x2cc] sm:$0xf] }
 0x177   :  { %2450 = vmatmul.bf16.vlgmr.msrb.gmra.mxu1 %v10921_v19  ;;  %2478 = vmatmul.bf16.vlgmr.msrb.gmra.mxu3 %v10914_v34  ;;  %v7765_v6 = vld [vmem:[#allocation11 + $0x6c8] sm:$0xf]  ;;  %v7574_v9 = vor.u32 %v9960_v2, %v7573_v59  ;;  %v9868_v1 = vld [vmem:[#allocation11 + $0x28c] sm:$0xf] }
 0x178   :  { %vm824_vm11 = vcmp.gt.f32.partialorder %v788_v29, 0.0  ;;  %v832_v36 = vmul.f32 0.2, %v788_v29  ;;  %2530 = vmatpush.bf16.msra.mxu3 %v7254_v16  ;;  %2554 = vmatpush.bf16.msrb.mxu1 %v7894_v22  ;;  %v6901_v12 = vld [vmem:[#allocation11 + $0x8] sm:$0xf]  ;;  %v7766_v17 = vor.u32 %v10008_v7, %v7765_v6 }
 0x179   :  { %v9792_v13 = vld [vmem:[#allocation11 + $0x24] sm:$0xf0]  ;;  %v7223_v2 = vld [vmem:[#allocation11 + $0x2a8] sm:$0xf0] }
 0x17a   :  { %v840_v44 = vsel %vm824_vm11, %v788_v29, %v832_v36  ;;  %2515 = vmatpush.bf16.msra.mxu2 %v7030_v30  ;;  %v7541_v15 = vld [vmem:[#allocation11 + $0x508] sm:$0xf]  ;;  %v6902_v23 = vor.u32 %v9792_v13, %v6901_v12  ;;  %v9972_v10 = vld [vmem:[#allocation11 + $0x5cc] sm:$0xf]  ;;  %v7226_v12 = vor.u32 %v9868_v1, %v7223_v2  ;;  %v7325_v1 = vld [vmem:[#allocation11 + $0x350] sm:$0xf] }
 0x17b   :  { %v10925_v48 = vpack.c.bf16 %v840_v44, %v836_v43  ;;  %v9952_v16 = vld [vmem:[#allocation11 + $0x524] sm:$0xf0]  ;;  %v9828_v44 = vld [vmem:[#allocation11 + $0x14c] sm:$0xf] }
 0x17c   :  { %2531 = vmatpush.bf16.msra.mxu3 %v7222_v37  ;;  %2555 = vmatpush.bf16.msrb.mxu1 %v7862_v38  ;;  %v7733_v21 = vld [vmem:[#allocation11 + $0x688] sm:$0xf]  ;;  %v7542_v24 = vor.u32 %v9952_v16, %v7541_v15  ;;  %v9884_v38 = vld [vmem:[#allocation11 + $0x30c] sm:$0xf] }
 0x17d   :  { %2436 = vmatmul.bf16.vlgmr.msrb.gmra.mxu0 %v10925_v48  ;;  %2464 = vmatmul.bf16.vlgmr.msrb.gmra.mxu2 %v10918_v52  ;;  %v10000_v22 = vld [vmem:[#allocation11 + $0x6a4] sm:$0xf0]  ;;  %v7639_v11 = vld [vmem:[#allocation11 + $0x5e8] sm:$0xf0] }
 0x17e   :  { %2516 = vmatpush.bf16.msra.mxu2 %v6998_v45  ;;  %2540 = vmatpush.bf16.msrb.mxu0 %v7638_v46  ;;  %v7509_v28 = vld [vmem:[#allocation11 + $0x4c8] sm:$0xf]  ;;  %v7734_v30 = vor.u32 %v10000_v22, %v7733_v21  ;;  %v7063_v45 = vld [vmem:[#allocation11 + $0x168] sm:$0xf0]  ;;  %v7290_v46 = vor.u32 %v9884_v38, %v7287_v39  ;;  %v7642_v21 = vor.u32 %v9972_v10, %v7639_v11 }
 0x17f   :  { %v9944_v29 = vld [vmem:[#allocation11 + $0x4e4] sm:$0xf0]  ;;  %v7066_v56 = vor.u32 %v9828_v44, %v7063_v45  ;;  %v9860_v15 = vld [vmem:[#allocation11 + $0x24c] sm:$0xf] }
 0x180   :  { %2532 = vmatpush.bf16.msra.mxu3 %v7190_v53  ;;  %2556 = vmatpush.bf16.msrb.mxu1 %v7830_v54  ;;  %v7701_v35 = vld [vmem:[#allocation11 + $0x648] sm:$0xf]  ;;  %v7510_v37 = vor.u32 %v9944_v29, %v7509_v28  ;;  %v7255_v53 = vld [vmem:[#allocation11 + $0x2e8] sm:$0xf0] }
 0x181   :  { %v9992_v36 = vld [vmem:[#allocation11 + $0x664] sm:$0xf0]  ;;  %v10036_v54 = vld [vmem:[#allocation11 + $0x7cc] sm:$0xf]  ;;  %v7258_v63 = vor.u32 %v9876_v50, %v7255_v53  ;;  %v9905_v50 = vld [vmem:[#allocation11 + $0x3ac] sm:$0xf0] }
 0x182   :  { %2517 = vmatpush.bf16.msra.mxu2 %v6966_v60  ;;  %2541 = vmatpush.bf16.msrb.mxu0 %v7606_v61  ;;  %v7702_v43 = vor.u32 %v9992_v36, %v7701_v35  ;;  %v7669_v47 = vld [vmem:[#allocation11 + $0x608] sm:$0xf]  ;;  %v9820_v61 = vld [vmem:[#allocation11 + $0x10c] sm:$0xf]  ;;  %v7898_v0 = vor.u32 %v10036_v54, %v7895_v55  ;;  %v7389_v35 = vld [vmem:[#allocation11 + $0x3d0] sm:$0xf] }
 0x183   :  { %v9984_v49 = vld [vmem:[#allocation11 + $0x624] sm:$0xf0]  ;;  %v10020_v18 = vld [vmem:[#allocation11 + $0x74c] sm:$0xf]  ;;  %v9913_v36 = vld [vmem:[#allocation11 + $0x3ec] sm:$0xf0] }
 0x184   :  { %2533 = vmatpush.bf16.msra.mxu3 %v7158_v3  ;;  %2557 = vmatpush.bf16.msrb.mxu1 %v7798_v4  ;;  %v7445_v57 = vld [vmem:[#allocation11 + $0x448] sm:$0xf]  ;;  %v7670_v60 = vor.u32 %v9984_v49, %v7669_v47  ;;  %v10028_v3 = vld [vmem:[#allocation11 + $0x78c] sm:$0xf]  ;;  %v7357_v49 = vld [vmem:[#allocation11 + $0x390] sm:$0xf] }
 0x185   :  { %v9928_v58 = vld [vmem:[#allocation11 + $0x464] sm:$0xf0]  ;;  %v7863_v4 = vld [vmem:[#allocation11 + $0x7a8] sm:$0xf0] }
 0x186   :  { %2518 = vmatpush.bf16.msra.mxu2 %v6934_v8  ;;  %2542 = vmatpush.bf16.msrb.mxu0 %v7574_v9  ;;  %v7446_v59 = vor.u32 %v9928_v58, %v7445_v57  ;;  %v7413_v6 = vld [vmem:[#allocation11 + $0x408] sm:$0xf]  ;;  %v9812_v8 = vld [vmem:[#allocation11 + $0xcc] sm:$0xf]  ;;  %v7866_v13 = vor.u32 %v10028_v3, %v7863_v4  ;;  %v7133_v57 = vld [vmem:[#allocation11 + $0x1d0] sm:$0xf] }
 0x187   :  { %2506 = vmatmul.bf16.vlgmr.msra.gmra.mxu1 %v10921_v19  ;;  %2534 = vmatmul.bf16.vlgmr.msra.gmra.mxu3 %v10914_v34  ;;  %v9920_v7 = vld [vmem:[#allocation11 + $0x424] sm:$0xf0]  ;;  %v6999_v9 = vld [vmem:[#allocation11 + $0xe8] sm:$0xf0]  ;;  %v9849_v58 = vld [vmem:[#allocation11 + $0x1ec] sm:$0xf0] }
 0x188   :  { %2582 = vmatpush.bf16.msrb.mxu3 %v7386_v5  ;;  %2558 = vmatpush.bf16.msrb.mxu1 %v7766_v17  ;;  %v7034_v5 = vor.u32 %v9820_v61, %v7031_v62  ;;  %v7414_v16 = vor.u32 %v9920_v7, %v7413_v6  ;;  %v7191_v17 = vld [vmem:[#allocation11 + $0x268] sm:$0xf0]  ;;  %v7134_v2 = vor.u32 %v9849_v58, %v7133_v57  ;;  %v7101_v6 = vld [vmem:[#allocation11 + $0x190] sm:$0xf] }
 0x189   :  { %v7831_v14 = vld [vmem:[#allocation11 + $0x768] sm:$0xf0]  ;;  %v7194_v26 = vor.u32 %v9860_v15, %v7191_v17  ;;  %v9841_v7 = vld [vmem:[#allocation11 + $0x1ac] sm:$0xf0] }
 0x18a   :  { %2519 = vmatpush.bf16.msra.mxu2 %v6902_v23  ;;  %2543 = vmatpush.bf16.msrb.mxu0 %v7542_v24  ;;  %v9804_v22 = vld [vmem:[#allocation11 + $0x8c] sm:$0xf]  ;;  %v7102_v15 = vor.u32 %v9841_v7, %v7101_v6  ;;  %v10017_v6 = vld [vmem:[#allocation11 + $0x72c] sm:$0xf0] }
 0x18b   :  { %v6967_v23 = vld [vmem:[#allocation11 + $0xa8] sm:$0xf0] }
 0x18c   :  { %2583 = vmatpush.bf16.msrb.mxu3 %v7354_v20  ;;  %2559 = vmatpush.bf16.msrb.mxu1 %v7734_v30  ;;  %v7002_v20 = vor.u32 %v9812_v8, %v6999_v9  ;;  %v9964_v24 = vld [vmem:[#allocation11 + $0x58c] sm:$0xf]  ;;  %v6970_v32 = vor.u32 %v9804_v22, %v6967_v23 }
 0x18d   :  { %2492 = vmatmul.bf16.vlgmr.msra.gmra.mxu0 %v10925_v48  ;;  %2520 = vmatmul.bf16.vlgmr.msra.gmra.mxu2 %v10918_v52  ;;  %v7607_v25 = vld [vmem:[#allocation11 + $0x5a8] sm:$0xf0] }
 0x18e   :  { %2568 = vmatpush.bf16.msrb.mxu2 %v7130_v27  ;;  %2544 = vmatpush.bf16.msrb.mxu0 %v7510_v37  ;;  %v7834_v27 = vor.u32 %v10020_v18, %v7831_v14  ;;  %v9852_v28 = vld [vmem:[#allocation11 + $0x20c] sm:$0xf]  ;;  %v7069_v14 = vld [vmem:[#allocation11 + $0x150] sm:$0xf] }
 0x18f   :  { %v7159_v29 = vld [vmem:[#allocation11 + $0x228] sm:$0xf0] }
 0x190   :  { %2584 = vmatpush.bf16.msrb.mxu3 %v7322_v33  ;;  %2560 = vmatpush.bf16.msrb.mxu1 %v7702_v43  ;;  %v10012_v30 = vld [vmem:[#allocation11 + $0x70c] sm:$0xf]  ;;  %v7610_v33 = vor.u32 %v9964_v24, %v7607_v25  ;;  %v7162_v41 = vor.u32 %v9852_v28, %v7159_v29  ;;  %v7390_v43 = vor.u32 %v9913_v36, %v7389_v35  ;;  %v7261_v24 = vld [vmem:[#allocation11 + $0x2d0] sm:$0xf] }
 0x191   :  { %v7799_v31 = vld [vmem:[#allocation11 + $0x728] sm:$0xf0]  ;;  %v10041_v28 = vld [vmem:[#allocation11 + $0x7ec] sm:$0xf0] }
 0x192   :  { %2569 = vmatpush.bf16.msrb.mxu2 %v7098_v40  ;;  %2545 = vmatpush.bf16.msrb.mxu0 %v7478_v51  ;;  %v9796_v37 = vld [vmem:[#allocation11 + $0x4c] sm:$0xf]  ;;  %v7802_v42 = vor.u32 %v10012_v30, %v7799_v31  ;;  %v9825_v35 = vld [vmem:[#allocation11 + $0x12c] sm:$0xf0] }
 0x193   :  { %v6935_v38 = vld [vmem:[#allocation11 + $0x68] sm:$0xf0] }
 0x194   :  { %2585 = vmatpush.bf16.msrb.mxu3 %v7290_v46  ;;  %2561 = vmatpush.bf16.msrb.mxu1 %v7670_v60  ;;  %v9956_v39 = vld [vmem:[#allocation11 + $0x54c] sm:$0xf]  ;;  %v6938_v46 = vor.u32 %v9796_v37, %v6935_v38  ;;  %v7358_v60 = vor.u32 %v9905_v50, %v7357_v49  ;;  %v7229_v38 = vld [vmem:[#allocation11 + $0x290] sm:$0xf] }
 0x195   :  { %v7575_v40 = vld [vmem:[#allocation11 + $0x568] sm:$0xf0]  ;;  %v7645_v49 = vld [vmem:[#allocation11 + $0x5d0] sm:$0xf] }
 0x196   :  { %2570 = vmatpush.bf16.msrb.mxu2 %v7066_v56  ;;  %2546 = vmatpush.bf16.msrb.mxu0 %v7446_v59  ;;  %v10004_v44 = vld [vmem:[#allocation11 + $0x6cc] sm:$0xf]  ;;  %v7578_v47 = vor.u32 %v9956_v39, %v7575_v40  ;;  %v9897_v59 = vld [vmem:[#allocation11 + $0x36c] sm:$0xf0] }
 0x197   :  { %2562 = vmatmul.bf16.vlgmr.msrb.gmra.mxu1 %v10921_v19  ;;  %v7767_v45 = vld [vmem:[#allocation11 + $0x6e8] sm:$0xf0]  ;;  %v7326_v8 = vor.u32 %v9897_v59, %v7325_v1  ;;  %v9873_v40 = vld [vmem:[#allocation11 + $0x2ac] sm:$0xf0] }
 0x198   :  { %2586 = vmatpush.bf16.msrb.mxu3 %v7258_v63  ;;  %2610 = vmatpush.bf16.msra.mxu1 %v7898_v0  ;;  %v9788_v51 = vld [vmem:[#allocation11 + $0xc] sm:$0xf]  ;;  %v7770_v56 = vor.u32 %v10004_v44, %v7767_v45  ;;  %v9977_v50 = vld [vmem:[#allocation11 + $0x5ec] sm:$0xf0] }
 0x199   :  { %v6903_v53 = vld [vmem:[#allocation11 + $0x28] sm:$0xf0]  ;;  %v7646_v58 = vor.u32 %v9977_v50, %v7645_v49  ;;  %v9969_v1 = vld [vmem:[#allocation11 + $0x5ac] sm:$0xf0] }
 0x19a   :  { %2571 = vmatpush.bf16.msrb.mxu2 %v7034_v5  ;;  %2547 = vmatpush.bf16.msrb.mxu0 %v7414_v16  ;;  %v9948_v54 = vld [vmem:[#allocation11 + $0x50c] sm:$0xf]  ;;  %v6906_v63 = vor.u32 %v9788_v51, %v6903_v53  ;;  %v7230_v51 = vor.u32 %v9873_v40, %v7229_v38  ;;  %v9893_v38 = vld [vmem:[#allocation11 + $0x354] sm:$0xf]  ;;  %v7709_v49 = vld [vmem:[#allocation11 + $0x650] sm:$0xf] }
 0x19b   :  { %v7543_v55 = vld [vmem:[#allocation11 + $0x528] sm:$0xf0]  ;;  %v7327_v40 = vld [vmem:[#allocation11 + $0x370] sm:$0xf0]  ;;  %v9993_v50 = vld [vmem:[#allocation11 + $0x66c] sm:$0xf0] }
 0x19c   :  { %2587 = vmatpush.bf16.msrb.mxu3 %v7226_v12  ;;  %2611 = vmatpush.bf16.msra.mxu1 %v7866_v13  ;;  %v9996_v61 = vld [vmem:[#allocation11 + $0x68c] sm:$0xf]  ;;  %v7546_v0 = vor.u32 %v9948_v54, %v7543_v55  ;;  %v7293_v12 = vld [vmem:[#allocation11 + $0x310] sm:$0xf] }
 0x19d   :  { %2548 = vmatmul.bf16.vlgmr.msrb.gmra.mxu0 %v10925_v48  ;;  %v7735_v62 = vld [vmem:[#allocation11 + $0x6a8] sm:$0xf0]  ;;  %v9889_v13 = vld [vmem:[#allocation11 + $0x32c] sm:$0xf0] }
 0x19e   :  { %2572 = vmatpush.bf16.msrb.mxu2 %v7002_v20  ;;  %2596 = vmatpush.bf16.msra.mxu0 %v7642_v21  ;;  %v9940_v3 = vld [vmem:[#allocation11 + $0x4cc] sm:$0xf]  ;;  %v7738_v5 = vor.u32 %v9996_v61, %v7735_v62  ;;  %v9833_v20 = vld [vmem:[#allocation11 + $0x16c] sm:$0xf0]  ;;  %v7294_v21 = vor.u32 %v9889_v13, %v7293_v12 }
 0x19f   :  { %v7511_v4 = vld [vmem:[#allocation11 + $0x4e8] sm:$0xf0]  ;;  %v7070_v29 = vor.u32 %v9833_v20, %v7069_v14  ;;  %v7197_v55 = vld [vmem:[#allocation11 + $0x250] sm:$0xf] }
 0x1a0   :  { %2588 = vmatpush.bf16.msrb.mxu3 %v7194_v26  ;;  %2612 = vmatpush.bf16.msra.mxu1 %v7834_v27  ;;  %v9988_v9 = vld [vmem:[#allocation11 + $0x64c] sm:$0xf]  ;;  %v7514_v11 = vor.u32 %v9940_v3, %v7511_v4  ;;  %v9881_v26 = vld [vmem:[#allocation11 + $0x2ec] sm:$0xf0] }
 0x1a1   :  { %v7703_v10 = vld [vmem:[#allocation11 + $0x668] sm:$0xf0]  ;;  %v7901_v27 = vld [vmem:[#allocation11 + $0x7d0] sm:$0xf]  ;;  %v7262_v36 = vor.u32 %v9881_v26, %v7261_v24  ;;  %v7359_v24 = vld [vmem:[#allocation11 + $0x3b0] sm:$0xf0] }
 0x1a2   :  { %2573 = vmatpush.bf16.msrb.mxu2 %v6970_v32  ;;  %2597 = vmatpush.bf16.msra.mxu0 %v7610_v33  ;;  %v9932_v16 = vld [vmem:[#allocation11 + $0x48c] sm:$0xf]  ;;  %v7706_v18 = vor.u32 %v9988_v9, %v7703_v10  ;;  %v7037_v33 = vld [vmem:[#allocation11 + $0x110] sm:$0xf]  ;;  %v7902_v37 = vor.u32 %v10041_v28, %v7901_v27  ;;  %v9909_v9 = vld [vmem:[#allocation11 + $0x3d4] sm:$0xf] }
 0x1a3   :  { %v7479_v17 = vld [vmem:[#allocation11 + $0x4a8] sm:$0xf0]  ;;  %v10025_v61 = vld [vmem:[#allocation11 + $0x76c] sm:$0xf0]  ;;  %v7391_v10 = vld [vmem:[#allocation11 + $0x3f0] sm:$0xf0] }
 0x1a4   :  { %2589 = vmatpush.bf16.msrb.mxu3 %v7162_v41  ;;  %2613 = vmatpush.bf16.msra.mxu1 %v7802_v42  ;;  %v9980_v22 = vld [vmem:[#allocation11 + $0x60c] sm:$0xf]  ;;  %v7482_v25 = vor.u32 %v9932_v16, %v7479_v17  ;;  %v7869_v41 = vld [vmem:[#allocation11 + $0x790] sm:$0xf] }
 0x1a5   :  { %v7671_v23 = vld [vmem:[#allocation11 + $0x628] sm:$0xf0]  ;;  %v10033_v42 = vld [vmem:[#allocation11 + $0x7ac] sm:$0xf0] }
 0x1a6   :  { %2574 = vmatpush.bf16.msrb.mxu2 %v6938_v46  ;;  %2598 = vmatpush.bf16.msra.mxu0 %v7578_v47  ;;  %v9924_v30 = vld [vmem:[#allocation11 + $0x44c] sm:$0xf]  ;;  %v7674_v32 = vor.u32 %v9980_v22, %v7671_v23  ;;  %v7005_v46 = vld [vmem:[#allocation11 + $0xd0] sm:$0xf]  ;;  %v7870_v53 = vor.u32 %v10033_v42, %v7869_v41  ;;  %v9901_v23 = vld [vmem:[#allocation11 + $0x394] sm:$0xf] }
 0x1a7   :  { %2590 = vmatmul.bf16.vlgmr.msrb.gmra.mxu3 %v10914_v34  ;;  %v7447_v31 = vld [vmem:[#allocation11 + $0x468] sm:$0xf0]  ;;  %v9817_v47 = vld [vmem:[#allocation11 + $0xec] sm:$0xf0] }
 0x1a8   :  { %2638 = vmatpush.bf16.msra.mxu3 %v7390_v43  ;;  %2614 = vmatpush.bf16.msra.mxu1 %v7770_v56  ;;  %v7450_v39 = vor.u32 %v9924_v30, %v7447_v31  ;;  %v7038_v43 = vor.u32 %v9825_v35, %v7037_v33  ;;  %v9916_v44 = vld [vmem:[#allocation11 + $0x40c] sm:$0xf]  ;;  %v9865_v56 = vld [vmem:[#allocation11 + $0x26c] sm:$0xf0]  ;;  %v7006_v57 = vor.u32 %v9817_v47, %v7005_v46  ;;  %v7135_v30 = vld [vmem:[#allocation11 + $0x1f0] sm:$0xf0] }
 0x1a9   :  { %v7415_v45 = vld [vmem:[#allocation11 + $0x428] sm:$0xf0]  ;;  %v6973_v62 = vld [vmem:[#allocation11 + $0x90] sm:$0xf]  ;;  %v7198_v59 = vor.u32 %v9865_v56, %v7197_v55  ;;  %v7330_v46 = vor.u32 %v9893_v38, %v7327_v40  ;;  %v7615_v38 = vld [vmem:[#allocation11 + $0x5b0] sm:$0xf0] }
 0x1aa   :  { %2575 = vmatpush.bf16.msrb.mxu2 %v6906_v63  ;;  %2599 = vmatpush.bf16.msra.mxu0 %v7546_v0  ;;  %v7418_v54 = vor.u32 %v9916_v44, %v7415_v45  ;;  %v9809_v63 = vld [vmem:[#allocation11 + $0xac] sm:$0xf0]  ;;  %v7103_v44 = vld [vmem:[#allocation11 + $0x1b0] sm:$0xf0] }
 0x1ab   :  { %v7613_v0 = vld [vmem:[#allocation11 + $0x590] sm:$0xf]  ;;  %v6974_v7 = vor.u32 %v9809_v63, %v6973_v62  ;;  %v9853_v40 = vld [vmem:[#allocation11 + $0x214] sm:$0xf] }
 0x1ac   :  { %2639 = vmatpush.bf16.msra.mxu3 %v7358_v60  ;;  %2615 = vmatpush.bf16.msra.mxu1 %v7738_v5  ;;  %v7837_v60 = vld [vmem:[#allocation11 + $0x750] sm:$0xf] }
 0x1ad   :  { %2576 = vmatmul.bf16.vlgmr.msrb.gmra.mxu2 %v10918_v52  ;;  %v7838_v3 = vor.u32 %v10025_v61, %v7837_v60  ;;  %v9857_v4 = vld [vmem:[#allocation11 + $0x22c] sm:$0xf0]  ;;  %v7710_v60 = vor.u32 %v9993_v50, %v7709_v49  ;;  %v9914_v49 = vld [vmem:[#allocation11 + $0x3f4] sm:$0xf0]  ;;  %v9797_v50 = vld [vmem:[#allocation11 + $0x54] sm:$0xf] }
 0x1ae   :  { %2624 = vmatpush.bf16.msra.mxu2 %v7134_v2  ;;  %2600 = vmatpush.bf16.msra.mxu0 %v7514_v11  ;;  %v7165_v2 = vld [vmem:[#allocation11 + $0x210] sm:$0xf] }
 0x1af   :  { %v7805_v5 = vld [vmem:[#allocation11 + $0x710] sm:$0xf]  ;;  %v7166_v16 = vor.u32 %v9857_v4, %v7165_v2  ;;  %v7903_v4 = vld [vmem:[#allocation11 + $0x7f0] sm:$0xf0] }
 0x1b0   :  { %2640 = vmatpush.bf16.msra.mxu3 %v7326_v8  ;;  %2616 = vmatpush.bf16.msra.mxu1 %v7706_v18  ;;  %v7614_v8 = vor.u32 %v9969_v1, %v7613_v0  ;;  %v6941_v11 = vld [vmem:[#allocation11 + $0x50] sm:$0xf]  ;;  %v7806_v17 = vor.u32 %v10017_v6, %v7805_v5  ;;  %v7394_v18 = vor.u32 %v9909_v9, %v7391_v10  ;;  %v9877_v1 = vld [vmem:[#allocation11 + $0x2d4] sm:$0xf] }
 0x1b1   :  { %v9801_v12 = vld [vmem:[#allocation11 + $0x6c] sm:$0xf0] }
 0x1b2   :  { %2625 = vmatpush.bf16.msra.mxu2 %v7102_v15  ;;  %2601 = vmatpush.bf16.msra.mxu0 %v7482_v25  ;;  %v7581_v13 = vld [vmem:[#allocation11 + $0x550] sm:$0xf] }
 0x1b3   :  { %v9961_v15 = vld [vmem:[#allocation11 + $0x56c] sm:$0xf0] }
 0x1b4   :  { %2641 = vmatpush.bf16.msra.mxu3 %v7294_v21  ;;  %2617 = vmatpush.bf16.msra.mxu1 %v7674_v32  ;;  %v7773_v14 = vld [vmem:[#allocation11 + $0x6d0] sm:$0xf]  ;;  %v6942_v21 = vor.u32 %v9801_v12, %v6941_v11  ;;  %v7582_v22 = vor.u32 %v9961_v15, %v7581_v13  ;;  %v7362_v32 = vor.u32 %v9901_v23, %v7359_v24  ;;  %v9869_v12 = vld [vmem:[#allocation11 + $0x294] sm:$0xf] }
 0x1b5   :  { %v10009_v20 = vld [vmem:[#allocation11 + $0x6ec] sm:$0xf0]  ;;  %v7231_v13 = vld [vmem:[#allocation11 + $0x2b0] sm:$0xf0] }
 0x1b6   :  { %2626 = vmatpush.bf16.msra.mxu2 %v7070_v29  ;;  %2602 = vmatpush.bf16.msra.mxu0 %v7450_v39  ;;  %v6909_v25 = vld [vmem:[#allocation11 + $0x10] sm:$0xf]  ;;  %v9845_v29 = vld [vmem:[#allocation11 + $0x1d4] sm:$0xf]  ;;  %v7774_v31 = vor.u32 %v10009_v20, %v7773_v14 }
 0x1b7   :  { %2618 = vmatmul.bf16.vlgmr.msra.gmra.mxu1 %v10921_v19  ;;  %v9793_v26 = vld [vmem:[#allocation11 + $0x2c] sm:$0xf0]  ;;  %v7138_v39 = vor.u32 %v9845_v29, %v7135_v30  ;;  %v9973_v23 = vld [vmem:[#allocation11 + $0x5d4] sm:$0xf] }
 0x1b8   :  { %2642 = vmatpush.bf16.msra.mxu3 %v7262_v36  ;;  %2666 = vmatpush.bf16.msrb.mxu1 %v7902_v37  ;;  %v7549_v27 = vld [vmem:[#allocation11 + $0x510] sm:$0xf]  ;;  %v6910_v33 = vor.u32 %v9793_v26, %v6909_v25  ;;  %v7647_v24 = vld [vmem:[#allocation11 + $0x5f0] sm:$0xf0]  ;;  %v7234_v25 = vor.u32 %v9869_v12, %v7231_v13  ;;  %v7333_v12 = vld [vmem:[#allocation11 + $0x358] sm:$0xf] }
 0x1b9   :  { %v9953_v28 = vld [vmem:[#allocation11 + $0x52c] sm:$0xf0]  ;;  %v9861_v29 = vld [vmem:[#allocation11 + $0x254] sm:$0xf] }
 0x1ba   :  { %2627 = vmatpush.bf16.msra.mxu2 %v7038_v43  ;;  %2603 = vmatpush.bf16.msra.mxu0 %v7418_v54  ;;  %v7550_v35 = vor.u32 %v9953_v28, %v7549_v27  ;;  %v7741_v36 = vld [vmem:[#allocation11 + $0x690] sm:$0xf]  ;;  %v9837_v43 = vld [vmem:[#allocation11 + $0x194] sm:$0xf] }
 0x1bb   :  { %v10001_v37 = vld [vmem:[#allocation11 + $0x6ac] sm:$0xf0]  ;;  %v7295_v54 = vld [vmem:[#allocation11 + $0x330] sm:$0xf0] }
 0x1bc   :  { %2643 = vmatpush.bf16.msra.mxu3 %v7230_v51  ;;  %2667 = vmatpush.bf16.msrb.mxu1 %v7870_v53  ;;  %v7517_v41 = vld [vmem:[#allocation11 + $0x4d0] sm:$0xf]  ;;  %v7742_v45 = vor.u32 %v10001_v37, %v7741_v36  ;;  %v9885_v51 = vld [vmem:[#allocation11 + $0x314] sm:$0xf]  ;;  %v7106_v53 = vor.u32 %v9837_v43, %v7103_v44 }
 0x1bd   :  { %2604 = vmatmul.bf16.vlgmr.msra.gmra.mxu0 %v10925_v48  ;;  %v9945_v42 = vld [vmem:[#allocation11 + $0x4ec] sm:$0xf0]  ;;  %v7298_v62 = vor.u32 %v9885_v51, %v7295_v54  ;;  %v7199_v30 = vld [vmem:[#allocation11 + $0x270] sm:$0xf0] }
 0x1be   :  { %2628 = vmatpush.bf16.msra.mxu2 %v7006_v57  ;;  %2652 = vmatpush.bf16.msrb.mxu0 %v7646_v58  ;;  %v7518_v47 = vor.u32 %v9945_v42, %v7517_v41  ;;  %v7485_v55 = vld [vmem:[#allocation11 + $0x490] sm:$0xf]  ;;  %v9829_v57 = vld [vmem:[#allocation11 + $0x154] sm:$0xf] }
 0x1bf   :  { %v9937_v56 = vld [vmem:[#allocation11 + $0x4ac] sm:$0xf0]  ;;  %v7071_v58 = vld [vmem:[#allocation11 + $0x170] sm:$0xf0] }
 0x1c0   :  { %2644 = vmatpush.bf16.msra.mxu3 %v7198_v59  ;;  %2668 = vmatpush.bf16.msrb.mxu1 %v7838_v3  ;;  %v7677_v61 = vld [vmem:[#allocation11 + $0x610] sm:$0xf]  ;;  %v7486_v63 = vor.u32 %v9937_v56, %v7485_v55  ;;  %v7263_v59 = vld [vmem:[#allocation11 + $0x2f0] sm:$0xf0]  ;;  %v7074_v2 = vor.u32 %v9829_v57, %v7071_v58 }
 0x1c1   :  { %v9985_v0 = vld [vmem:[#allocation11 + $0x62c] sm:$0xf0]  ;;  %v10037_v3 = vld [vmem:[#allocation11 + $0x7d4] sm:$0xf]  ;;  %v7266_v10 = vor.u32 %v9877_v1, %v7263_v59 }
 0x1c2   :  { %2629 = vmatpush.bf16.msra.mxu2 %v6974_v7  ;;  %2653 = vmatpush.bf16.msrb.mxu0 %v7614_v8  ;;  %v7453_v5 = vld [vmem:[#allocation11 + $0x450] sm:$0xf]  ;;  %v9821_v7 = vld [vmem:[#allocation11 + $0x114] sm:$0xf]  ;;  %v7678_v9 = vor.u32 %v9985_v0, %v7677_v61  ;;  %v7906_v11 = vor.u32 %v10037_v3, %v7903_v4  ;;  %v9906_v0 = vld [vmem:[#allocation11 + $0x3b4] sm:$0xf0] }
 0x1c3   :  { %v9929_v6 = vld [vmem:[#allocation11 + $0x46c] sm:$0xf0]  ;;  %v7039_v8 = vld [vmem:[#allocation11 + $0x130] sm:$0xf0]  ;;  %v7141_v4 = vld [vmem:[#allocation11 + $0x1d8] sm:$0xf] }
 0x1c4   :  { %2645 = vmatpush.bf16.msra.mxu3 %v7166_v16  ;;  %2669 = vmatpush.bf16.msrb.mxu1 %v7806_v17  ;;  %v7454_v15 = vor.u32 %v9929_v6, %v7453_v5  ;;  %v7042_v16 = vor.u32 %v9821_v7, %v7039_v8  ;;  %v10029_v17 = vld [vmem:[#allocation11 + $0x794] sm:$0xf]  ;;  %v7421_v14 = vld [vmem:[#allocation11 + $0x410] sm:$0xf]  ;;  %v9850_v5 = vld [vmem:[#allocation11 + $0x1f4] sm:$0xf0] }
 0x1c5   :  { %v9921_v20 = vld [vmem:[#allocation11 + $0x42c] sm:$0xf0]  ;;  %v6975_v36 = vld [vmem:[#allocation11 + $0xb0] sm:$0xf0]  ;;  %v7142_v13 = vor.u32 %v9850_v5, %v7141_v4  ;;  %v7205_v4 = vld [vmem:[#allocation11 + $0x258] sm:$0xf] }
 0x1c6   :  { %2630 = vmatpush.bf16.msra.mxu2 %v6942_v21  ;;  %2654 = vmatpush.bf16.msrb.mxu0 %v7582_v22  ;;  %v9813_v21 = vld [vmem:[#allocation11 + $0xd4] sm:$0xf]  ;;  %v7422_v27 = vor.u32 %v9921_v20, %v7421_v14  ;;  %v9842_v14 = vld [vmem:[#allocation11 + $0x1b4] sm:$0xf0] }
 0x1c7   :  { %2646 = vmatmul.bf16.vlgmr.msra.gmra.mxu3 %v10914_v34  ;;  %v7007_v22 = vld [vmem:[#allocation11 + $0xf0] sm:$0xf0]  ;;  %v9866_v5 = vld [vmem:[#allocation11 + $0x274] sm:$0xf0] }
 0x1c8   :  { %2694 = vmatpush.bf16.msrb.mxu3 %v7394_v18  ;;  %2670 = vmatpush.bf16.msrb.mxu1 %v7774_v31  ;;  %v7871_v18 = vld [vmem:[#allocation11 + $0x7b0] sm:$0xf0]  ;;  %v7010_v28 = vor.u32 %v9813_v21, %v7007_v22 }
 0x1c9   :  { %v7874_v26 = vor.u32 %v10029_v17, %v7871_v18  ;;  %v10021_v31 = vld [vmem:[#allocation11 + $0x754] sm:$0xf]  ;;  %v7109_v18 = vld [vmem:[#allocation11 + $0x198] sm:$0xf] }
 0x1ca   :  { %2631 = vmatpush.bf16.msra.mxu2 %v6910_v33  ;;  %2655 = vmatpush.bf16.msrb.mxu0 %v7550_v35  ;;  %v7839_v33 = vld [vmem:[#allocation11 + $0x770] sm:$0xf0] }
 0x1cb   :  { %v9805_v35 = vld [vmem:[#allocation11 + $0x94] sm:$0xf]  ;;  %v7842_v41 = vor.u32 %v10021_v31, %v7839_v33  ;;  %v9834_v31 = vld [vmem:[#allocation11 + $0x174] sm:$0xf0] }
 0x1cc   :  { %2695 = vmatpush.bf16.msrb.mxu3 %v7362_v32  ;;  %2671 = vmatpush.bf16.msrb.mxu1 %v7742_v45  ;;  %v7650_v32 = vor.u32 %v9973_v23, %v7647_v24  ;;  %v9965_v37 = vld [vmem:[#allocation11 + $0x594] sm:$0xf]  ;;  %v6978_v42 = vor.u32 %v9805_v35, %v6975_v36 }
 0x1cd   :  { %2632 = vmatmul.bf16.vlgmr.msra.gmra.mxu2 %v10918_v52  ;;  %v7167_v43 = vld [vmem:[#allocation11 + $0x230] sm:$0xf0] }
 0x1ce   :  { %2680 = vmatpush.bf16.msrb.mxu2 %v7138_v39  ;;  %2656 = vmatpush.bf16.msrb.mxu0 %v7518_v47  ;;  %v7202_v39 = vor.u32 %v9861_v29, %v7199_v30  ;;  %v10013_v44 = vld [vmem:[#allocation11 + $0x714] sm:$0xf]  ;;  %v7397_v47 = vld [vmem:[#allocation11 + $0x3d8] sm:$0xf]  ;;  %v7170_v55 = vor.u32 %v9853_v40, %v7167_v43 }
 0x1cf   :  { %v7807_v45 = vld [vmem:[#allocation11 + $0x730] sm:$0xf0]  ;;  %v7398_v57 = vor.u32 %v9914_v49, %v7397_v47  ;;  %v7077_v30 = vld [vmem:[#allocation11 + $0x158] sm:$0xf] }
 0x1d0   :  { %2696 = vmatpush.bf16.msrb.mxu3 %v7330_v46  ;;  %2672 = vmatpush.bf16.msrb.mxu1 %v7710_v60  ;;  %v7618_v46 = vor.u32 %v9965_v37, %v7615_v38  ;;  %v6943_v51 = vld [vmem:[#allocation11 + $0x70] sm:$0xf0]  ;;  %v7810_v56 = vor.u32 %v10013_v44, %v7807_v45  ;;  %v7269_v38 = vld [vmem:[#allocation11 + $0x2d8] sm:$0xf]  ;;  %v7078_v40 = vor.u32 %v9834_v31, %v7077_v30 }
 0x1d1   :  { %v7583_v54 = vld [vmem:[#allocation11 + $0x570] sm:$0xf0]  ;;  %v6946_v61 = vor.u32 %v9797_v50, %v6943_v51  ;;  %v7045_v45 = vld [vmem:[#allocation11 + $0x118] sm:$0xf] }
 0x1d2   :  { %2681 = vmatpush.bf16.msrb.mxu2 %v7106_v53  ;;  %2657 = vmatpush.bf16.msrb.mxu0 %v7486_v63  ;;  %v9957_v53 = vld [vmem:[#allocation11 + $0x554] sm:$0xf]  ;;  %v7365_v63 = vld [vmem:[#allocation11 + $0x398] sm:$0xf] }
 0x1d3   :  { %v10005_v58 = vld [vmem:[#allocation11 + $0x6d4] sm:$0xf]  ;;  %v7366_v7 = vor.u32 %v9906_v0, %v7365_v63  ;;  %v7237_v51 = vld [vmem:[#allocation11 + $0x298] sm:$0xf] }
 0x1d4   :  { %2697 = vmatpush.bf16.msrb.mxu3 %v7298_v62  ;;  %2673 = vmatpush.bf16.msrb.mxu1 %v7678_v9  ;;  %v7775_v60 = vld [vmem:[#allocation11 + $0x6f0] sm:$0xf0]  ;;  %v7586_v62 = vor.u32 %v9957_v53, %v7583_v54  ;;  %v9874_v53 = vld [vmem:[#allocation11 + $0x2b4] sm:$0xf0] }
 0x1d5   :  { %v9789_v1 = vld [vmem:[#allocation11 + $0x14] sm:$0xf]  ;;  %v7778_v6 = vor.u32 %v10005_v58, %v7775_v60  ;;  %v7653_v63 = vld [vmem:[#allocation11 + $0x5d8] sm:$0xf] }
 0x1d6   :  { %2682 = vmatpush.bf16.msrb.mxu2 %v7074_v2  ;;  %2658 = vmatpush.bf16.msrb.mxu0 %v7454_v15  ;;  %v6911_v59 = vld [vmem:[#allocation11 + $0x30] sm:$0xf0]  ;;  %v9898_v15 = vld [vmem:[#allocation11 + $0x374] sm:$0xf0] }
 0x1d7   :  { %2674 = vmatmul.bf16.vlgmr.msrb.gmra.mxu1 %v10921_v19  ;;  %v9949_v2 = vld [vmem:[#allocation11 + $0x514] sm:$0xf]  ;;  %v6914_v8 = vor.u32 %v9789_v1, %v6911_v59  ;;  %v7334_v21 = vor.u32 %v9898_v15, %v7333_v12  ;;  %v9978_v0 = vld [vmem:[#allocation11 + $0x5f4] sm:$0xf0]  ;;  %v7238_v1 = vor.u32 %v9874_v53, %v7237_v51 }
 0x1d8   :  { %2698 = vmatpush.bf16.msrb.mxu3 %v7266_v10  ;;  %2722 = vmatpush.bf16.msra.mxu1 %v7906_v11  ;;  %v7551_v3 = vld [vmem:[#allocation11 + $0x530] sm:$0xf0]  ;;  %v9970_v12 = vld [vmem:[#allocation11 + $0x5b4] sm:$0xf0] }
 0x1d9   :  { %v7554_v9 = vor.u32 %v9949_v2, %v7551_v3  ;;  %v9997_v10 = vld [vmem:[#allocation11 + $0x694] sm:$0xf]  ;;  %v7173_v15 = vld [vmem:[#allocation11 + $0x218] sm:$0xf] }
 0x1da   :  { %2683 = vmatpush.bf16.msrb.mxu2 %v7042_v16  ;;  %2659 = vmatpush.bf16.msrb.mxu0 %v7422_v27  ;;  %v7743_v11 = vld [vmem:[#allocation11 + $0x6b0] sm:$0xf0]  ;;  %v9890_v27 = vld [vmem:[#allocation11 + $0x334] sm:$0xf0] }
 0x1db   :  { %v9941_v16 = vld [vmem:[#allocation11 + $0x4d4] sm:$0xf]  ;;  %v7746_v20 = vor.u32 %v9997_v10, %v7743_v11  ;;  %v9810_v10 = vld [vmem:[#allocation11 + $0xb4] sm:$0xf0] }
 0x1dc   :  { %2699 = vmatpush.bf16.msrb.mxu3 %v7234_v25  ;;  %2723 = vmatpush.bf16.msra.mxu1 %v7874_v26  ;;  %v7519_v17 = vld [vmem:[#allocation11 + $0x4f0] sm:$0xf0]  ;;  %v7301_v25 = vld [vmem:[#allocation11 + $0x318] sm:$0xf]  ;;  %v7110_v26 = vor.u32 %v9842_v14, %v7109_v18 }
 0x1dd   :  { %2660 = vmatmul.bf16.vlgmr.msrb.gmra.mxu0 %v10925_v48  ;;  %v7522_v22 = vor.u32 %v9941_v16, %v7519_v17  ;;  %v9989_v23 = vld [vmem:[#allocation11 + $0x654] sm:$0xf]  ;;  %v7302_v35 = vor.u32 %v9890_v27, %v7301_v25  ;;  %v7621_v11 = vld [vmem:[#allocation11 + $0x598] sm:$0xf] }
 0x1de   :  { %2684 = vmatpush.bf16.msrb.mxu2 %v7010_v28  ;;  %2708 = vmatpush.bf16.msra.mxu0 %v7650_v32  ;;  %v7711_v24 = vld [vmem:[#allocation11 + $0x670] sm:$0xf0]  ;;  %v9858_v14 = vld [vmem:[#allocation11 + $0x234] sm:$0xf0] }
 0x1df   :  { %v9933_v28 = vld [vmem:[#allocation11 + $0x494] sm:$0xf]  ;;  %v7714_v32 = vor.u32 %v9989_v23, %v7711_v24  ;;  %v9910_v23 = vld [vmem:[#allocation11 + $0x3dc] sm:$0xf]  ;;  %v6949_v25 = vld [vmem:[#allocation11 + $0x58] sm:$0xf] }
 0x1e0   :  { %2700 = vmatpush.bf16.msrb.mxu3 %v7202_v39  ;;  %2724 = vmatpush.bf16.msra.mxu1 %v7842_v41  ;;  %v7487_v29 = vld [vmem:[#allocation11 + $0x4b0] sm:$0xf0]  ;;  %v9882_v39 = vld [vmem:[#allocation11 + $0x2f4] sm:$0xf0]  ;;  %v7399_v24 = vld [vmem:[#allocation11 + $0x3f8] sm:$0xf0] }
 0x1e1   :  { %v9981_v33 = vld [vmem:[#allocation11 + $0x614] sm:$0xf]  ;;  %v7490_v36 = vor.u32 %v9933_v28, %v7487_v29  ;;  %v7909_v41 = vld [vmem:[#allocation11 + $0x7d8] sm:$0xf]  ;;  %v7270_v49 = vor.u32 %v9882_v39, %v7269_v38  ;;  %v7174_v29 = vor.u32 %v9858_v14, %v7173_v15  ;;  %v7402_v31 = vor.u32 %v9910_v23, %v7399_v24  ;;  %v7367_v38 = vld [vmem:[#allocation11 + $0x3b8] sm:$0xf0] }
 0x1e2   :  { %2685 = vmatpush.bf16.msrb.mxu2 %v6978_v42  ;;  %2709 = vmatpush.bf16.msra.mxu0 %v7618_v46  ;;  %v7679_v37 = vld [vmem:[#allocation11 + $0x630] sm:$0xf0]  ;;  %v10042_v42 = vld [vmem:[#allocation11 + $0x7f4] sm:$0xf0]  ;;  %v10038_v23 = vld [vmem:[#allocation11 + $0x7dc] sm:$0xf] }
 0x1e3   :  { %v9925_v43 = vld [vmem:[#allocation11 + $0x454] sm:$0xf]  ;;  %v9826_v46 = vld [vmem:[#allocation11 + $0x134] sm:$0xf0]  ;;  %v7682_v47 = vor.u32 %v9981_v33, %v7679_v37  ;;  %v7910_v50 = vor.u32 %v10042_v42, %v7909_v41  ;;  %v9902_v37 = vld [vmem:[#allocation11 + $0x39c] sm:$0xf] }
 0x1e4   :  { %2701 = vmatpush.bf16.msrb.mxu3 %v7170_v55  ;;  %2725 = vmatpush.bf16.msra.mxu1 %v7810_v56  ;;  %v7455_v44 = vld [vmem:[#allocation11 + $0x470] sm:$0xf0]  ;;  %v7046_v55 = vor.u32 %v9826_v46, %v7045_v45  ;;  %v7877_v56 = vld [vmem:[#allocation11 + $0x798] sm:$0xf]  ;;  %v7143_v45 = vld [vmem:[#allocation11 + $0x1f8] sm:$0xf0] }
 0x1e5   :  { %v7458_v54 = vor.u32 %v9925_v43, %v7455_v44  ;;  %v9917_v58 = vld [vmem:[#allocation11 + $0x414] sm:$0xf]  ;;  %v7589_v27 = vld [vmem:[#allocation11 + $0x558] sm:$0xf]  ;;  %v9846_v44 = vld [vmem:[#allocation11 + $0x1dc] sm:$0xf] }
 0x1e6   :  { %2686 = vmatpush.bf16.msrb.mxu2 %v6946_v61  ;;  %2710 = vmatpush.bf16.msra.mxu0 %v7586_v62  ;;  %v7423_v60 = vld [vmem:[#allocation11 + $0x430] sm:$0xf0]  ;;  %v7013_v61 = vld [vmem:[#allocation11 + $0xd8] sm:$0xf]  ;;  %v7911_v24 = vld [vmem:[#allocation11 + $0x7f8] sm:$0xf0] }
 0x1e7   :  { %2702 = vmatmul.bf16.vlgmr.msrb.gmra.mxu3 %v10914_v34  ;;  %v9818_v62 = vld [vmem:[#allocation11 + $0xf4] sm:$0xf0]  ;;  %v7426_v2 = vor.u32 %v9917_v58, %v7423_v60  ;;  %v7146_v58 = vor.u32 %v9846_v44, %v7143_v45  ;;  %v7335_v60 = vld [vmem:[#allocation11 + $0x378] sm:$0xf0] }
 0x1e8   :  { %2750 = vmatpush.bf16.msra.mxu3 %v7398_v57  ;;  %2726 = vmatpush.bf16.msra.mxu1 %v7778_v6  ;;  %v10034_v57 = vld [vmem:[#allocation11 + $0x7b4] sm:$0xf0]  ;;  %v7014_v3 = vor.u32 %v9818_v62, %v7013_v61  ;;  %v9814_v45 = vld [vmem:[#allocation11 + $0xdc] sm:$0xf] }
 0x1e9   :  { %v7878_v59 = vor.u32 %v10034_v57, %v7877_v56  ;;  %v7845_v6 = vld [vmem:[#allocation11 + $0x758] sm:$0xf] }
 0x1ea   :  { %2687 = vmatpush.bf16.msrb.mxu2 %v6914_v8  ;;  %2711 = vmatpush.bf16.msra.mxu0 %v7554_v9  ;;  %v10026_v8 = vld [vmem:[#allocation11 + $0x774] sm:$0xf0] }
 0x1eb   :  { %v6981_v9 = vld [vmem:[#allocation11 + $0x98] sm:$0xf]  ;;  %v7846_v17 = vor.u32 %v10026_v8, %v7845_v6 }
 0x1ec   :  { %2751 = vmatpush.bf16.msra.mxu3 %v7366_v7  ;;  %2727 = vmatpush.bf16.msra.mxu1 %v7746_v20  ;;  %v7654_v7 = vor.u32 %v9978_v0, %v7653_v63  ;;  %v6982_v18 = vor.u32 %v9810_v10, %v6981_v9  ;;  %v7813_v20 = vld [vmem:[#allocation11 + $0x718] sm:$0xf]  ;;  %v9838_v63 = vld [vmem:[#allocation11 + $0x19c] sm:$0xf] }
 0x1ed   :  { %2688 = vmatmul.bf16.vlgmr.msrb.gmra.mxu2 %v10918_v52  ;;  %v9962_v28 = vld [vmem:[#allocation11 + $0x574] sm:$0xf0]  ;;  %v7111_v0 = vld [vmem:[#allocation11 + $0x1b8] sm:$0xf0] }
 0x1ee   :  { %2736 = vmatpush.bf16.msra.mxu2 %v7142_v13  ;;  %2712 = vmatpush.bf16.msra.mxu0 %v7522_v22  ;;  %v7206_v13 = vor.u32 %v9866_v5, %v7205_v4  ;;  %v7622_v22 = vor.u32 %v9970_v12, %v7621_v11  ;;  %v10010_v33 = vld [vmem:[#allocation11 + $0x6f4] sm:$0xf0]  ;;  %v9886_v5 = vld [vmem:[#allocation11 + $0x31c] sm:$0xf]  ;;  %v7114_v6 = vor.u32 %v9838_v63, %v7111_v0 }
 0x1ef   :  { %v6917_v39 = vld [vmem:[#allocation11 + $0x18] sm:$0xf]  ;;  %v9830_v10 = vld [vmem:[#allocation11 + $0x15c] sm:$0xf] }
 0x1f0   :  { %2752 = vmatpush.bf16.msra.mxu3 %v7334_v21  ;;  %2728 = vmatpush.bf16.msra.mxu1 %v7714_v32  ;;  %v10946_v16 = vpop.f32.mrf.mxu2  ;;  %v10018_v21 = vld [vmem:[#allocation11 + $0x734] sm:$0xf0]  ;;  %v7079_v11 = vld [vmem:[#allocation11 + $0x178] sm:$0xf0] }
 0x1f1   :  { %v7814_v30 = vor.u32 %v10018_v21, %v7813_v20  ;;  %v7781_v32 = vld [vmem:[#allocation11 + $0x6d8] sm:$0xf]  ;;  %v9878_v20 = vld [vmem:[#allocation11 + $0x2dc] sm:$0xf] }
 0x1f2   :  { %2737 = vmatpush.bf16.msra.mxu2 %v7110_v26  ;;  %2713 = vmatpush.bf16.msra.mxu0 %v7490_v36  ;;  %v9802_v26 = vld [vmem:[#allocation11 + $0x74] sm:$0xf0]  ;;  %v7590_v36 = vor.u32 %v9962_v28, %v7589_v27  ;;  %v7782_v46 = vor.u32 %v10010_v33, %v7781_v32  ;;  %v7271_v21 = vld [vmem:[#allocation11 + $0x2f8] sm:$0xf0] }
 0x1f3   :  { %v9794_v41 = vld [vmem:[#allocation11 + $0x34] sm:$0xf0]  ;;  %v9822_v28 = vld [vmem:[#allocation11 + $0x11c] sm:$0xf]  ;;  %v7274_v33 = vor.u32 %v9878_v20, %v7271_v21 }
 0x1f4   :  { %2753 = vmatpush.bf16.msra.mxu3 %v7302_v35  ;;  %2729 = vmatpush.bf16.msra.mxu1 %v7682_v47  ;;  %v6950_v35 = vor.u32 %v9802_v26, %v6949_v25  ;;  %v7557_v42 = vld [vmem:[#allocation11 + $0x518] sm:$0xf]  ;;  %v7370_v47 = vor.u32 %v9902_v37, %v7367_v38  ;;  %v7239_v37 = vld [vmem:[#allocation11 + $0x2b8] sm:$0xf0] }
 0x1f5   :  { %v9954_v43 = vld [vmem:[#allocation11 + $0x534] sm:$0xf0]  ;;  %v7847_v0 = vld [vmem:[#allocation11 + $0x778] sm:$0xf0] }
 0x1f6   :  { %2738 = vmatpush.bf16.msra.mxu2 %v7078_v40  ;;  %2714 = vmatpush.bf16.msra.mxu0 %v7458_v54  ;;  %v10949_v40 = vpop.f32.mrf.mxu3  ;;  %v7558_v51 = vor.u32 %v9954_v43, %v7557_v42  ;;  %v7749_v53 = vld [vmem:[#allocation11 + $0x698] sm:$0xf]  ;;  %v7879_v42 = vld [vmem:[#allocation11 + $0x7b8] sm:$0xf0] }
 0x1f7   :  { %2730 = vmatmul.bf16.vlgmr.msra.gmra.mxu1 %v10921_v19  ;;  %v10002_v54 = vld [vmem:[#allocation11 + $0x6b4] sm:$0xf0]  ;;  %v9798_v20 = vld [vmem:[#allocation11 + $0x5c] sm:$0xf] }
 0x1f8   :  { %2754 = vmatpush.bf16.msra.mxu3 %v7270_v49  ;;  %2778 = vmatpush.bf16.msrb.mxu1 %v7910_v50  ;;  %v10951_v49 = vpop.f32.mrf.mxu1  ;;  %v6918_v50 = vor.u32 %v9794_v41, %v6917_v39  ;;  %v10953_v56 = vpop.f32.mrf.mxu2  ;;  %v7525_v61 = vld [vmem:[#allocation11 + $0x4d8] sm:$0xf]  ;;  %v10030_v41 = vld [vmem:[#allocation11 + $0x79c] sm:$0xf] }
 0x1f9   :  { %v9946_v62 = vld [vmem:[#allocation11 + $0x4f4] sm:$0xf0]  ;;  %v6951_v21 = vld [vmem:[#allocation11 + $0x78] sm:$0xf0] }
 0x1fa   :  { %2739 = vmatpush.bf16.msra.mxu2 %v7046_v55  ;;  %2715 = vmatpush.bf16.msra.mxu0 %v7426_v2  ;;  %v9894_v55 = vld [vmem:[#allocation11 + $0x35c] sm:$0xf]  ;;  %v10955_v57 = vpop.f32.mrf.mxu0  ;;  %v7526_v2 = vor.u32 %v9946_v62, %v7525_v61  ;;  %v9994_v4 = vld [vmem:[#allocation11 + $0x674] sm:$0xf0] }
 0x1fb   :  { %v7493_v8 = vld [vmem:[#allocation11 + $0x498] sm:$0xf]  ;;  %v7207_v61 = vld [vmem:[#allocation11 + $0x278] sm:$0xf0] }
 0x1fc   :  { %2755 = vmatpush.bf16.msra.mxu3 %v7238_v1  ;;  %2779 = vmatpush.bf16.msrb.mxu1 %v7878_v59  ;;  %v7750_v1 = vor.u32 %v10002_v54, %v7749_v53  ;;  %v7338_v59 = vor.u32 %v9894_v55, %v7335_v60  ;;  %v9938_v9 = vld [vmem:[#allocation11 + $0x4b4] sm:$0xf0]  ;;  %v7882_v53 = vor.u32 %v10030_v41, %v7879_v42  ;;  %v9862_v60 = vld [vmem:[#allocation11 + $0x25c] sm:$0xf] }
 0x1fd   :  { %2716 = vmatmul.bf16.vlgmr.msra.gmra.mxu0 %v10925_v48  ;;  %v7685_v15 = vld [vmem:[#allocation11 + $0x618] sm:$0xf]  ;;  %v10022_v62 = vld [vmem:[#allocation11 + $0x75c] sm:$0xf] }
 0x1fe   :  { %2740 = vmatpush.bf16.msra.mxu2 %v7014_v3  ;;  %2764 = vmatpush.bf16.msrb.mxu0 %v7654_v7  ;;  %v7717_v3 = vld [vmem:[#allocation11 + $0x658] sm:$0xf]  ;;  %v7303_v7 = vld [vmem:[#allocation11 + $0x338] sm:$0xf0]  ;;  %v10958_v12 = vpop.f32.mrf.mxu3 }
 0x1ff   :  { %v9986_v14 = vld [vmem:[#allocation11 + $0x634] sm:$0xf0]  ;;  %v9950_v41 = vld [vmem:[#allocation11 + $0x51c] sm:$0xf] }
 0x200   :  { %2756 = vmatpush.bf16.msra.mxu3 %v7206_v13  ;;  %2780 = vmatpush.bf16.msrb.mxu1 %v7846_v17  ;;  %v7718_v13 = vor.u32 %v9994_v4, %v7717_v3  ;;  %v7306_v17 = vor.u32 %v9886_v5, %v7303_v7  ;;  %v7461_v25 = vld [vmem:[#allocation11 + $0x458] sm:$0xf]  ;;  %v10961_v26 = vpop.f32.mrf.mxu1  ;;  %v7686_v32 = vor.u32 %v9986_v14, %v7685_v15  ;;  %v7623_v3 = vld [vmem:[#allocation11 + $0x5b8] sm:$0xf0]  ;;  %v10151_v14 = vld [vmem:[#allocation14 + $0x360] sm:$0xf0] }
 0x201   :  { %v9930_v27 = vld [vmem:[#allocation11 + $0x474] sm:$0xf0]  ;;  %v7210_v5 = vor.u32 %v9862_v60, %v7207_v61  ;;  %v7815_v15 = vld [vmem:[#allocation11 + $0x738] sm:$0xf0]  ;;  %v8281_v61 = vld [vmem:[#allocation14 + $0x2d8] sm:$0xf] }
 0x202   :  { %2741 = vmatpush.bf16.msra.mxu2 %v6982_v18  ;;  %2765 = vmatpush.bf16.msrb.mxu0 %v7622_v22  ;;  %v7494_v18 = vor.u32 %v9938_v9, %v7493_v8  ;;  %v7082_v22 = vor.u32 %v9830_v10, %v7079_v11  ;;  %v7462_v38 = vor.u32 %v9930_v27, %v7461_v25  ;;  %v7429_v43 = vld [vmem:[#allocation11 + $0x418] sm:$0xf]  ;;  %v7175_v11 = vld [vmem:[#allocation11 + $0x238] sm:$0xf0] }
 0x203   :  { %v9922_v44 = vld [vmem:[#allocation11 + $0x434] sm:$0xf0]  ;;  %v7850_v9 = vor.u32 %v10022_v62, %v7847_v0  ;;  %v7559_v42 = vld [vmem:[#allocation11 + $0x538] sm:$0xf0] }
 0x204   :  { %2757 = vmatpush.bf16.msra.mxu3 %v7174_v29  ;;  %2781 = vmatpush.bf16.msrb.mxu1 %v7814_v30  ;;  %v7047_v29 = vld [vmem:[#allocation11 + $0x138] sm:$0xf0]  ;;  %v10963_v30 = vpop.f32.mrf.mxu2  ;;  %v7430_v55 = vor.u32 %v9922_v44, %v7429_v43  ;;  %v10979_v43 = vld [vmem:[#allocation13] sm:$0xff]  ;;  %v8113_v44 = vld [vmem:[#allocation14 + $0x188] sm:$0xf] }
 0x205   :  { %v7050_v39 = vor.u32 %v9822_v28, %v7047_v29  ;;  %v10006_v28 = vld [vmem:[#allocation11 + $0x6dc] sm:$0xf] }
 0x206   :  { %2742 = vmatpush.bf16.msra.mxu2 %v6950_v35  ;;  %2766 = vmatpush.bf16.msrb.mxu0 %v7590_v36  ;;  %v7914_v35 = vor.u32 %v10038_v23, %v7911_v24  ;;  %v9870_v36 = vld [vmem:[#allocation11 + $0x29c] sm:$0xf]  ;;  %v10967_v54 = vpop.f32.mrf.mxu3 }
 0x207   :  { %2758 = vmatmul.bf16.vlgmr.msra.gmra.mxu3 %v10914_v34  ;;  %v7591_v23 = vld [vmem:[#allocation11 + $0x578] sm:$0xf0] }
 0x208   :  { %2806 = vmatpush.bf16.msrb.mxu3 %v7402_v31  ;;  %2782 = vmatpush.bf16.msrb.mxu1 %v7782_v46  ;;  %v10965_v31 = vpop.f32.mrf.mxu0  ;;  %v7015_v46 = vld [vmem:[#allocation11 + $0xf8] sm:$0xf0]  ;;  %v10970_v4 = vpop.f32.mrf.mxu1 }
 0x209   :  { %v7783_v29 = vld [vmem:[#allocation11 + $0x6f8] sm:$0xf0] }
 0x20a   :  { %2743 = vmatpush.bf16.msra.mxu2 %v6918_v50  ;;  %2767 = vmatpush.bf16.msrb.mxu0 %v7558_v51  ;;  %v7655_v50 = vld [vmem:[#allocation11 + $0x5f8] sm:$0xf0]  ;;  %v7242_v51 = vor.u32 %v9870_v36, %v7239_v37  ;;  %v10144_v36 = vld [vmem:[#allocation14 + $0x328] sm:$0xf0] }
 0x20b   :  { %v9790_v37 = vld [vmem:[#allocation11 + $0x1c] sm:$0xf] }
 0x20c   :  { %2807 = vmatpush.bf16.msrb.mxu3 %v7370_v47  ;;  %2783 = vmatpush.bf16.msrb.mxu1 %v7750_v1  ;;  %v9974_v47 = vld [vmem:[#allocation11 + $0x5dc] sm:$0xf]  ;;  %v10972_v7 = vpop.f32.mrf.mxu2 }
 0x20d   :  { %2744 = vmatmul.bf16.vlgmr.msra.gmra.mxu2 %v10918_v52  ;;  %v7658_v63 = vor.u32 %v9974_v47, %v7655_v50  ;;  %v9806_v1 = vld [vmem:[#allocation11 + $0x9c] sm:$0xf]  ;;  %v7786_v47 = vor.u32 %v10006_v28, %v7783_v29 }
 0x20e   :  { %2792 = vmatpush.bf16.msrb.mxu2 %v7146_v58  ;;  %2768 = vmatpush.bf16.msrb.mxu0 %v7526_v2  ;;  %v7018_v58 = vor.u32 %v9814_v45, %v7015_v46  ;;  %v9966_v2 = vld [vmem:[#allocation11 + $0x59c] sm:$0xf]  ;;  %v10095_v45 = vld [vmem:[#allocation14 + $0x1a0] sm:$0xf0]  ;;  %v1105_v46 = vperm.slane %v10979_v43, 1 }
 0x20f   :  { %v7751_v60 = vld [vmem:[#allocation11 + $0x6b8] sm:$0xf0]  ;;  %v8114_v0 = vor.u32 %v10095_v45, %v8113_v44  ;;  %v8785_v45 = vld [vmem:[#allocation14 + $0x6c8] sm:$0xf] }
 0x210   :  { %2808 = vmatpush.bf16.msrb.mxu3 %v7338_v59  ;;  %2784 = vmatpush.bf16.msrb.mxu1 %v7718_v13  ;;  %v6983_v59 = vld [vmem:[#allocation11 + $0xb8] sm:$0xf0]  ;;  %v10974_v8 = vpop.f32.mrf.mxu0 }
 0x211   :  { %v6986_v10 = vor.u32 %v9806_v1, %v6983_v59  ;;  %v10014_v13 = vld [vmem:[#allocation11 + $0x71c] sm:$0xf] }
 0x212   :  { %2793 = vmatpush.bf16.msrb.mxu2 %v7114_v6  ;;  %2769 = vmatpush.bf16.msrb.mxu0 %v7494_v18  ;;  %v9854_v6 = vld [vmem:[#allocation11 + $0x21c] sm:$0xf]  ;;  %v8337_v18 = vld [vmem:[#allocation14 + $0x348] sm:$0xf]  ;;  %v7818_v25 = vor.u32 %v10014_v13, %v7815_v15  ;;  %v8253_v15 = vld [vmem:[#allocation14 + $0x2a0] sm:$0xf] }
 0x213   :  { %v7178_v24 = vor.u32 %v9854_v6, %v7175_v11  ;;  %v8338_v27 = vor.u32 %v10151_v14, %v8337_v18  ;;  %v10137_v1 = vld [vmem:[#allocation14 + $0x2f0] sm:$0xf0]  ;;  %v10130_v18 = vld [vmem:[#allocation14 + $0x2b8] sm:$0xf0] }
 0x214   :  { %2809 = vmatpush.bf16.msrb.mxu3 %v7306_v17  ;;  %2785 = vmatpush.bf16.msrb.mxu1 %v7686_v32  ;;  %v7626_v17 = vor.u32 %v9966_v2, %v7623_v3  ;;  %v6954_v32 = vor.u32 %v9798_v20, %v6951_v21  ;;  %v10984_v62 = vpop.f32.mrf.mxu2  ;;  %v9942_v59 = vld [vmem:[#allocation11 + $0x4dc] sm:$0xf]  ;;  %v8085_v3 = vld [vmem:[#allocation14 + $0x150] sm:$0xf]  ;;  %v8057_v21 = vld [vmem:[#allocation14 + $0x118] sm:$0xf] }
 0x215   :  { %v7527_v2 = vld [vmem:[#allocation11 + $0x4f8] sm:$0xf0] }
 0x216   :  { %2794 = vmatpush.bf16.msrb.mxu2 %v7082_v22  ;;  %2770 = vmatpush.bf16.msrb.mxu0 %v7462_v38  ;;  %v9958_v22 = vld [vmem:[#allocation11 + $0x55c] sm:$0xf]  ;;  %v10977_v38 = vpop.f32.mrf.mxu3 }
 0x217   :  { %2786 = vmatmul.bf16.vlgmr.msrb.gmra.mxu1 %v10921_v19  ;;  %v9990_v11 = vld [vmem:[#allocation11 + $0x65c] sm:$0xf] }
 0x218   :  { %2810 = vmatpush.bf16.msrb.mxu3 %v7274_v33  ;;  %2834 = vmatpush.bf16.msra.mxu1 %v7914_v35  ;;  %v7594_v33 = vor.u32 %v9958_v22, %v7591_v23  ;;  %v8309_v35 = vld [vmem:[#allocation14 + $0x310] sm:$0xf]  ;;  %v7719_v13 = vld [vmem:[#allocation11 + $0x678] sm:$0xf0]  ;;  %v1104_v23 = vperm.slane %v10979_v43, 0 }
 0x219   :  { %v8310_v50 = vor.u32 %v10144_v36, %v8309_v35  ;;  %v9934_v14 = vld [vmem:[#allocation11 + $0x49c] sm:$0xf]  ;;  %v10123_v35 = vld [vmem:[#allocation14 + $0x280] sm:$0xf0] }
 0x21a   :  { %2795 = vmatpush.bf16.msrb.mxu2 %v7050_v39  ;;  %2771 = vmatpush.bf16.msrb.mxu0 %v7430_v55  ;;  %v6919_v39 = vld [vmem:[#allocation11 + $0x38] sm:$0xf0]  ;;  %v7562_v55 = vor.u32 %v9950_v41, %v7559_v42  ;;  %v8029_v41 = vld [vmem:[#allocation14 + $0xe0] sm:$0xf]  ;;  %v2412_v42 = vadd.f32 %v10953_v56, %v1104_v23  ;;  %v8197_v56 = vld [vmem:[#allocation14 + $0x230] sm:$0xf] }
 0x21b   :  { %v7495_v20 = vld [vmem:[#allocation11 + $0x4b8] sm:$0xf0] }
 0x21c   :  { %2811 = vmatpush.bf16.msrb.mxu3 %v7242_v51  ;;  %2835 = vmatpush.bf16.msra.mxu1 %v7882_v53  ;;  %v10982_v51 = vpop.f32.mrf.mxu1  ;;  %v6922_v53 = vor.u32 %v9790_v37, %v6919_v39  ;;  %v10081_v22 = vld [vmem:[#allocation14 + $0x130] sm:$0xf0]  ;;  %v7498_v29 = vor.u32 %v9934_v14, %v7495_v20  ;;  %v8169_v20 = vld [vmem:[#allocation14 + $0x1f8] sm:$0xf] }
 0x21d   :  { %2772 = vmatmul.bf16.vlgmr.msrb.gmra.mxu0 %v10925_v48  ;;  %v9982_v28 = vld [vmem:[#allocation11 + $0x61c] sm:$0xf]  ;;  %v8058_v37 = vor.u32 %v10081_v22, %v8057_v21  ;;  %v7973_v21 = vld [vmem:[#allocation14 + $0x70] sm:$0xf] }
 0x21e   :  { %2796 = vmatpush.bf16.msrb.mxu2 %v7018_v58  ;;  %2820 = vmatpush.bf16.msra.mxu0 %v7658_v63  ;;  %v9998_v58 = vld [vmem:[#allocation11 + $0x69c] sm:$0xf]  ;;  %v10986_v63 = vpop.f32.mrf.mxu0 }
 0x21f   :  { %v7754_v6 = vor.u32 %v9998_v58, %v7751_v60  ;;  %v9926_v39 = vld [vmem:[#allocation11 + $0x45c] sm:$0xf] }
 0x220   :  { %2812 = vmatpush.bf16.msrb.mxu3 %v7210_v5  ;;  %2836 = vmatpush.bf16.msra.mxu1 %v7850_v9  ;;  %v10088_v5 = vld [vmem:[#allocation14 + $0x168] sm:$0xf0]  ;;  %v8282_v9 = vor.u32 %v10137_v1, %v8281_v61 }
 0x221   :  { %v10116_v61 = vld [vmem:[#allocation14 + $0x248] sm:$0xf0] }
 0x222   :  { %2797 = vmatpush.bf16.msrb.mxu2 %v6986_v10  ;;  %2821 = vmatpush.bf16.msra.mxu0 %v7626_v17  ;;  %v7530_v10 = vor.u32 %v9942_v59, %v7527_v2  ;;  %v2466_v17 = vadd.f32 %v10963_v30, %v1105_v46  ;;  %v8254_v30 = vor.u32 %v10130_v18, %v8253_v15  ;;  %v7431_v2 = vld [vmem:[#allocation11 + $0x438] sm:$0xf0]  ;;  %v10256_v15 = vld [vmem:[#allocation14 + $0x6a8] sm:$0xf0] }
 0x224   :  { %2813 = vmatpush.bf16.msrb.mxu3 %v7178_v24  ;;  %2837 = vmatpush.bf16.msra.mxu1 %v7818_v25  ;;  %v2468_v24 = vadd.f32 %v10972_v7, %v1105_v46  ;;  %v10992_v25 = vpop.f32.mrf.mxu3  ;;  %v2480_v36 = vadd.f32 %v10967_v54, %v2466_v17  ;;  %v7463_v7 = vld [vmem:[#allocation11 + $0x478] sm:$0xf0]  ;;  %v10997_v44 = vpop.f32.mrf.mxu1  ;;  %v10263_v46 = vld [vmem:[#allocation14 + $0x6e0] sm:$0xf0]  ;;  %v8198_v17 = vor.u32 %v10116_v61, %v8197_v56  ;;  %v1106_v56 = vperm.slane %v10979_v43, 2 }
 0x225   :  { %v7466_v60 = vor.u32 %v9926_v39, %v7463_v7  ;;  %v8786_v59 = vor.u32 %v10263_v46, %v8785_v45  ;;  %v1107_v45 = vperm.slane %v10979_v43, 3 }
 0x226   :  { %2798 = vmatpush.bf16.msrb.mxu2 %v6954_v32  ;;  %2822 = vmatpush.bf16.msra.mxu0 %v7594_v33  ;;  %v7687_v32 = vld [vmem:[#allocation11 + $0x638] sm:$0xf0]  ;;  %v8225_v33 = vld [vmem:[#allocation14 + $0x268] sm:$0xf] }
 0x227   :  { %2814 = vmatmul.bf16.vlgmr.msrb.gmra.mxu3 %v10914_v34  ;;  %v8086_v34 = vor.u32 %v10088_v5, %v8085_v3  ;;  %v7690_v54 = vor.u32 %v9982_v28, %v7687_v32  ;;  %v8226_v58 = vor.u32 %v10123_v35, %v8225_v33  ;;  %v2410_v3 = vadd.f32 %v10946_v16, %v1104_v23  ;;  %v10060_v23 = vld [vmem:[#allocation14 + $0x88] sm:$0xf0] }
 0x228   :  { %5750 = vmatpush.bf16.msra.mxu3 %v8338_v27  ;;  %2838 = vmatpush.bf16.msra.mxu1 %v7786_v47  ;;  %v7722_v27 = vor.u32 %v9990_v11, %v7719_v13  ;;  %v2494_v47 = vadd.f32 %v10974_v8, %v2480_v36  ;;  %v9918_v8 = vld [vmem:[#allocation11 + $0x41c] sm:$0xf]  ;;  %v2426_v5 = vadd.f32 %v10958_v12, %v2412_v42  ;;  %v8757_v13 = vld [vmem:[#allocation14 + $0x690] sm:$0xf]  ;;  %v8141_v36 = vld [vmem:[#allocation14 + $0x1c0] sm:$0xf] }
 0x229   :  { %v2424_v22 = vadd.f32 %v10949_v40, %v2410_v3  ;;  %v10102_v40 = vld [vmem:[#allocation14 + $0x1d8] sm:$0xf0] }
 0x22a   :  { %2799 = vmatpush.bf16.msrb.mxu2 %v6922_v53  ;;  %2823 = vmatpush.bf16.msra.mxu0 %v7562_v55  ;;  %v11001_v53 = vpop.f32.mrf.mxu2  ;;  %v11003_v55 = vpop.f32.mrf.mxu0  ;;  %v11009_v11 = vadd.f32 %v10970_v4, %v2494_v47  ;;  %v10109_v4 = vld [vmem:[#allocation14 + $0x210] sm:$0xf0]  ;;  %v8142_v61 = vor.u32 %v10102_v40, %v8141_v36  ;;  %v10228_v36 = vld [vmem:[#allocation14 + $0x5c8] sm:$0xf0] }
 0x22b   :  { %v2438_v32 = vadd.f32 %v10955_v57, %v2424_v22  ;;  %v8170_v35 = vor.u32 %v10109_v4, %v8169_v20  ;;  %v8505_v57 = vld [vmem:[#allocation14 + $0x498] sm:$0xf]  ;;  %v10193_v47 = vld [vmem:[#allocation14 + $0x4b0] sm:$0xf0]  ;;  %v2524_v4 = vadd.f32 %v11001_v53, %v1106_v56  ;;  %v2522_v53 = vadd.f32 %v10984_v62, %v1106_v56 }
 0x22c   :  { %5751 = vmatpush.bf16.msra.mxu3 %v8310_v50  ;;  %2839 = vmatpush.bf16.msra.mxu1 %v7754_v6  ;;  %v2482_v50 = vadd.f32 %v10977_v38, %v2468_v24  ;;  %v8001_v38 = vld [vmem:[#allocation14 + $0xa8] sm:$0xf]  ;;  %v10067_v6 = vld [vmem:[#allocation14 + $0xc0] sm:$0xf0]  ;;  %v11013_v16 = vpop.f32.mrf.mxu3  ;;  %v8533_v24 = vld [vmem:[#allocation14 + $0x4d0] sm:$0xf]  ;;  %v11019_v33 = vpop.f32.mrf.mxu1 }
 0x22d   :  { %2800 = vmatmul.bf16.vlgmr.msrb.gmra.mxu2 %v10918_v52  ;;  %v10074_v52 = vld [vmem:[#allocation14 + $0xf8] sm:$0xf0]  ;;  %v8002_v12 = vor.u32 %v10067_v6, %v8001_v38  ;;  %v2865_v28 = vmul.f32 0.2, %v11009_v11  ;;  %vm2849_vm13 = vcmp.gt.f32.partialorder %v11009_v11, 0.0 }
 0x22e   :  { %5736 = vmatpush.bf16.msra.mxu2 %v8114_v0  ;;  %2824 = vmatpush.bf16.msra.mxu0 %v7530_v10  ;;  %v2496_v0 = vadd.f32 %v10986_v63, %v2482_v50  ;;  %v8030_v1 = vor.u32 %v10074_v52, %v8029_v41  ;;  %v10207_v10 = vld [vmem:[#allocation14 + $0x520] sm:$0xf0]  ;;  %v2440_v63 = vadd.f32 %v10965_v31, %v2426_v5  ;;  %v10053_v52 = vld [vmem:[#allocation14 + $0x50] sm:$0xf0]  ;;  %v8701_v50 = vld [vmem:[#allocation14 + $0x620] sm:$0xf] }
 0x22f   :  { %v8758_v31 = vor.u32 %v10256_v15, %v8757_v13  ;;  %v7974_v41 = vor.u32 %v10060_v23, %v7973_v21  ;;  %v10046_v38 = vld [vmem:[#allocation14 + $0x18] sm:$0xf0]  ;;  %v8477_v5 = vld [vmem:[#allocation14 + $0x460] sm:$0xf]  ;;  %v2881_v13 = vsel %vm2849_vm13, %v11009_v11, %v2865_v28  ;;  %v10319_v15 = vld [vmem:[#allocation14 + $0x8a0] sm:$0xf0] }
 0x230   :  { %5752 = vmatpush.bf16.msra.mxu3 %v8282_v9  ;;  %2840 = vmatpush.bf16.msra.mxu1 %v7722_v27  ;;  %v8561_v9 = vld [vmem:[#allocation14 + $0x508] sm:$0xf]  ;;  %v2510_v18 = vadd.f32 %v10982_v51, %v2496_v0  ;;  %v10200_v27 = vld [vmem:[#allocation14 + $0x4e8] sm:$0xf0]  ;;  %v10186_v6 = vld [vmem:[#allocation14 + $0x478] sm:$0xf0] }
 0x231   :  { %v8562_v14 = vor.u32 %v10207_v10, %v8561_v9  ;;  %v8534_v42 = vor.u32 %v10200_v27, %v8533_v24  ;;  %v9009_v9 = vld [vmem:[#allocation14 + $0x888] sm:$0xf] }
 0x232   :  { %5737 = vmatpush.bf16.msra.mxu2 %v8086_v34  ;;  %2825 = vmatpush.bf16.msra.mxu0 %v7498_v29  ;;  %v7434_v34 = vor.u32 %v9918_v8, %v7431_v2  ;;  %v2577_v51 = vpop.f32.mrf.mxu2  ;;  %v10249_v29 = vld [vmem:[#allocation14 + $0x670] sm:$0xf0]  ;;  %v2873_v39 = vmul.f32 0.2, %v2510_v18  ;;  %v11024_v7 = vpop.f32.mrf.mxu0  ;;  %vm2857_vm12 = vcmp.gt.f32.partialorder %v2510_v18, 0.0  ;;  %v9010_v24 = vor.u32 %v10319_v15, %v9009_v9 }
 0x233   :  { %v7917_v2 = vld [vmem:[#allocation14] sm:$0xf]  ;;  %v8449_v28 = vld [vmem:[#allocation14 + $0x428] sm:$0xf]  ;;  %v10298_v15 = vld [vmem:[#allocation14 + $0x7f8] sm:$0xf0] }
 0x234   :  { %5753 = vmatpush.bf16.msra.mxu3 %v8254_v30  ;;  %2841 = vmatpush.bf16.msra.mxu1 %v7690_v54  ;;  %v8729_v30 = vld [vmem:[#allocation14 + $0x658] sm:$0xf]  ;;  %v9233_v54 = vld [vmem:[#allocation14 + $0xa48] sm:$0xf]  ;;  %v7918_v11 = vor.u32 %v10046_v38, %v7917_v2  ;;  %v8925_v9 = vld [vmem:[#allocation14 + $0x7e0] sm:$0xf] }
 0x235   :  { %v8730_v46 = vor.u32 %v10249_v29, %v8729_v30  ;;  %v8981_v30 = vld [vmem:[#allocation14 + $0x850] sm:$0xf] }
 0x236   :  { %5738 = vmatpush.bf16.msra.mxu2 %v8058_v37  ;;  %2826 = vmatpush.bf16.msra.mxu0 %v7466_v60  ;;  %v7945_v37 = vld [vmem:[#allocation14 + $0x38] sm:$0xf]  ;;  %v2452_v60 = vadd.f32 %v10951_v49, %v2438_v32  ;;  %v2578_v49 = vadd.f32 %v2577_v51, %v1107_v45  ;;  %v10179_v51 = vld [vmem:[#allocation14 + $0x440] sm:$0xf0]  ;;  %v10312_v32 = vld [vmem:[#allocation14 + $0x868] sm:$0xf0] }
 0x237   :  { %2842 = vmatmul.bf16.vlgmr.msra.gmra.mxu1 %v10921_v19  ;;  %v11022_v19 = vadd.f32 %v10961_v26, %v2440_v63  ;;  %v10242_v26 = vld [vmem:[#allocation14 + $0x638] sm:$0xf0]  ;;  %v7946_v8 = vor.u32 %v10053_v52, %v7945_v37  ;;  %v8673_v63 = vld [vmem:[#allocation14 + $0x5e8] sm:$0xf] }
 0x238   :  { %5754 = vmatpush.bf16.msra.mxu3 %v8226_v58  ;;  %5778 = vmatpush.bf16.msrb.mxu1 %v8786_v59  ;;  %v10375_v58 = vld [vmem:[#allocation14 + $0xa60] sm:$0xf0]  ;;  %v2591_v59 = vpop.f32.mrf.mxu3  ;;  %v8702_v3 = vor.u32 %v10242_v26, %v8701_v50  ;;  %vm2848_vm14 = vcmp.gt.f32.partialorder %v2452_v60, 0.0  ;;  %v2864_v20 = vmul.f32 0.2, %v2452_v60 }
 0x239   :  { %v2872_v0 = vmul.f32 0.2, %v11022_v19  ;;  %v9234_v10 = vor.u32 %v10375_v58, %v9233_v54  ;;  %vm2856_vm15 = vcmp.gt.f32.partialorder %v11022_v19, 0.0  ;;  %v2592_v23 = vadd.f32 %v2591_v59, %v2578_v49  ;;  %v8421_v50 = vld [vmem:[#allocation14 + $0x3f0] sm:$0xf] }
 0x23a   :  { %5739 = vmatpush.bf16.msra.mxu2 %v8030_v1  ;;  %2827 = vmatpush.bf16.msra.mxu0 %v7434_v34  ;;  %v2889_v1 = vsel %vm2857_vm12, %v2510_v18, %v2873_v39  ;;  %v2619_v18 = vpop.f32.mrf.mxu1  ;;  %v2579_v21 = vpop.f32.mrf.mxu2  ;;  %v2880_v52 = vsel %vm2848_vm14, %v2452_v60, %v2864_v20  ;;  %v10172_v26 = vld [vmem:[#allocation14 + $0x408] sm:$0xf0]  ;;  %v8953_v54 = vld [vmem:[#allocation14 + $0x818] sm:$0xf]  ;;  %v10305_v60 = vld [vmem:[#allocation14 + $0x830] sm:$0xf0] }
 0x23b   :  { %v11039_v34 = vpack.c.bf16 %v2889_v1, %v2881_v13  ;;  %v2605_v22 = vpop.f32.mrf.mxu0  ;;  %v2888_v29 = vsel %vm2856_vm15, %v11022_v19, %v2872_v0  ;;  %v2580_v37 = vadd.f32 %v2579_v21, %v1107_v45  ;;  %v8450_v19 = vor.u32 %v10179_v51, %v8449_v28  ;;  %v10347_v20 = vld [vmem:[#allocation14 + $0x980] sm:$0xf0] }
 0x23c   :  { %5755 = vmatpush.bf16.msra.mxu3 %v8198_v17  ;;  %5779 = vmatpush.bf16.msrb.mxu1 %v8758_v31  ;;  %v10235_v17 = vld [vmem:[#allocation14 + $0x600] sm:$0xf0]  ;;  %v8478_v31 = vor.u32 %v10186_v6, %v8477_v5  ;;  %v2606_v39 = vadd.f32 %v2605_v22, %v2592_v23  ;;  %v11051_v62 = vpack.c.bf16 %v2888_v29, %v2880_v52  ;;  %v8393_v5 = vld [vmem:[#allocation14 + $0x3b8] sm:$0xf]  ;;  %v10165_v6 = vld [vmem:[#allocation14 + $0x3d0] sm:$0xf0] }
 0x23d   :  { %2828 = vmatmul.bf16.vlgmr.msra.gmra.mxu0 %v10925_v48  ;;  %v8506_v48 = vor.u32 %v10193_v47, %v8505_v57  ;;  %v8674_v27 = vor.u32 %v10235_v17, %v8673_v63  ;;  %v2538_v57 = vadd.f32 %v11013_v16, %v2524_v4  ;;  %v2536_v45 = vadd.f32 %v10992_v25, %v2522_v53  ;;  %v10221_v16 = vld [vmem:[#allocation14 + $0x590] sm:$0xf0]  ;;  %v8589_v63 = vld [vmem:[#allocation14 + $0x540] sm:$0xf]  ;;  %v10214_v17 = vld [vmem:[#allocation14 + $0x558] sm:$0xf0] }
 0x23e   :  { %5740 = vmatpush.bf16.msra.mxu2 %v8002_v12  ;;  %5764 = vmatpush.bf16.msrb.mxu0 %v8562_v14  ;;  %v9205_v12 = vld [vmem:[#allocation14 + $0xa10] sm:$0xf]  ;;  %v10368_v14 = vld [vmem:[#allocation14 + $0xa28] sm:$0xf0]  ;;  %v2620_v1 = vadd.f32 %v2619_v18, %v2606_v39  ;;  %v8422_v49 = vor.u32 %v10172_v26, %v8421_v50  ;;  %v8394_v21 = vor.u32 %v10165_v6, %v8393_v5  ;;  %v8365_v22 = vld [vmem:[#allocation14 + $0x380] sm:$0xf] }
 0x23f   :  { %v9206_v40 = vor.u32 %v10368_v14, %v9205_v12  ;;  %v2552_v58 = vadd.f32 %v11024_v7, %v2538_v57  ;;  %v2550_v2 = vadd.f32 %v11003_v55, %v2536_v45  ;;  %v8954_v7 = vor.u32 %v10305_v60, %v8953_v54  ;;  %v9121_v14 = vld [vmem:[#allocation14 + $0x968] sm:$0xf]  ;;  %v10158_v23 = vld [vmem:[#allocation14 + $0x398] sm:$0xf0]  ;;  %v10291_v28 = vld [vmem:[#allocation14 + $0x7c0] sm:$0xf0] }
 0x240   :  { %5756 = vmatpush.bf16.msra.mxu3 %v8170_v35  ;;  %5780 = vmatpush.bf16.msrb.mxu1 %v8730_v46  ;;  %v8645_v35 = vld [vmem:[#allocation14 + $0x5b0] sm:$0xf]  ;;  %v8982_v46 = vor.u32 %v10312_v32, %v8981_v30  ;;  %v2593_v56 = vpop.f32.mrf.mxu3  ;;  %v2867_v55 = vmul.f32 0.2, %v2620_v1  ;;  %vm2851_vm0 = vcmp.gt.f32.partialorder %v2620_v1, 0.0  ;;  %v9122_v51 = vor.u32 %v10347_v20, %v9121_v14 }
 0x241   :  { %v8646_v47 = vor.u32 %v10228_v36, %v8645_v35  ;;  %v2594_v59 = vadd.f32 %v2593_v56, %v2580_v37  ;;  %v2564_v4 = vadd.f32 %v10997_v44, %v2550_v2  ;;  %v9093_v29 = vld [vmem:[#allocation14 + $0x930] sm:$0xf]  ;;  %v10340_v53 = vld [vmem:[#allocation14 + $0x948] sm:$0xf0]  ;;  %v8366_v36 = vor.u32 %v10158_v23, %v8365_v22  ;;  %v10431_v37 = vld [vmem:[#allocation14 + $0xc20] sm:$0xf0] }
 0x242   :  { %5741 = vmatpush.bf16.msra.mxu2 %v7974_v41  ;;  %5765 = vmatpush.bf16.msrb.mxu0 %v8534_v42  ;;  %v9177_v41 = vld [vmem:[#allocation14 + $0x9d8] sm:$0xf]  ;;  %v10361_v42 = vld [vmem:[#allocation14 + $0x9f0] sm:$0xf0]  ;;  %v2621_v13 = vpop.f32.mrf.mxu1  ;;  %v2883_v30 = vsel %vm2851_vm0, %v2620_v1, %v2867_v55  ;;  %v8869_v52 = vld [vmem:[#allocation14 + $0x770] sm:$0xf] }
 0x243   :  { %v9178_v0 = vor.u32 %v10361_v42, %v9177_v41  ;;  %v2607_v38 = vpop.f32.mrf.mxu0  ;;  %v2866_v32 = vmul.f32 0.2, %v2564_v4  ;;  %vm2850_vm3 = vcmp.gt.f32.partialorder %v2564_v4, 0.0  ;;  %v10284_v57 = vld [vmem:[#allocation14 + $0x788] sm:$0xf0] }
 0x244   :  { %5757 = vmatpush.bf16.msra.mxu3 %v8142_v61  ;;  %5781 = vmatpush.bf16.msrb.mxu1 %v8702_v3  ;;  %v8617_v61 = vld [vmem:[#allocation14 + $0x578] sm:$0xf]  ;;  %v2608_v25 = vadd.f32 %v2607_v38, %v2594_v59  ;;  %v9429_v50 = vld [vmem:[#allocation14 + $0xbd0] sm:$0xf]  ;;  %v10424_v26 = vld [vmem:[#allocation14 + $0xbe8] sm:$0xf0]  ;;  %v8870_v56 = vor.u32 %v10284_v57, %v8869_v52 }
 0x245   :  { %v8618_v3 = vor.u32 %v10221_v16, %v8617_v61  ;;  %v2882_v54 = vsel %vm2850_vm3, %v2564_v4, %v2866_v32  ;;  %v8841_v60 = vld [vmem:[#allocation14 + $0x738] sm:$0xf]  ;;  %v9430_v61 = vor.u32 %v10424_v26, %v9429_v50  ;;  %v10277_v16 = vld [vmem:[#allocation14 + $0x750] sm:$0xf0]  ;;  %v10326_v2 = vld [vmem:[#allocation14 + $0x8d8] sm:$0xf0] }
 0x246   :  { %5742 = vmatpush.bf16.msra.mxu2 %v7946_v8  ;;  %5766 = vmatpush.bf16.msrb.mxu0 %v8506_v48  ;;  %v9149_v8 = vld [vmem:[#allocation14 + $0x9a0] sm:$0xf]  ;;  %v10354_v48 = vld [vmem:[#allocation14 + $0x9b8] sm:$0xf0]  ;;  %v2622_v12 = vadd.f32 %v2621_v13, %v2608_v25  ;;  %v9401_v1 = vld [vmem:[#allocation14 + $0xb98] sm:$0xf]  ;;  %v8842_v25 = vor.u32 %v10277_v16, %v8841_v60 }
 0x247   :  { %5758 = vmatmul.bf16.vlgmr.msra.gmra.mxu3 %v11039_v34  ;;  %v9150_v18 = vor.u32 %v10354_v48, %v9149_v8  ;;  %v10417_v59 = vld [vmem:[#allocation14 + $0xbb0] sm:$0xf0]  ;;  %v1108_v8 = vperm.slane %v10979_v43, 4  ;;  %v9037_v48 = vld [vmem:[#allocation14 + $0x8c0] sm:$0xf] }
 0x248   :  { %5806 = vmatpush.bf16.msrb.mxu3 %v9234_v10  ;;  %5782 = vmatpush.bf16.msrb.mxu1 %v8674_v27  ;;  %v2566_v10 = vadd.f32 %v11019_v33, %v2552_v58  ;;  %vm2859_vm1 = vcmp.gt.f32.partialorder %v2622_v12, 0.0  ;;  %v8926_v33 = vor.u32 %v10298_v15, %v8925_v9  ;;  %v8897_v27 = vld [vmem:[#allocation14 + $0x7a8] sm:$0xf]  ;;  %v10148_v38 = vld [vmem:[#allocation14 + $0x34c] sm:$0xf]  ;;  %v9038_v9 = vor.u32 %v10326_v2, %v9037_v48 }
 0x249   :  { %v8898_v39 = vor.u32 %v10291_v28, %v8897_v27  ;;  %v8813_v5 = vld [vmem:[#allocation14 + $0x700] sm:$0xf]  ;;  %v10270_v6 = vld [vmem:[#allocation14 + $0x718] sm:$0xf0]  ;;  %v10092_v13 = vld [vmem:[#allocation14 + $0x18c] sm:$0xf] }
 0x24a   :  { %5743 = vmatpush.bf16.msra.mxu2 %v7918_v11  ;;  %5767 = vmatpush.bf16.msrb.mxu0 %v8478_v31  ;;  %v2875_v11 = vmul.f32 0.2, %v2622_v12  ;;  %v8590_v31 = vor.u32 %v10214_v17, %v8589_v63  ;;  %vm2858_vm2 = vcmp.gt.f32.partialorder %v2566_v10, 0.0  ;;  %v8115_v15 = vld [vmem:[#allocation14 + $0x1a4] sm:$0xf0]  ;;  %v8814_v20 = vor.u32 %v10270_v6, %v8813_v5 }
 0x24b   :  { %v10141_v17 = vld [vmem:[#allocation14 + $0x314] sm:$0xf]  ;;  %v9373_v55 = vld [vmem:[#allocation14 + $0xb60] sm:$0xf]  ;;  %v8087_v23 = vld [vmem:[#allocation14 + $0x16c] sm:$0xf0] }
 0x24c   :  { %5807 = vmatpush.bf16.msrb.mxu3 %v9206_v40  ;;  %5783 = vmatpush.bf16.msrb.mxu1 %v8646_v47  ;;  %v2891_v44 = vsel %vm2859_vm1, %v2622_v12, %v2875_v11  ;;  %v9457_v40 = vld [vmem:[#allocation14 + $0xc08] sm:$0xf]  ;;  %v10333_v47 = vld [vmem:[#allocation14 + $0x910] sm:$0xf0]  ;;  %v10410_v12 = vld [vmem:[#allocation14 + $0xb78] sm:$0xf0]  ;;  %v8118_v11 = vor.u32 %v10092_v13, %v8115_v15 }
 0x24d   :  { %5744 = vmatmul.bf16.vlgmr.msra.gmra.mxu2 %v11051_v62  ;;  %v11060_v35 = vpack.c.bf16 %v2891_v44, %v2883_v30  ;;  %v9458_v41 = vor.u32 %v10431_v37, %v9457_v40  ;;  %v9374_v4 = vor.u32 %v10410_v12, %v9373_v55  ;;  %v10134_v27 = vld [vmem:[#allocation14 + $0x2dc] sm:$0xf]  ;;  %v8283_v28 = vld [vmem:[#allocation14 + $0x2f4] sm:$0xf0]  ;;  %v10403_v30 = vld [vmem:[#allocation14 + $0xb40] sm:$0xf0] }
 0x24e   :  { %5792 = vmatpush.bf16.msrb.mxu2 %v9010_v24  ;;  %5768 = vmatpush.bf16.msrb.mxu0 %v8450_v19  ;;  %v2874_v24 = vmul.f32 0.2, %v2566_v10  ;;  %v9094_v19 = vor.u32 %v10340_v53, %v9093_v29  ;;  %v8059_v40 = vld [vmem:[#allocation14 + $0x134] sm:$0xf0]  ;;  %v8286_v37 = vor.u32 %v10134_v27, %v8283_v28  ;;  %v9317_v52 = vld [vmem:[#allocation14 + $0xaf0] sm:$0xf] }
 0x24f   :  { %v10396_v57 = vld [vmem:[#allocation14 + $0xb08] sm:$0xf0]  ;;  %v10113_v5 = vld [vmem:[#allocation14 + $0x234] sm:$0xf]  ;;  %v8199_v6 = vld [vmem:[#allocation14 + $0x24c] sm:$0xf0] }
 0x250   :  { %5808 = vmatpush.bf16.msrb.mxu3 %v9178_v0  ;;  %5784 = vmatpush.bf16.msrb.mxu1 %v8618_v3  ;;  %v2890_v42 = vsel %vm2858_vm2, %v2566_v10, %v2874_v24  ;;  %v2633_v45 = vpop.f32.mrf.mxu2  ;;  %v2647_v3 = vpop.f32.mrf.mxu3  ;;  %v10480_v27 = vld [vmem:[#allocation14 + $0xda8] sm:$0xf0]  ;;  %v10197_v28 = vld [vmem:[#allocation14 + $0x4d4] sm:$0xf] }
 0x251   :  { %v11064_v58 = vpack.c.bf16 %v2890_v42, %v2882_v54  ;;  %v2634_v10 = vadd.f32 %v2633_v45, %v1108_v8  ;;  %v8255_v42 = vld [vmem:[#allocation14 + $0x2bc] sm:$0xf0]  ;;  %v10071_v45 = vld [vmem:[#allocation14 + $0xe4] sm:$0xf] }
 0x252   :  { %5793 = vmatpush.bf16.msrb.mxu2 %v8982_v46  ;;  %5769 = vmatpush.bf16.msrb.mxu0 %v8422_v49  ;;  %v9065_v46 = vld [vmem:[#allocation14 + $0x8f8] sm:$0xf]  ;;  %v8339_v49 = vld [vmem:[#allocation14 + $0x364] sm:$0xf0] }
 0x253   :  { %v9066_v0 = vor.u32 %v10333_v47, %v9065_v46  ;;  %v8342_v63 = vor.u32 %v10148_v38, %v8339_v49  ;;  %v9318_v47 = vor.u32 %v10396_v57, %v9317_v52  ;;  %v10064_v49 = vld [vmem:[#allocation14 + $0xac] sm:$0xf]  ;;  %v10190_v52 = vld [vmem:[#allocation14 + $0x49c] sm:$0xf]  ;;  %v1109_v57 = vperm.slane %v10979_v43, 5 }
 0x254   :  { %5809 = vmatpush.bf16.msrb.mxu3 %v9150_v18  ;;  %5785 = vmatpush.bf16.msrb.mxu1 %v8590_v31  ;;  %v8311_v18 = vld [vmem:[#allocation14 + $0x32c] sm:$0xf0]  ;;  %v2675_v14 = vpop.f32.mrf.mxu1  ;;  %v10085_v31 = vld [vmem:[#allocation14 + $0x154] sm:$0xf] }
 0x255   :  { %v8314_v24 = vor.u32 %v10141_v17, %v8311_v18  ;;  %v8090_v32 = vor.u32 %v10085_v31, %v8087_v23  ;;  %v9681_v17 = vld [vmem:[#allocation14 + $0xdc8] sm:$0xf]  ;;  %v10487_v18 = vld [vmem:[#allocation14 + $0xde0] sm:$0xf0]  ;;  %v10106_v31 = vld [vmem:[#allocation14 + $0x1fc] sm:$0xf] }
 0x256   :  { %5794 = vmatpush.bf16.msrb.mxu2 %v8954_v7  ;;  %5770 = vmatpush.bf16.msrb.mxu0 %v8394_v21  ;;  %v9402_v7 = vor.u32 %v10417_v59, %v9401_v1  ;;  %v9289_v1 = vld [vmem:[#allocation14 + $0xab8] sm:$0xf]  ;;  %v10389_v59 = vld [vmem:[#allocation14 + $0xad0] sm:$0xf0] }
 0x257   :  { %5786 = vmatmul.bf16.vlgmr.msrb.gmra.mxu1 %v11060_v35  ;;  %v9290_v2 = vor.u32 %v10389_v59, %v9289_v1  ;;  %v8171_v23 = vld [vmem:[#allocation14 + $0x214] sm:$0xf0]  ;;  %v10466_v1 = vld [vmem:[#allocation14 + $0xd38] sm:$0xf0]  ;;  %v10183_v59 = vld [vmem:[#allocation14 + $0x464] sm:$0xf] }
 0x258   :  { %5810 = vmatpush.bf16.msrb.mxu3 %v9122_v51  ;;  %v2635_v21 = vpop.f32.mrf.mxu2  ;;  %v9345_v51 = vld [vmem:[#allocation14 + $0xb28] sm:$0xf] }
 0x259   :  { %v2636_v44 = vadd.f32 %v2635_v21, %v1108_v8  ;;  %v9346_v53 = vor.u32 %v10403_v30, %v9345_v51  ;;  %v10057_v21 = vld [vmem:[#allocation14 + $0x74] sm:$0xf] }
 0x25a   :  { %5795 = vmatpush.bf16.msrb.mxu2 %v8926_v33  ;;  %5771 = vmatpush.bf16.msrb.mxu0 %v8366_v36  ;;  %v2661_v22 = vpop.f32.mrf.mxu0  ;;  %v2648_v33 = vadd.f32 %v2647_v3, %v2634_v10  ;;  %v10078_v36 = vld [vmem:[#allocation14 + $0x11c] sm:$0xf] }
 0x25b   :  { %v8062_v26 = vor.u32 %v10078_v36, %v8059_v40  ;;  %v10382_v10 = vld [vmem:[#allocation14 + $0xa98] sm:$0xf0]  ;;  %v8174_v36 = vor.u32 %v10106_v31, %v8171_v23  ;;  %v10099_v40 = vld [vmem:[#allocation14 + $0x1c4] sm:$0xf]  ;;  %v10169_v31 = vld [vmem:[#allocation14 + $0x3f4] sm:$0xf] }
 0x25c   :  { %5811 = vmatpush.bf16.msrb.mxu3 %v9094_v19  ;;  %v2662_v29 = vadd.f32 %v2661_v22, %v2648_v33  ;;  %v2677_v16 = vpop.f32.mrf.mxu1  ;;  %v7975_v22 = vld [vmem:[#allocation14 + $0x8c] sm:$0xf0] }
 0x25d   :  { %5772 = vmatmul.bf16.vlgmr.msrb.gmra.mxu0 %v11064_v58  ;;  %v7978_v30 = vor.u32 %v10057_v21, %v7975_v22  ;;  %v9541_v21 = vld [vmem:[#allocation14 + $0xcb0] sm:$0xf] }
 0x25e   :  { %5796 = vmatpush.bf16.msrb.mxu2 %v8898_v39  ;;  %5820 = vmatpush.bf16.msra.mxu0 %v9458_v41  ;;  %v10127_v39 = vld [vmem:[#allocation14 + $0x2a4] sm:$0xf]  ;;  %v2649_v41 = vpop.f32.mrf.mxu3  ;;  %v2676_v19 = vadd.f32 %v2675_v14, %v2662_v29  ;;  %v9682_v14 = vor.u32 %v10487_v18, %v9681_v17  ;;  %v8423_v23 = vld [vmem:[#allocation14 + $0x40c] sm:$0xf0] }
 0x25f   :  { %v2650_v46 = vadd.f32 %v2649_v41, %v2636_v44  ;;  %v8258_v60 = vor.u32 %v10127_v39, %v8255_v42  ;;  %v10050_v44 = vld [vmem:[#allocation14 + $0x3c] sm:$0xf]  ;;  %v9625_v41 = vld [vmem:[#allocation14 + $0xd58] sm:$0xf]  ;;  %v10473_v42 = vld [vmem:[#allocation14 + $0xd70] sm:$0xf0] }
 0x260   :  { %5812 = vmatpush.bf16.msrb.mxu3 %v9066_v0  ;;  %v8227_v0 = vld [vmem:[#allocation14 + $0x284] sm:$0xf0]  ;;  %v2868_v8 = vmul.f32 0.2, %v2676_v19  ;;  %vm2852_vm4 = vcmp.gt.f32.partialorder %v2676_v19, 0.0  ;;  %5834 = vmatpush.bf16.msra.mxu1 %v9682_v14 }
 0x261   :  { %v10302_v14 = vld [vmem:[#allocation14 + $0x81c] sm:$0xf] }
 0x262   :  { %5797 = vmatpush.bf16.msrb.mxu2 %v8870_v56  ;;  %5821 = vmatpush.bf16.msra.mxu0 %v9430_v61  ;;  %v2663_v50 = vpop.f32.mrf.mxu0  ;;  %v8031_v56 = vld [vmem:[#allocation14 + $0xfc] sm:$0xf0]  ;;  %v10120_v61 = vld [vmem:[#allocation14 + $0x26c] sm:$0xf]  ;;  %v2884_v13 = vsel %vm2852_vm4, %v2676_v19, %v2868_v8  ;;  %v9626_v19 = vor.u32 %v10473_v42, %v9625_v41  ;;  %v8899_v41 = vld [vmem:[#allocation14 + $0x7c4] sm:$0xf0] }
 0x263   :  { %v2664_v54 = vadd.f32 %v2663_v50, %v2650_v46  ;;  %v8034_v38 = vor.u32 %v10071_v45, %v8031_v56  ;;  %v8230_v3 = vor.u32 %v10120_v61, %v8227_v0  ;;  %v8507_v46 = vld [vmem:[#allocation14 + $0x4b4] sm:$0xf0]  ;;  %v9011_v61 = vld [vmem:[#allocation14 + $0x8a4] sm:$0xf0]  ;;  %v9597_v0 = vld [vmem:[#allocation14 + $0xd20] sm:$0xf] }
 0x264   :  { %5813 = vmatpush.bf16.msrb.mxu3 %v9038_v9  ;;  %v9261_v9 = vld [vmem:[#allocation14 + $0xa80] sm:$0xf]  ;;  %v8510_v50 = vor.u32 %v10190_v52, %v8507_v46  ;;  %v9598_v8 = vor.u32 %v10466_v1, %v9597_v0  ;;  %v8395_v52 = vld [vmem:[#allocation14 + $0x3d4] sm:$0xf0] }
 0x265   :  { %v2678_v48 = vadd.f32 %v2677_v16, %v2664_v54  ;;  %v7919_v54 = vld [vmem:[#allocation14 + $0x1c] sm:$0xf0] }
 0x266   :  { %5798 = vmatpush.bf16.msrb.mxu2 %v8842_v25  ;;  %5822 = vmatpush.bf16.msra.mxu0 %v9402_v7  ;;  %v8003_v25 = vld [vmem:[#allocation14 + $0xc4] sm:$0xf0]  ;;  %v8367_v0 = vld [vmem:[#allocation14 + $0x39c] sm:$0xf0] }
 0x267   :  { %vm2860_vm5 = vcmp.gt.f32.partialorder %v2678_v48, 0.0  ;;  %v2876_v7 = vmul.f32 0.2, %v2678_v48  ;;  %v8006_v12 = vor.u32 %v10064_v49, %v8003_v25 }
 0x268   :  { %5862 = vmatpush.bf16.msra.mxu3 %v8342_v63  ;;  %v9262_v63 = vor.u32 %v10382_v10, %v9261_v9  ;;  %v9569_v9 = vld [vmem:[#allocation14 + $0xce8] sm:$0xf]  ;;  %v10459_v10 = vld [vmem:[#allocation14 + $0xd00] sm:$0xf0] }
 0x269   :  { %v2892_v15 = vsel %vm2860_vm5, %v2678_v48, %v2876_v7  ;;  %v8479_v48 = vld [vmem:[#allocation14 + $0x47c] sm:$0xf0] }
 0x26a   :  { %5799 = vmatpush.bf16.msrb.mxu2 %v8814_v20  ;;  %5823 = vmatpush.bf16.msra.mxu0 %v9374_v4  ;;  %v11068_v55 = vpack.c.bf16 %v2892_v15, %v2884_v13  ;;  %v10204_v20 = vld [vmem:[#allocation14 + $0x50c] sm:$0xf]  ;;  %v8563_v4 = vld [vmem:[#allocation14 + $0x524] sm:$0xf0]  ;;  %v2703_v56 = vpop.f32.mrf.mxu3  ;;  %v8482_v49 = vor.u32 %v10183_v59, %v8479_v48  ;;  %v9570_v15 = vor.u32 %v10459_v10, %v9569_v9 }
 0x26b   :  { %v8566_v33 = vor.u32 %v10204_v20, %v8563_v4  ;;  %v10176_v13 = vld [vmem:[#allocation14 + $0x42c] sm:$0xf]  ;;  %v8955_v20 = vld [vmem:[#allocation14 + $0x834] sm:$0xf0] }
 0x26c   :  { %5863 = vmatpush.bf16.msra.mxu3 %v8314_v24  ;;  %v9653_v24 = vld [vmem:[#allocation14 + $0xd90] sm:$0xf] }
 0x26d   :  { %5800 = vmatmul.bf16.vlgmr.msrb.gmra.mxu2 %v11068_v55  ;;  %v9654_v29 = vor.u32 %v10480_v27, %v9653_v24 }
 0x26e   :  { %5848 = vmatpush.bf16.msra.mxu2 %v8118_v11  ;;  %5824 = vmatpush.bf16.msra.mxu0 %v9346_v53  ;;  %v8202_v11 = vor.u32 %v10113_v5, %v8199_v6  ;;  %v8535_v53 = vld [vmem:[#allocation14 + $0x4ec] sm:$0xf0] }
 0x26f   :  { %v8538_v39 = vor.u32 %v10197_v28, %v8535_v53  ;;  %5835 = vmatpush.bf16.msra.mxu1 %v9654_v29  ;;  %v8983_v5 = vld [vmem:[#allocation14 + $0x86c] sm:$0xf0]  ;;  %v8927_v29 = vld [vmem:[#allocation14 + $0x7fc] sm:$0xf0] }
 0x270   :  { %5864 = vmatpush.bf16.msra.mxu3 %v8286_v37  ;;  %v2689_v51 = vpop.f32.mrf.mxu2  ;;  %v8143_v37 = vld [vmem:[#allocation14 + $0x1dc] sm:$0xf0] }
 0x271   :  { %v8146_v45 = vor.u32 %v10099_v40, %v8143_v37  ;;  %v2690_v16 = vadd.f32 %v2689_v51, %v1109_v57  ;;  %v8426_v51 = vor.u32 %v10169_v31, %v8423_v23  ;;  %v10162_v40 = vld [vmem:[#allocation14 + $0x3bc] sm:$0xf]  ;;  %v10267_v31 = vld [vmem:[#allocation14 + $0x704] sm:$0xf]  ;;  %v8815_v23 = vld [vmem:[#allocation14 + $0x71c] sm:$0xf0] }
 0x272   :  { %5849 = vmatpush.bf16.msra.mxu2 %v8090_v32  ;;  %5825 = vmatpush.bf16.msra.mxu0 %v9318_v47  ;;  %v7947_v32 = vld [vmem:[#allocation14 + $0x54] sm:$0xf0]  ;;  %v2705_v22 = vpop.f32.mrf.mxu3 }
 0x273   :  { %v7950_v47 = vor.u32 %v10050_v44, %v7947_v32  ;;  %5836 = vmatpush.bf16.msra.mxu1 %v9626_v19  ;;  %v2704_v6 = vadd.f32 %v2703_v56, %v2690_v16  ;;  %v10295_v44 = vld [vmem:[#allocation14 + $0x7e4] sm:$0xf]  ;;  %v9513_v32 = vld [vmem:[#allocation14 + $0xc78] sm:$0xf] }
 0x274   :  { %5865 = vmatpush.bf16.msra.mxu3 %v8258_v60  ;;  %v10316_v60 = vld [vmem:[#allocation14 + $0x88c] sm:$0xf]  ;;  %v8930_v46 = vor.u32 %v10295_v44, %v8927_v29  ;;  %v10155_v16 = vld [vmem:[#allocation14 + $0x384] sm:$0xf] }
 0x275   :  { %v10239_v29 = vld [vmem:[#allocation14 + $0x624] sm:$0xf] }
 0x276   :  { %5850 = vmatpush.bf16.msra.mxu2 %v8062_v26  ;;  %5826 = vmatpush.bf16.msra.mxu0 %v9290_v2  ;;  %v10043_v26 = vld [vmem:[#allocation14 + $0x4] sm:$0xf]  ;;  %v2731_v2 = vpop.f32.mrf.mxu1 }
 0x277   :  { %v7922_v43 = vor.u32 %v10043_v26, %v7919_v54  ;;  %5837 = vmatpush.bf16.msra.mxu1 %v9598_v8  ;;  %v8398_v26 = vor.u32 %v10162_v40, %v8395_v52  ;;  %v8871_v8 = vld [vmem:[#allocation14 + $0x78c] sm:$0xf0] }
 0x278   :  { %5866 = vmatpush.bf16.msra.mxu3 %v8230_v3  ;;  %v2691_v25 = vpop.f32.mrf.mxu2  ;;  %v10309_v3 = vld [vmem:[#allocation14 + $0x854] sm:$0xf] }
 0x279   :  { %v2692_v17 = vadd.f32 %v2691_v25, %v1109_v57  ;;  %v10365_v25 = vld [vmem:[#allocation14 + $0xa14] sm:$0xf] }
 0x27a   :  { %5851 = vmatpush.bf16.msra.mxu2 %v8034_v38  ;;  %5827 = vmatpush.bf16.msra.mxu0 %v9262_v63  ;;  %v9014_v38 = vor.u32 %v10316_v60, %v9011_v61  ;;  %v2717_v7 = vpop.f32.mrf.mxu0  ;;  %v8451_v63 = vld [vmem:[#allocation14 + $0x444] sm:$0xf0]  ;;  %v10438_v61 = vld [vmem:[#allocation14 + $0xc58] sm:$0xf0] }
 0x27b   :  { %v2718_v18 = vadd.f32 %v2717_v7, %v2704_v6  ;;  %v8454_v4 = vor.u32 %v10176_v13, %v8451_v63  ;;  %5838 = vmatpush.bf16.msra.mxu1 %v9570_v15  ;;  %v2706_v27 = vadd.f32 %v2705_v22, %v2692_v17  ;;  %v9207_v7 = vld [vmem:[#allocation14 + $0xa2c] sm:$0xf0]  ;;  %v10253_v6 = vld [vmem:[#allocation14 + $0x694] sm:$0xf]  ;;  %v10274_v13 = vld [vmem:[#allocation14 + $0x73c] sm:$0xf] }
 0x27c   :  { %5867 = vmatpush.bf16.msra.mxu3 %v8202_v11  ;;  %v8958_v11 = vor.u32 %v10302_v14, %v8955_v20  ;;  %v9210_v10 = vor.u32 %v10365_v25, %v9207_v7  ;;  %v8759_v15 = vld [vmem:[#allocation14 + $0x6ac] sm:$0xf0]  ;;  %v8843_v17 = vld [vmem:[#allocation14 + $0x754] sm:$0xf0]  ;;  %v10246_v20 = vld [vmem:[#allocation14 + $0x65c] sm:$0xf] }
 0x27d   :  { %v2732_v24 = vadd.f32 %v2731_v2, %v2718_v18  ;;  %v8370_v2 = vor.u32 %v10155_v16, %v8367_v0  ;;  %v10358_v18 = vld [vmem:[#allocation14 + $0x9dc] sm:$0xf]  ;;  %v8762_v14 = vor.u32 %v10253_v6, %v8759_v15 }
 0x27e   :  { %5852 = vmatpush.bf16.msra.mxu2 %v8006_v12  ;;  %5876 = vmatpush.bf16.msrb.mxu0 %v8566_v33  ;;  %v8986_v12 = vor.u32 %v10309_v3, %v8983_v5  ;;  %v10452_v33 = vld [vmem:[#allocation14 + $0xcc8] sm:$0xf0]  ;;  %v2733_v37 = vpop.f32.mrf.mxu1  ;;  %v8787_v3 = vld [vmem:[#allocation14 + $0x6e4] sm:$0xf0]  ;;  %v10330_v7 = vld [vmem:[#allocation14 + $0x8fc] sm:$0xf] }
 0x27f   :  { %v9542_v28 = vor.u32 %v10452_v33, %v9541_v21  ;;  %v2869_v57 = vmul.f32 0.2, %v2732_v24  ;;  %vm2853_vm6 = vcmp.gt.f32.partialorder %v2732_v24, 0.0  ;;  %v11076_v21 = vld [vmem:[#allocation13] sm:$0xff] }
 0x280   :  { %5868 = vmatpush.bf16.msra.mxu3 %v8174_v36  ;;  %v10445_v36 = vld [vmem:[#allocation14 + $0xc90] sm:$0xf0]  ;;  %v1110_v22 = vperm.slane %v11076_v21, 6 }
 0x281   :  { %5839 = vmatpush.bf16.msra.mxu1 %v9542_v28  ;;  %v9514_v42 = vor.u32 %v10445_v36, %v9513_v32  ;;  %v2885_v1 = vsel %vm2853_vm6, %v2732_v24, %v2869_v57  ;;  %v10351_v24 = vld [vmem:[#allocation14 + $0x9a4] sm:$0xf]  ;;  %v8818_v36 = vor.u32 %v10267_v31, %v8815_v23  ;;  %v8093_v57 = vld [vmem:[#allocation14 + $0x158] sm:$0xf]  ;;  %v8009_v31 = vld [vmem:[#allocation14 + $0xb0] sm:$0xf] }
 0x282   :  { %5853 = vmatpush.bf16.msra.mxu2 %v7978_v30  ;;  %5877 = vmatpush.bf16.msrb.mxu0 %v8538_v39  ;;  %v2719_v30 = vpop.f32.mrf.mxu0  ;;  %v10288_v39 = vld [vmem:[#allocation14 + $0x7ac] sm:$0xf] }
 0x283   :  { %v2720_v53 = vadd.f32 %v2719_v30, %v2706_v27  ;;  %v8902_v56 = vor.u32 %v10288_v39, %v8899_v41  ;;  %v9151_v27 = vld [vmem:[#allocation14 + $0x9bc] sm:$0xf0]  ;;  %v10096_v30 = vld [vmem:[#allocation14 + $0x1a8] sm:$0xf0]  ;;  %v9123_v41 = vld [vmem:[#allocation14 + $0x984] sm:$0xf0] }
 0x284   :  { %5869 = vmatpush.bf16.msra.mxu3 %v8146_v45  ;;  %v9485_v45 = vld [vmem:[#allocation14 + $0xc40] sm:$0xf]  ;;  %v9154_v40 = vor.u32 %v10351_v24, %v9151_v27  ;;  %v10344_v39 = vld [vmem:[#allocation14 + $0x96c] sm:$0xf] }
 0x285   :  { %v2734_v19 = vadd.f32 %v2733_v37, %v2720_v53  ;;  %5840 = vmatpush.bf16.msra.mxu1 %v9514_v42  ;;  %v9486_v48 = vor.u32 %v10438_v61, %v9485_v45  ;;  %v8703_v53 = vld [vmem:[#allocation14 + $0x63c] sm:$0xf0]  ;;  %v9126_v45 = vor.u32 %v10344_v39, %v9123_v41  ;;  %v9095_v61 = vld [vmem:[#allocation14 + $0x94c] sm:$0xf0] }
 0x286   :  { %5854 = vmatpush.bf16.msra.mxu2 %v7950_v47  ;;  %5878 = vmatpush.bf16.msrb.mxu0 %v8510_v50  ;;  %v10372_v47 = vld [vmem:[#allocation14 + $0xa4c] sm:$0xf]  ;;  %v9235_v50 = vld [vmem:[#allocation14 + $0xa64] sm:$0xf0]  ;;  %v8706_v42 = vor.u32 %v10239_v29, %v8703_v53 }
 0x287   :  { %vm2861_vm7 = vcmp.gt.f32.partialorder %v2734_v19, 0.0  ;;  %v2877_v54 = vmul.f32 0.2, %v2734_v19  ;;  %v9238_v60 = vor.u32 %v10372_v47, %v9235_v50  ;;  %v10232_v50 = vld [vmem:[#allocation14 + $0x5ec] sm:$0xf] }
 0x289   :  { %v2893_v59 = vsel %vm2861_vm7, %v2734_v19, %v2877_v54  ;;  %5841 = vmatpush.bf16.msra.mxu1 %v9486_v48  ;;  %v10089_v19 = vld [vmem:[#allocation14 + $0x170] sm:$0xf0]  ;;  %v8647_v48 = vld [vmem:[#allocation14 + $0x5cc] sm:$0xf0] }
 0x28a   :  { %5855 = vmatpush.bf16.msra.mxu2 %v7922_v43  ;;  %5879 = vmatpush.bf16.msrb.mxu0 %v8482_v49  ;;  %v10281_v43 = vld [vmem:[#allocation14 + $0x774] sm:$0xf]  ;;  %v11073_v49 = vpack.c.bf16 %v2893_v59, %v2885_v1  ;;  %v2759_v44 = vpop.f32.mrf.mxu3  ;;  %v8065_v59 = vld [vmem:[#allocation14 + $0x120] sm:$0xf] }
 0x28b   :  { %v8874_v9 = vor.u32 %v10281_v43, %v8871_v8  ;;  %v10082_v43 = vld [vmem:[#allocation14 + $0x138] sm:$0xf0]  ;;  %v10225_v8 = vld [vmem:[#allocation14 + $0x5b4] sm:$0xf] }
 0x28c   :  { %5814 = vmatmul.bf16.vlgmr.msrb.gmra.mxu3 %v11073_v49  ;;  %v8066_v25 = vor.u32 %v10082_v43, %v8065_v59  ;;  %v8289_v59 = vld [vmem:[#allocation14 + $0x2e0] sm:$0xf]  ;;  %v10138_v43 = vld [vmem:[#allocation14 + $0x2f8] sm:$0xf0] }
 0x28d   :  { %5856 = vmatmul.bf16.vlgmr.msra.gmra.mxu2 %v11051_v62  ;;  %5918 = vmatpush.bf16.msrb.mxu3 %v9238_v60  ;;  %v10337_v60 = vld [vmem:[#allocation14 + $0x934] sm:$0xf] }
 0x28e   :  { %5904 = vmatpush.bf16.msrb.mxu2 %v9014_v38  ;;  %5880 = vmatpush.bf16.msrb.mxu0 %v8454_v4  ;;  %v10260_v38 = vld [vmem:[#allocation14 + $0x6cc] sm:$0xf]  ;;  %v8731_v4 = vld [vmem:[#allocation14 + $0x674] sm:$0xf0] }
 0x28f   :  { %v8790_v5 = vor.u32 %v10260_v38, %v8787_v3  ;;  %v8734_v28 = vor.u32 %v10246_v20, %v8731_v4  ;;  %v9067_v3 = vld [vmem:[#allocation14 + $0x914] sm:$0xf0]  ;;  %v9039_v20 = vld [vmem:[#allocation14 + $0x8dc] sm:$0xf0] }
 0x290   :  { %v2745_v63 = vpop.f32.mrf.mxu2 }
 0x291   :  { %5890 = vmatpush.bf16.msrb.mxu1 %v8790_v5  ;;  %5919 = vmatpush.bf16.msrb.mxu3 %v9210_v10  ;;  %v2746_v32 = vadd.f32 %v2745_v63, %v1110_v22  ;;  %v8650_v5 = vor.u32 %v10225_v8, %v8647_v48  ;;  %v8037_v10 = vld [vmem:[#allocation14 + $0xe8] sm:$0xf]  ;;  %v10218_v63 = vld [vmem:[#allocation14 + $0x57c] sm:$0xf]  ;;  %v1111_v8 = vperm.slane %v11076_v21, 7 }
 0x292   :  { %5905 = vmatpush.bf16.msrb.mxu2 %v8986_v12  ;;  %5881 = vmatpush.bf16.msrb.mxu0 %v8426_v51  ;;  %v9179_v12 = vld [vmem:[#allocation14 + $0x9f4] sm:$0xf0]  ;;  %v8121_v51 = vld [vmem:[#allocation14 + $0x190] sm:$0xf]  ;;  %v2761_v38 = vpop.f32.mrf.mxu3 }
 0x293   :  { %v9182_v33 = vor.u32 %v10358_v18, %v9179_v12  ;;  %v8122_v37 = vor.u32 %v10096_v30, %v8121_v51  ;;  %v2760_v54 = vadd.f32 %v2759_v44, %v2746_v32  ;;  %v9070_v12 = vor.u32 %v10330_v7, %v9067_v3  ;;  %v8345_v51 = vld [vmem:[#allocation14 + $0x350] sm:$0xf]  ;;  %v10152_v30 = vld [vmem:[#allocation14 + $0x368] sm:$0xf0]  ;;  %v10211_v44 = vld [vmem:[#allocation14 + $0x544] sm:$0xf] }
 0x294   :  { %v2787_v52 = vpop.f32.mrf.mxu1  ;;  %v8591_v32 = vld [vmem:[#allocation14 + $0x55c] sm:$0xf0]  ;;  %v8346_v41 = vor.u32 %v10152_v30, %v8345_v51  ;;  %v7925_v7 = vld [vmem:[#allocation14 + $0x8] sm:$0xf]  ;;  %v10047_v3 = vld [vmem:[#allocation14 + $0x20] sm:$0xf0] }
 0x295   :  { %5891 = vmatpush.bf16.msrb.mxu1 %v8762_v14  ;;  %5920 = vmatpush.bf16.msrb.mxu3 %v9182_v33  ;;  %v10323_v14 = vld [vmem:[#allocation14 + $0x8c4] sm:$0xf]  ;;  %v9459_v33 = vld [vmem:[#allocation14 + $0xc24] sm:$0xf0]  ;;  %v10393_v30 = vld [vmem:[#allocation14 + $0xaf4] sm:$0xf] }
 0x296   :  { %5906 = vmatpush.bf16.msrb.mxu2 %v8958_v11  ;;  %5882 = vmatpush.bf16.msrb.mxu0 %v8398_v26  ;;  %v8846_v11 = vor.u32 %v10274_v13, %v8843_v17  ;;  %v8675_v26 = vld [vmem:[#allocation14 + $0x604] sm:$0xf0]  ;;  %v10075_v13 = vld [vmem:[#allocation14 + $0x100] sm:$0xf0]  ;;  %v8619_v17 = vld [vmem:[#allocation14 + $0x594] sm:$0xf0]  ;;  %v9042_v53 = vor.u32 %v10323_v14, %v9039_v20 }
 0x297   :  { %v8678_v16 = vor.u32 %v10232_v50, %v8675_v26  ;;  %v8622_v23 = vor.u32 %v10218_v63, %v8619_v17  ;;  %v10145_v50 = vld [vmem:[#allocation14 + $0x330] sm:$0xf0]  ;;  %v8594_v26 = vor.u32 %v10211_v44, %v8591_v32  ;;  %v7926_v17 = vor.u32 %v10047_v3, %v7925_v7  ;;  %v9319_v32 = vld [vmem:[#allocation14 + $0xb0c] sm:$0xf0]  ;;  %v10484_v3 = vld [vmem:[#allocation14 + $0xdcc] sm:$0xf] }
 0x299   :  { %5892 = vmatpush.bf16.msrb.mxu1 %v8734_v28  ;;  %5921 = vmatpush.bf16.msrb.mxu3 %v9154_v40  ;;  %v10068_v28 = vld [vmem:[#allocation14 + $0xc8] sm:$0xf0] }
 0x29a   :  { %5907 = vmatpush.bf16.msrb.mxu2 %v8930_v46  ;;  %5883 = vmatpush.bf16.msrb.mxu0 %v8370_v2  ;;  %v2747_v46 = vpop.f32.mrf.mxu2  ;;  %v2773_v47 = vpop.f32.mrf.mxu0  ;;  %v9098_v2 = vor.u32 %v10337_v60, %v9095_v61  ;;  %v10414_v61 = vld [vmem:[#allocation14 + $0xb9c] sm:$0xf] }
 0x29b   :  { %v2748_v0 = vadd.f32 %v2747_v46, %v1110_v22  ;;  %v2774_v1 = vadd.f32 %v2773_v47, %v2760_v54  ;;  %v8038_v22 = vor.u32 %v10075_v13, %v8037_v10  ;;  %v9431_v46 = vld [vmem:[#allocation14 + $0xbec] sm:$0xf0]  ;;  %v8317_v47 = vld [vmem:[#allocation14 + $0x318] sm:$0xf] }
 0x29c   :  { %5870 = vmatmul.bf16.vlgmr.msra.gmra.mxu3 %v11039_v34  ;;  %v2789_v4 = vpop.f32.mrf.mxu1  ;;  %v8318_v60 = vor.u32 %v10145_v50, %v8317_v47  ;;  %v9017_v13 = vld [vmem:[#allocation14 + $0x890] sm:$0xf] }
 0x29d   :  { %5893 = vmatpush.bf16.msrb.mxu1 %v8706_v42  ;;  %5922 = vmatpush.bf16.msrb.mxu3 %v9126_v45  ;;  %v2788_v6 = vadd.f32 %v2787_v52, %v2774_v1  ;;  %v10421_v42 = vld [vmem:[#allocation14 + $0xbd4] sm:$0xf]  ;;  %v7981_v52 = vld [vmem:[#allocation14 + $0x78] sm:$0xf] }
 0x29e   :  { %5908 = vmatpush.bf16.msrb.mxu2 %v8902_v56  ;;  %v8094_v56 = vor.u32 %v10089_v19, %v8093_v57  ;;  %v10061_v57 = vld [vmem:[#allocation14 + $0x90] sm:$0xf0]  ;;  %v9403_v1 = vld [vmem:[#allocation14 + $0xbb4] sm:$0xf0] }
 0x29f   :  { %v2870_v24 = vmul.f32 0.2, %v2788_v6  ;;  %vm2854_vm8 = vcmp.gt.f32.partialorder %v2788_v6, 0.0  ;;  %v7982_v54 = vor.u32 %v10061_v57, %v7981_v52  ;;  %v10386_v57 = vld [vmem:[#allocation14 + $0xabc] sm:$0xf] }
 0x2a1   :  { %5894 = vmatpush.bf16.msrb.mxu1 %v8678_v16  ;;  %5923 = vmatpush.bf16.msrb.mxu3 %v9098_v2  ;;  %v2886_v40 = vsel %vm2854_vm8, %v2788_v6, %v2870_v24  ;;  %v7953_v16 = vld [vmem:[#allocation14 + $0x40] sm:$0xf]  ;;  %v9406_v2 = vor.u32 %v10414_v61, %v9403_v1  ;;  %v8261_v6 = vld [vmem:[#allocation14 + $0x2a8] sm:$0xf]  ;;  %v10313_v24 = vld [vmem:[#allocation14 + $0x870] sm:$0xf0] }
 0x2a2   :  { %5909 = vmatpush.bf16.msrb.mxu2 %v8874_v9  ;;  %v2762_v9 = vadd.f32 %v2761_v38, %v2748_v0  ;;  %v2775_v15 = vpop.f32.mrf.mxu0  ;;  %v10054_v0 = vld [vmem:[#allocation14 + $0x58] sm:$0xf0]  ;;  %v8290_v38 = vor.u32 %v10138_v43, %v8289_v59  ;;  %v10299_v61 = vld [vmem:[#allocation14 + $0x800] sm:$0xf0] }
 0x2a3   :  { %v7954_v48 = vor.u32 %v10054_v0, %v7953_v16  ;;  %v10379_v0 = vld [vmem:[#allocation14 + $0xa84] sm:$0xf] }
 0x2a4   :  { %v2776_v18 = vadd.f32 %v2775_v15, %v2762_v9  ;;  %v10131_v9 = vld [vmem:[#allocation14 + $0x2c0] sm:$0xf0]  ;;  %v10320_v15 = vld [vmem:[#allocation14 + $0x8a8] sm:$0xf0] }
 0x2a5   :  { %5895 = vmatpush.bf16.msrb.mxu1 %v8650_v5  ;;  %5924 = vmatpush.bf16.msrb.mxu3 %v9070_v12  ;;  %v9375_v5 = vld [vmem:[#allocation14 + $0xb7c] sm:$0xf0]  ;;  %v10400_v12 = vld [vmem:[#allocation14 + $0xb2c] sm:$0xf]  ;;  %v9018_v20 = vor.u32 %v10320_v15, %v9017_v13 }
 0x2a6   :  { %5910 = vmatpush.bf16.msrb.mxu2 %v8846_v11  ;;  %v10428_v11 = vld [vmem:[#allocation14 + $0xc0c] sm:$0xf]  ;;  %v2790_v27 = vadd.f32 %v2789_v4, %v2776_v18  ;;  %v8262_v18 = vor.u32 %v10131_v9, %v8261_v6  ;;  %v9347_v4 = vld [vmem:[#allocation14 + $0xb44] sm:$0xf0]  ;;  %v8569_v6 = vld [vmem:[#allocation14 + $0x510] sm:$0xf] }
 0x2a7   :  { %v9462_v39 = vor.u32 %v10428_v11, %v9459_v33  ;;  %v10124_v11 = vld [vmem:[#allocation14 + $0x288] sm:$0xf0] }
 0x2a8   :  { %vm2862_vm9 = vcmp.gt.f32.partialorder %v2790_v27, 0.0  ;;  %v2878_v29 = vmul.f32 0.2, %v2790_v27  ;;  %v10208_v9 = vld [vmem:[#allocation14 + $0x528] sm:$0xf0] }
 0x2a9   :  { %5896 = vmatpush.bf16.msrb.mxu1 %v8622_v23  ;;  %5925 = vmatpush.bf16.msrb.mxu3 %v9042_v53  ;;  %v8989_v23 = vld [vmem:[#allocation14 + $0x858] sm:$0xf]  ;;  %v10292_v15 = vld [vmem:[#allocation14 + $0x7c8] sm:$0xf0] }
 0x2aa   :  { %5911 = vmatpush.bf16.msrb.mxu2 %v8818_v36  ;;  %v8010_v36 = vor.u32 %v10068_v28, %v8009_v31  ;;  %v2815_v10 = vpop.f32.mrf.mxu3  ;;  %v9350_v28 = vor.u32 %v10400_v12, %v9347_v4  ;;  %v8990_v53 = vor.u32 %v10313_v24, %v8989_v23  ;;  %v10201_v23 = vld [vmem:[#allocation14 + $0x4f0] sm:$0xf0] }
 0x2ac   :  { %5926 = vmatmul.bf16.vlgmr.msrb.gmra.mxu3 %v11073_v49 }
 0x2ad   :  { %5912 = vmatmul.bf16.vlgmr.msrb.gmra.mxu2 %v11068_v55  ;;  %5974 = vmatpush.bf16.msra.mxu3 %v8346_v41 }
 0x2ae   :  { %5960 = vmatpush.bf16.msra.mxu2 %v8122_v37  ;;  %v2894_v37 = vsel %vm2862_vm9, %v2790_v27, %v2878_v29  ;;  %5897 = vmatpush.bf16.msrb.mxu1 %v8594_v26  ;;  %v9291_v26 = vld [vmem:[#allocation14 + $0xad4] sm:$0xf0] }
 0x2af   :  { %v11081_v19 = vpack.c.bf16 %v2894_v37, %v2886_v40  ;;  %v10117_v40 = vld [vmem:[#allocation14 + $0x250] sm:$0xf0]  ;;  %v8961_v37 = vld [vmem:[#allocation14 + $0x820] sm:$0xf]  ;;  %v9294_v59 = vor.u32 %v10386_v57, %v9291_v26 }
 0x2b0   :  { %v2801_v45 = vpop.f32.mrf.mxu2  ;;  %v9185_v57 = vld [vmem:[#allocation14 + $0x9e0] sm:$0xf] }
 0x2b1   :  { %5828 = vmatmul.bf16.vlgmr.msra.gmra.mxu0 %v11081_v19  ;;  %5975 = vmatpush.bf16.msra.mxu3 %v8318_v60  ;;  %v2802_v63 = vadd.f32 %v2801_v45, %v1111_v8  ;;  %v10110_v45 = vld [vmem:[#allocation14 + $0x218] sm:$0xf0]  ;;  %v8933_v60 = vld [vmem:[#allocation14 + $0x7e8] sm:$0xf] }
 0x2b2   :  { %5961 = vmatpush.bf16.msra.mxu2 %v8094_v56  ;;  %5932 = vmatpush.bf16.msra.mxu0 %v9462_v39  ;;  %v9434_v56 = vor.u32 %v10421_v42, %v9431_v46  ;;  %v10306_v39 = vld [vmem:[#allocation14 + $0x838] sm:$0xf0]  ;;  %v2817_v41 = vpop.f32.mrf.mxu3  ;;  %v9322_v42 = vor.u32 %v10393_v30, %v9319_v32  ;;  %v8934_v7 = vor.u32 %v10299_v61, %v8933_v60  ;;  %v9213_v30 = vld [vmem:[#allocation14 + $0xa18] sm:$0xf]  ;;  %v10187_v60 = vld [vmem:[#allocation14 + $0x480] sm:$0xf0] }
 0x2b3   :  { %v2816_v27 = vadd.f32 %v2815_v10, %v2802_v63  ;;  %v8962_v50 = vor.u32 %v10306_v39, %v8961_v37  ;;  %v8905_v10 = vld [vmem:[#allocation14 + $0x7b0] sm:$0xf]  ;;  %v10194_v37 = vld [vmem:[#allocation14 + $0x4b8] sm:$0xf0] }
 0x2b4   :  { %v2843_v14 = vpop.f32.mrf.mxu1 }
 0x2b5   :  { %5976 = vmatpush.bf16.msra.mxu3 %v8290_v38 }
 0x2b6   :  { %5962 = vmatpush.bf16.msra.mxu2 %v8066_v25  ;;  %5933 = vmatpush.bf16.msra.mxu0 %v9434_v56  ;;  %v10407_v25 = vld [vmem:[#allocation14 + $0xb64] sm:$0xf] }
 0x2b7   :  { %v9378_v21 = vor.u32 %v10407_v25, %v9375_v5  ;;  %v9683_v5 = vld [vmem:[#allocation14 + $0xde4] sm:$0xf0] }
 0x2b8   :  { %v2803_v33 = vpop.f32.mrf.mxu2 }
 0x2b9   :  { %5977 = vmatpush.bf16.msra.mxu3 %v8262_v18  ;;  %v2804_v44 = vadd.f32 %v2803_v33, %v1111_v8  ;;  %v9263_v8 = vld [vmem:[#allocation14 + $0xa9c] sm:$0xf0]  ;;  %v10376_v18 = vld [vmem:[#allocation14 + $0xa68] sm:$0xf0]  ;;  %v10477_v33 = vld [vmem:[#allocation14 + $0xd94] sm:$0xf] }
 0x2ba   :  { %5963 = vmatpush.bf16.msra.mxu2 %v8038_v22  ;;  %5934 = vmatpush.bf16.msra.mxu0 %v9406_v2  ;;  %v8233_v22 = vld [vmem:[#allocation14 + $0x270] sm:$0xf]  ;;  %v2829_v31 = vpop.f32.mrf.mxu0  ;;  %v10103_v2 = vld [vmem:[#allocation14 + $0x1e0] sm:$0xf0]  ;;  %v9266_v63 = vor.u32 %v10379_v0, %v9263_v8 }
 0x2bb   :  { %v8234_v51 = vor.u32 %v10124_v11, %v8233_v22  ;;  %v2830_v29 = vadd.f32 %v2829_v31, %v2816_v27  ;;  %v2818_v47 = vadd.f32 %v2817_v41, %v2804_v44  ;;  %v9686_v22 = vor.u32 %v10484_v3, %v9683_v5  ;;  %v8541_v31 = vld [vmem:[#allocation14 + $0x4d8] sm:$0xf]  ;;  %v9655_v27 = vld [vmem:[#allocation14 + $0xdac] sm:$0xf0]  ;;  %v10369_v44 = vld [vmem:[#allocation14 + $0xa30] sm:$0xf0] }
 0x2bc   :  { %v2845_v1 = vpop.f32.mrf.mxu1  ;;  %v8906_v11 = vor.u32 %v10292_v15, %v8905_v10  ;;  %v9214_v39 = vor.u32 %v10369_v44, %v9213_v30  ;;  %v9627_v41 = vld [vmem:[#allocation14 + $0xd74] sm:$0xf0]  ;;  %v10271_v0 = vld [vmem:[#allocation14 + $0x720] sm:$0xf0]  ;;  %v8123_v8 = vld [vmem:[#allocation14 + $0x1ac] sm:$0xf0] }
 0x2bd   :  { %5978 = vmatpush.bf16.msra.mxu3 %v8234_v51  ;;  %v2844_v46 = vadd.f32 %v2843_v14, %v2830_v29  ;;  %v10285_v51 = vld [vmem:[#allocation14 + $0x790] sm:$0xf0]  ;;  %v8542_v29 = vor.u32 %v10201_v23, %v8541_v31  ;;  %v9129_v10 = vld [vmem:[#allocation14 + $0x970] sm:$0xf]  ;;  %v10086_v15 = vld [vmem:[#allocation14 + $0x15c] sm:$0xf] }
 0x2be   :  { %5964 = vmatpush.bf16.msra.mxu2 %v8010_v36  ;;  %5935 = vmatpush.bf16.msra.mxu0 %v9378_v21  ;;  %v8205_v36 = vld [vmem:[#allocation14 + $0x238] sm:$0xf]  ;;  %v9241_v21 = vld [vmem:[#allocation14 + $0xa50] sm:$0xf]  ;;  %v10341_v31 = vld [vmem:[#allocation14 + $0x950] sm:$0xf0] }
 0x2bf   :  { %v8206_v52 = vor.u32 %v10117_v40, %v8205_v36  ;;  %v2871_v38 = vmul.f32 0.2, %v2844_v46  ;;  %vm2855_vm10 = vcmp.gt.f32.partialorder %v2844_v46, 0.0  ;;  %v9242_v24 = vor.u32 %v10376_v18, %v9241_v21  ;;  %v10470_v36 = vld [vmem:[#allocation14 + $0xd5c] sm:$0xf] }
 0x2c0   :  { %v8513_v40 = vld [vmem:[#allocation14 + $0x4a0] sm:$0xf]  ;;  %v9630_v26 = vor.u32 %v10470_v36, %v9627_v41  ;;  %v10449_v18 = vld [vmem:[#allocation14 + $0xcb4] sm:$0xf]  ;;  %v10079_v23 = vld [vmem:[#allocation14 + $0x124] sm:$0xf] }
 0x2c1   :  { %5884 = vmatmul.bf16.vlgmr.msrb.gmra.mxu0 %v11064_v58  ;;  %5979 = vmatpush.bf16.msra.mxu3 %v8206_v52  ;;  %v2887_v12 = vsel %vm2855_vm10, %v2844_v46, %v2871_v38  ;;  %v10278_v52 = vld [vmem:[#allocation14 + $0x758] sm:$0xf0]  ;;  %v9515_v30 = vld [vmem:[#allocation14 + $0xc94] sm:$0xf0]  ;;  %v9073_v36 = vld [vmem:[#allocation14 + $0x900] sm:$0xf] }
 0x2c2   :  { %5965 = vmatpush.bf16.msra.mxu2 %v7982_v54  ;;  %5936 = vmatpush.bf16.msra.mxu0 %v9350_v28  ;;  %v8177_v54 = vld [vmem:[#allocation14 + $0x200] sm:$0xf]  ;;  %v2831_v56 = vpop.f32.mrf.mxu0  ;;  %v8877_v28 = vld [vmem:[#allocation14 + $0x778] sm:$0xf]  ;;  %v10362_v46 = vld [vmem:[#allocation14 + $0x9f8] sm:$0xf0] }
 0x2c3   :  { %v2832_v16 = vadd.f32 %v2831_v56, %v2818_v47  ;;  %v8178_v43 = vor.u32 %v10110_v45, %v8177_v54  ;;  %v8878_v32 = vor.u32 %v10285_v51, %v8877_v28  ;;  %v8514_v47 = vor.u32 %v10194_v37, %v8513_v40  ;;  %v9599_v45 = vld [vmem:[#allocation14 + $0xd3c] sm:$0xf0]  ;;  %v8485_v56 = vld [vmem:[#allocation14 + $0x468] sm:$0xf]  ;;  %v10442_v51 = vld [vmem:[#allocation14 + $0xc7c] sm:$0xf] }
 0x2c4   :  { %v9186_v61 = vor.u32 %v10362_v46, %v9185_v57  ;;  %v10334_v40 = vld [vmem:[#allocation14 + $0x918] sm:$0xf0]  ;;  %v10072_v37 = vld [vmem:[#allocation14 + $0xec] sm:$0xf]  ;;  %v9518_v41 = vor.u32 %v10442_v51, %v9515_v30  ;;  %v9487_v57 = vld [vmem:[#allocation14 + $0xc5c] sm:$0xf0] }
 0x2c5   :  { %v2846_v25 = vadd.f32 %v2845_v1, %v2832_v16  ;;  %5980 = vmatpush.bf16.msra.mxu3 %v8178_v43  ;;  %v8821_v16 = vld [vmem:[#allocation14 + $0x708] sm:$0xf]  ;;  %v10093_v43 = vld [vmem:[#allocation14 + $0x194] sm:$0xf] }
 0x2c6   :  { %5966 = vmatpush.bf16.msra.mxu2 %v7954_v48  ;;  %5937 = vmatpush.bf16.msra.mxu0 %v9322_v42  ;;  %v8149_v48 = vld [vmem:[#allocation14 + $0x1c8] sm:$0xf]  ;;  %v8849_v42 = vld [vmem:[#allocation14 + $0x740] sm:$0xf]  ;;  %v8822_v38 = vor.u32 %v10271_v0, %v8821_v16  ;;  %v8126_v5 = vor.u32 %v10093_v43, %v8123_v8  ;;  %v10432_v16 = vld [vmem:[#allocation14 + $0xc28] sm:$0xf0] }
 0x2c7   :  { %vm2863_vm11 = vcmp.gt.f32.partialorder %v2846_v25, 0.0  ;;  %v2879_v13 = vmul.f32 0.2, %v2846_v25  ;;  %v8850_v54 = vor.u32 %v10278_v52, %v8849_v42  ;;  %v9157_v1 = vld [vmem:[#allocation14 + $0x9a8] sm:$0xf] }
 0x2c8   :  { %v10435_v52 = vld [vmem:[#allocation14 + $0xc44] sm:$0xf]  ;;  %v8373_v46 = vld [vmem:[#allocation14 + $0x388] sm:$0xf]  ;;  %v10065_v0 = vld [vmem:[#allocation14 + $0xb4] sm:$0xf] }
 0x2c9   :  { %v2895_v14 = vsel %vm2863_vm11, %v2846_v25, %v2879_v13  ;;  %v10456_v25 = vld [vmem:[#allocation14 + $0xcec] sm:$0xf]  ;;  %v10149_v8 = vld [vmem:[#allocation14 + $0x354] sm:$0xf]  ;;  %v8709_v51 = vld [vmem:[#allocation14 + $0x628] sm:$0xf] }
 0x2ca   :  { %5967 = vmatpush.bf16.msra.mxu2 %v7926_v17  ;;  %5938 = vmatpush.bf16.msra.mxu0 %v9294_v59  ;;  %v8150_v17 = vor.u32 %v10103_v2, %v8149_v48  ;;  %v11088_v4 = vpack.c.bf16 %v2895_v14, %v2887_v12  ;;  %v10355_v59 = vld [vmem:[#allocation14 + $0x9c0] sm:$0xf0]  ;;  %v8486_v48 = vor.u32 %v10187_v60, %v8485_v56  ;;  %v10348_v13 = vld [vmem:[#allocation14 + $0x988] sm:$0xf0]  ;;  %v9543_v12 = vld [vmem:[#allocation14 + $0xccc] sm:$0xf0] }
 0x2cb   :  { %v9158_v3 = vor.u32 %v10355_v59, %v9157_v1  ;;  %v9130_v14 = vor.u32 %v10348_v13, %v9129_v10  ;;  %v8793_v56 = vld [vmem:[#allocation14 + $0x6d0] sm:$0xf]  ;;  %v10264_v60 = vld [vmem:[#allocation14 + $0x6e8] sm:$0xf0]  ;;  %v9490_v59 = vor.u32 %v10435_v52, %v9487_v57  ;;  %v10425_v10 = vld [vmem:[#allocation14 + $0xbf0] sm:$0xf0] }
 0x2cc   :  { %5981 = vmatpush.bf16.msra.mxu3 %v8150_v17  ;;  %5842 = vmatmul.bf16.vlgmr.msra.gmra.mxu1 %v11088_v4  ;;  %v8011_v1 = vld [vmem:[#allocation14 + $0xcc] sm:$0xf0]  ;;  %v10058_v13 = vld [vmem:[#allocation14 + $0x7c] sm:$0xf] }
 0x2cd   :  { %5968 = vmatmul.bf16.vlgmr.msra.gmra.mxu2 %v11051_v62  ;;  %5946 = vmatpush.bf16.msra.mxu1 %v9686_v22  ;;  %v8429_v22 = vld [vmem:[#allocation14 + $0x3f8] sm:$0xf]  ;;  %v9019_v52 = vld [vmem:[#allocation14 + $0x8ac] sm:$0xf0] }
 0x2ce   :  { %6016 = vmatpush.bf16.msrb.mxu2 %v9018_v20  ;;  %v8570_v20 = vor.u32 %v10208_v9, %v8569_v6  ;;  %5939 = vmatpush.bf16.msra.mxu0 %v9266_v63  ;;  %v8457_v6 = vld [vmem:[#allocation14 + $0x430] sm:$0xf]  ;;  %v10180_v9 = vld [vmem:[#allocation14 + $0x448] sm:$0xf0]  ;;  %v8095_v63 = vld [vmem:[#allocation14 + $0x174] sm:$0xf0] }
 0x2cf   :  { %5982 = vmatmul.bf16.vlgmr.msra.gmra.mxu3 %v11039_v34  ;;  %v8458_v21 = vor.u32 %v10180_v9, %v8457_v6  ;;  %v9437_v6 = vld [vmem:[#allocation14 + $0xbd8] sm:$0xf] }
 0x2d0   :  { %6030 = vmatpush.bf16.msrb.mxu3 %v9242_v24  ;;  %v8067_v24 = vld [vmem:[#allocation14 + $0x13c] sm:$0xf0] }
 0x2d1   :  { %5940 = vmatmul.bf16.vlgmr.msra.gmra.mxu0 %v11081_v19 }
 0x2d2   :  { %6017 = vmatpush.bf16.msrb.mxu2 %v8990_v53  ;;  %5988 = vmatpush.bf16.msrb.mxu0 %v8570_v20  ;;  %v9658_v53 = vor.u32 %v10477_v33, %v9655_v27  ;;  %v8098_v20 = vor.u32 %v10086_v15, %v8095_v63  ;;  %v9101_v33 = vld [vmem:[#allocation14 + $0x938] sm:$0xf]  ;;  %v9546_v27 = vor.u32 %v10449_v18, %v9543_v12  ;;  %v10142_v63 = vld [vmem:[#allocation14 + $0x31c] sm:$0xf] }
 0x2d3   :  { %v9102_v44 = vor.u32 %v10341_v31, %v9101_v33  ;;  %v7983_v15 = vld [vmem:[#allocation14 + $0x94] sm:$0xf0]  ;;  %v9438_v18 = vor.u32 %v10425_v10, %v9437_v6  ;;  %v10418_v33 = vld [vmem:[#allocation14 + $0xbb8] sm:$0xf0]  ;;  %v10051_v31 = vld [vmem:[#allocation14 + $0x44] sm:$0xf] }
 0x2d4   :  { %5947 = vmatpush.bf16.msra.mxu1 %v9658_v53  ;;  %6031 = vmatpush.bf16.msrb.mxu3 %v9214_v39  ;;  %v8401_v53 = vld [vmem:[#allocation14 + $0x3c0] sm:$0xf]  ;;  %v8039_v39 = vld [vmem:[#allocation14 + $0x104] sm:$0xf0]  ;;  %v7986_v12 = vor.u32 %v10058_v13, %v7983_v15  ;;  %v10303_v6 = vld [vmem:[#allocation14 + $0x824] sm:$0xf] }
 0x2d5   :  { %v8625_v15 = vld [vmem:[#allocation14 + $0x580] sm:$0xf] }
 0x2d6   :  { %6018 = vmatpush.bf16.msrb.mxu2 %v8962_v50  ;;  %5989 = vmatpush.bf16.msrb.mxu0 %v8542_v29  ;;  %v10463_v50 = vld [vmem:[#allocation14 + $0xd24] sm:$0xf]  ;;  %v8070_v29 = vor.u32 %v10079_v23, %v8067_v24  ;;  %v7955_v23 = vld [vmem:[#allocation14 + $0x5c] sm:$0xf0] }
 0x2d7   :  { %v9602_v2 = vor.u32 %v10463_v50, %v9599_v45  ;;  %v8042_v50 = vor.u32 %v10072_v37, %v8039_v39  ;;  %v10327_v45 = vld [vmem:[#allocation14 + $0x8e0] sm:$0xf0]  ;;  %v7927_v37 = vld [vmem:[#allocation14 + $0x24] sm:$0xf0]  ;;  %v10128_v39 = vld [vmem:[#allocation14 + $0x2ac] sm:$0xf] }
 0x2d8   :  { %5948 = vmatpush.bf16.msra.mxu1 %v9630_v26  ;;  %6032 = vmatpush.bf16.msrb.mxu3 %v9186_v61  ;;  %v10159_v26 = vld [vmem:[#allocation14 + $0x3a0] sm:$0xf0]  ;;  %v9465_v61 = vld [vmem:[#allocation14 + $0xc10] sm:$0xf] }
 0x2d9   :  { %v8374_v43 = vor.u32 %v10159_v26, %v8373_v46  ;;  %v10135_v24 = vld [vmem:[#allocation14 + $0x2e4] sm:$0xf]  ;;  %v10236_v26 = vld [vmem:[#allocation14 + $0x608] sm:$0xf0] }
 0x2da   :  { %6019 = vmatpush.bf16.msrb.mxu2 %v8934_v7  ;;  %5990 = vmatpush.bf16.msrb.mxu0 %v8514_v47  ;;  %v9571_v7 = vld [vmem:[#allocation14 + $0xd04] sm:$0xf0]  ;;  %v9074_v47 = vor.u32 %v10334_v40, %v9073_v36  ;;  %v10044_v40 = vld [vmem:[#allocation14 + $0xc] sm:$0xf] }
 0x2db   :  { %v9574_v17 = vor.u32 %v10456_v25, %v9571_v7  ;;  %v9466_v25 = vor.u32 %v10432_v16, %v9465_v61  ;;  %v8014_v7 = vor.u32 %v10065_v0, %v8011_v1  ;;  %v10121_v61 = vld [vmem:[#allocation14 + $0x274] sm:$0xf]  ;;  %v8235_v16 = vld [vmem:[#allocation14 + $0x28c] sm:$0xf0]  ;;  %v10310_v0 = vld [vmem:[#allocation14 + $0x85c] sm:$0xf] }
 0x2dc   :  { %5949 = vmatpush.bf16.msra.mxu1 %v9602_v2  ;;  %6033 = vmatpush.bf16.msrb.mxu3 %v9158_v3  ;;  %v8765_v3 = vld [vmem:[#allocation14 + $0x698] sm:$0xf] }
 0x2dd   :  { %5898 = vmatmul.bf16.vlgmr.msrb.gmra.mxu1 %v11060_v35  ;;  %v8991_v1 = vld [vmem:[#allocation14 + $0x874] sm:$0xf0] }
 0x2de   :  { %6020 = vmatpush.bf16.msrb.mxu2 %v8906_v11  ;;  %5991 = vmatpush.bf16.msrb.mxu0 %v8486_v48  ;;  %v10173_v11 = vld [vmem:[#allocation14 + $0x410] sm:$0xf0]  ;;  %v8347_v48 = vld [vmem:[#allocation14 + $0x36c] sm:$0xf0] }
 0x2df   :  { %v8430_v28 = vor.u32 %v10173_v11, %v8429_v22  ;;  %v8350_v9 = vor.u32 %v10149_v8, %v8347_v48  ;;  %v9409_v22 = vld [vmem:[#allocation14 + $0xba0] sm:$0xf]  ;;  %v8653_v8 = vld [vmem:[#allocation14 + $0x5b8] sm:$0xf]  ;;  %v10229_v48 = vld [vmem:[#allocation14 + $0x5d0] sm:$0xf0] }
 0x2e0   :  { %5950 = vmatpush.bf16.msra.mxu1 %v9574_v17  ;;  %6034 = vmatpush.bf16.msrb.mxu3 %v9130_v14  ;;  %v8319_v17 = vld [vmem:[#allocation14 + $0x334] sm:$0xf0]  ;;  %v8737_v14 = vld [vmem:[#allocation14 + $0x660] sm:$0xf]  ;;  %v9410_v30 = vor.u32 %v10418_v33, %v9409_v22  ;;  %v8654_v10 = vor.u32 %v10229_v48, %v8653_v8  ;;  %v10296_v22 = vld [vmem:[#allocation14 + $0x7ec] sm:$0xf] }
 0x2e1   :  { %v8322_v11 = vor.u32 %v10142_v63, %v8319_v17  ;;  %v10222_v63 = vld [vmem:[#allocation14 + $0x598] sm:$0xf0]  ;;  %v9633_v48 = vld [vmem:[#allocation14 + $0xd60] sm:$0xf] }
 0x2e2   :  { %6021 = vmatpush.bf16.msrb.mxu2 %v8878_v32  ;;  %5992 = vmatpush.bf16.msrb.mxu0 %v8458_v21  ;;  %v10166_v32 = vld [vmem:[#allocation14 + $0x3d8] sm:$0xf0]  ;;  %v8626_v33 = vor.u32 %v10222_v63, %v8625_v15  ;;  %v9605_v63 = vld [vmem:[#allocation14 + $0xd28] sm:$0xf] }
 0x2e3   :  { %v8402_v42 = vor.u32 %v10166_v32, %v8401_v53  ;;  %v9381_v53 = vld [vmem:[#allocation14 + $0xb68] sm:$0xf]  ;;  %v10411_v32 = vld [vmem:[#allocation14 + $0xb80] sm:$0xf0] }
 0x2e4   :  { %5951 = vmatpush.bf16.msra.mxu1 %v9546_v27  ;;  %6035 = vmatpush.bf16.msrb.mxu3 %v9102_v44  ;;  %v8291_v27 = vld [vmem:[#allocation14 + $0x2fc] sm:$0xf0]  ;;  %v7958_v44 = vor.u32 %v10051_v31, %v7955_v23  ;;  %v9382_v46 = vor.u32 %v10411_v32, %v9381_v53  ;;  %v8597_v31 = vld [vmem:[#allocation14 + $0x548] sm:$0xf]  ;;  %v10215_v23 = vld [vmem:[#allocation14 + $0x560] sm:$0xf0] }
 0x2e5   :  { %v8294_v36 = vor.u32 %v10135_v24, %v8291_v27  ;;  %v9269_v27 = vld [vmem:[#allocation14 + $0xa88] sm:$0xf]  ;;  %v9689_v53 = vld [vmem:[#allocation14 + $0xdd0] sm:$0xf]  ;;  %v10488_v32 = vld [vmem:[#allocation14 + $0xde8] sm:$0xf0] }
 0x2e6   :  { %6022 = vmatpush.bf16.msrb.mxu2 %v8850_v54  ;;  %5993 = vmatpush.bf16.msrb.mxu0 %v8430_v28  ;;  %v9045_v54 = vld [vmem:[#allocation14 + $0x8c8] sm:$0xf] }
 0x2e7   :  { %v9046_v2 = vor.u32 %v10327_v45, %v9045_v54 }
 0x2e8   :  { %5952 = vmatpush.bf16.msra.mxu1 %v9518_v41  ;;  %6036 = vmatpush.bf16.msrb.mxu3 %v9074_v47  ;;  %v8263_v41 = vld [vmem:[#allocation14 + $0x2c4] sm:$0xf0]  ;;  %v7930_v47 = vor.u32 %v10044_v40, %v7927_v37  ;;  %v8571_v40 = vld [vmem:[#allocation14 + $0x52c] sm:$0xf0]  ;;  %v10289_v37 = vld [vmem:[#allocation14 + $0x7b4] sm:$0xf] }
 0x2e9   :  { %v8266_v54 = vor.u32 %v10128_v39, %v8263_v41  ;;  %v8598_v39 = vor.u32 %v10215_v23, %v8597_v31  ;;  %v8907_v41 = vld [vmem:[#allocation14 + $0x7cc] sm:$0xf0]  ;;  %v8129_v23 = vld [vmem:[#allocation14 + $0x198] sm:$0xf] }
 0x2ea   :  { %6023 = vmatpush.bf16.msrb.mxu2 %v8822_v38  ;;  %5994 = vmatpush.bf16.msrb.mxu0 %v8402_v42  ;;  %v8794_v38 = vor.u32 %v10264_v60, %v8793_v56  ;;  %v10317_v42 = vld [vmem:[#allocation14 + $0x894] sm:$0xf]  ;;  %v9353_v56 = vld [vmem:[#allocation14 + $0xb30] sm:$0xf]  ;;  %v10404_v60 = vld [vmem:[#allocation14 + $0xb48] sm:$0xf0] }
 0x2eb   :  { %v9022_v45 = vor.u32 %v10317_v42, %v9019_v52  ;;  %v10373_v42 = vld [vmem:[#allocation14 + $0xa54] sm:$0xf]  ;;  %v9243_v52 = vld [vmem:[#allocation14 + $0xa6c] sm:$0xf0] }
 0x2ec   :  { %5953 = vmatpush.bf16.msra.mxu1 %v9490_v59  ;;  %6037 = vmatpush.bf16.msrb.mxu3 %v9046_v2  ;;  %v8238_v2 = vor.u32 %v10121_v61, %v8235_v16  ;;  %v8543_v61 = vld [vmem:[#allocation14 + $0x4f4] sm:$0xf0]  ;;  %v10282_v16 = vld [vmem:[#allocation14 + $0x77c] sm:$0xf] }
 0x2ed   :  { %6024 = vmatmul.bf16.vlgmr.msrb.gmra.mxu2 %v11068_v55 }
 0x2ee   :  { %6072 = vmatpush.bf16.msra.mxu2 %v8126_v5  ;;  %v10257_v5 = vld [vmem:[#allocation14 + $0x6b0] sm:$0xf0]  ;;  %5995 = vmatpush.bf16.msrb.mxu0 %v8374_v43  ;;  %v9354_v43 = vor.u32 %v10404_v60, %v9353_v56  ;;  %v9246_v56 = vor.u32 %v10373_v42, %v9243_v52  ;;  %v10198_v60 = vld [vmem:[#allocation14 + $0x4dc] sm:$0xf]  ;;  %v9549_v52 = vld [vmem:[#allocation14 + $0xcb8] sm:$0xf] }
 0x2ef   :  { %v8766_v21 = vor.u32 %v10257_v5, %v8765_v3  ;;  %6038 = vmatmul.bf16.vlgmr.msrb.gmra.mxu3 %v11073_v49  ;;  %5954 = vmatmul.bf16.vlgmr.msra.gmra.mxu1 %v11088_v4  ;;  %v10114_v3 = vld [vmem:[#allocation14 + $0x23c] sm:$0xf]  ;;  %v8207_v5 = vld [vmem:[#allocation14 + $0x254] sm:$0xf0]  ;;  %v8546_v8 = vor.u32 %v10198_v60, %v8543_v61  ;;  %v8073_v60 = vld [vmem:[#allocation14 + $0x128] sm:$0xf] }
 0x2f0   :  { %6002 = vmatpush.bf16.msrb.mxu1 %v8794_v38  ;;  %6086 = vmatpush.bf16.msra.mxu3 %v8350_v9  ;;  %v8994_v38 = vor.u32 %v10310_v0, %v8991_v1  ;;  %v8963_v9 = vld [vmem:[#allocation14 + $0x83c] sm:$0xf0]  ;;  %v8210_v17 = vor.u32 %v10114_v3, %v8207_v5  ;;  %v8879_v0 = vld [vmem:[#allocation14 + $0x794] sm:$0xf0]  ;;  %v10366_v1 = vld [vmem:[#allocation14 + $0xa1c] sm:$0xf] }
 0x2f1   :  { %5996 = vmatmul.bf16.vlgmr.msrb.gmra.mxu0 %v11064_v58  ;;  %v8515_v3 = vld [vmem:[#allocation14 + $0x4bc] sm:$0xf0]  ;;  %v10275_v5 = vld [vmem:[#allocation14 + $0x744] sm:$0xf] }
 0x2f2   :  { %6073 = vmatpush.bf16.msra.mxu2 %v8098_v20  ;;  %6044 = vmatpush.bf16.msra.mxu0 %v9466_v25  ;;  %v10250_v20 = vld [vmem:[#allocation14 + $0x678] sm:$0xf0]  ;;  %v9325_v25 = vld [vmem:[#allocation14 + $0xaf8] sm:$0xf]  ;;  %v10083_v61 = vld [vmem:[#allocation14 + $0x140] sm:$0xf0] }
 0x2f3   :  { %v8738_v28 = vor.u32 %v10250_v20, %v8737_v14  ;;  %v10107_v14 = vld [vmem:[#allocation14 + $0x204] sm:$0xf]  ;;  %v8179_v20 = vld [vmem:[#allocation14 + $0x21c] sm:$0xf0] }
 0x2f4   :  { %6003 = vmatpush.bf16.msrb.mxu1 %v8766_v21  ;;  %6087 = vmatpush.bf16.msra.mxu3 %v8322_v11  ;;  %v8966_v21 = vor.u32 %v10303_v6, %v8963_v9  ;;  %v8935_v11 = vld [vmem:[#allocation14 + $0x804] sm:$0xf0]  ;;  %v8851_v6 = vld [vmem:[#allocation14 + $0x75c] sm:$0xf0]  ;;  %v10359_v9 = vld [vmem:[#allocation14 + $0x9e4] sm:$0xf] }
 0x2f6   :  { %6074 = vmatpush.bf16.msra.mxu2 %v8070_v29  ;;  %6045 = vmatpush.bf16.msra.mxu0 %v9438_v18  ;;  %v10243_v29 = vld [vmem:[#allocation14 + $0x640] sm:$0xf0]  ;;  %v9297_v18 = vld [vmem:[#allocation14 + $0xac0] sm:$0xf] }
 0x2f7   :  { %v8710_v57 = vor.u32 %v10243_v29, %v8709_v51  ;;  %v10100_v51 = vld [vmem:[#allocation14 + $0x1cc] sm:$0xf]  ;;  %v8151_v29 = vld [vmem:[#allocation14 + $0x1e4] sm:$0xf0] }
 0x2f8   :  { %6004 = vmatpush.bf16.msrb.mxu1 %v8738_v28  ;;  %6088 = vmatpush.bf16.msra.mxu3 %v8294_v36  ;;  %v10383_v28 = vld [vmem:[#allocation14 + $0xaa0] sm:$0xf0]  ;;  %v10205_v36 = vld [vmem:[#allocation14 + $0x514] sm:$0xf] }
 0x2fa   :  { %6075 = vmatpush.bf16.msra.mxu2 %v8042_v50  ;;  %6046 = vmatpush.bf16.msra.mxu0 %v9410_v30  ;;  %v8681_v50 = vld [vmem:[#allocation14 + $0x5f0] sm:$0xf]  ;;  %v8182_v30 = vor.u32 %v10107_v14, %v8179_v20  ;;  %v8487_v14 = vld [vmem:[#allocation14 + $0x484] sm:$0xf0]  ;;  %v10268_v20 = vld [vmem:[#allocation14 + $0x70c] sm:$0xf] }
 0x2fb   :  { %v8682_v59 = vor.u32 %v10236_v26, %v8681_v50  ;;  %v8574_v50 = vor.u32 %v10205_v36, %v8571_v40  ;;  %v9661_v26 = vld [vmem:[#allocation14 + $0xd98] sm:$0xf]  ;;  %v10345_v36 = vld [vmem:[#allocation14 + $0x974] sm:$0xf]  ;;  %v9131_v40 = vld [vmem:[#allocation14 + $0x98c] sm:$0xf0] }
 0x2fc   :  { %6005 = vmatpush.bf16.msrb.mxu1 %v8710_v57  ;;  %6089 = vmatpush.bf16.msra.mxu3 %v8266_v54  ;;  %v9270_v57 = vor.u32 %v10383_v28, %v9269_v27  ;;  %v10481_v54 = vld [vmem:[#allocation14 + $0xdb0] sm:$0xf0]  ;;  %v9577_v28 = vld [vmem:[#allocation14 + $0xcf0] sm:$0xf] }
 0x2fe   :  { %6076 = vmatpush.bf16.msra.mxu2 %v8014_v7  ;;  %6047 = vmatpush.bf16.msra.mxu0 %v9382_v46  ;;  %v10397_v7 = vld [vmem:[#allocation14 + $0xb10] sm:$0xf0]  ;;  %v9690_v46 = vor.u32 %v10488_v32, %v9689_v53  ;;  %v8459_v53 = vld [vmem:[#allocation14 + $0x44c] sm:$0xf0] }
 0x2ff   :  { %v9326_v13 = vor.u32 %v10397_v7, %v9325_v25  ;;  %v10191_v7 = vld [vmem:[#allocation14 + $0x4a4] sm:$0xf] }
 0x300   :  { %6006 = vmatpush.bf16.msrb.mxu1 %v8682_v59  ;;  %6090 = vmatpush.bf16.msra.mxu3 %v8238_v2  ;;  %v9215_v59 = vld [vmem:[#allocation14 + $0xa34] sm:$0xf0]  ;;  %v10474_v2 = vld [vmem:[#allocation14 + $0xd78] sm:$0xf0]  ;;  %v8518_v15 = vor.u32 %v10191_v7, %v8515_v3  ;;  %v10076_v3 = vld [vmem:[#allocation14 + $0x108] sm:$0xf0] }
 0x301   :  { %v9218_v25 = vor.u32 %v10366_v1, %v9215_v59  ;;  %v10446_v1 = vld [vmem:[#allocation14 + $0xc98] sm:$0xf0] }
 0x302   :  { %6077 = vmatpush.bf16.msra.mxu2 %v7986_v12  ;;  %6048 = vmatpush.bf16.msra.mxu0 %v9354_v43  ;;  %v10390_v12 = vld [vmem:[#allocation14 + $0xad8] sm:$0xf0]  ;;  %v9662_v43 = vor.u32 %v10481_v54, %v9661_v26 }
 0x303   :  { %v9298_v24 = vor.u32 %v10390_v12, %v9297_v18  ;;  %v10184_v12 = vld [vmem:[#allocation14 + $0x46c] sm:$0xf]  ;;  %v10338_v54 = vld [vmem:[#allocation14 + $0x93c] sm:$0xf] }
 0x304   :  { %6007 = vmatpush.bf16.msrb.mxu1 %v8654_v10  ;;  %6091 = vmatpush.bf16.msra.mxu3 %v8210_v17  ;;  %v9187_v10 = vld [vmem:[#allocation14 + $0x9fc] sm:$0xf0]  ;;  %v10467_v17 = vld [vmem:[#allocation14 + $0xd40] sm:$0xf0]  ;;  %v8490_v27 = vor.u32 %v10184_v12, %v8487_v14  ;;  %v10429_v14 = vld [vmem:[#allocation14 + $0xc14] sm:$0xf] }
 0x305   :  { %v9190_v18 = vor.u32 %v10359_v9, %v9187_v10  ;;  %v9606_v31 = vor.u32 %v10467_v17, %v9605_v63  ;;  %v10156_v10 = vld [vmem:[#allocation14 + $0x38c] sm:$0xf]  ;;  %v9047_v17 = vld [vmem:[#allocation14 + $0x8e4] sm:$0xf0] }
 0x306   :  { %6078 = vmatpush.bf16.msra.mxu2 %v7958_v44  ;;  %6049 = vmatpush.bf16.msra.mxu0 %v9326_v13  ;;  %v8938_v44 = vor.u32 %v10296_v22, %v8935_v11  ;;  %v9634_v13 = vor.u32 %v10474_v2, %v9633_v48  ;;  %v8823_v22 = vld [vmem:[#allocation14 + $0x724] sm:$0xf0]  ;;  %v10352_v11 = vld [vmem:[#allocation14 + $0x9ac] sm:$0xf]  ;;  %v8074_v48 = vor.u32 %v10083_v61, %v8073_v60  ;;  %v10331_v2 = vld [vmem:[#allocation14 + $0x904] sm:$0xf] }
 0x307   :  { %v10055_v60 = vld [vmem:[#allocation14 + $0x60] sm:$0xf0]  ;;  %v8297_v61 = vld [vmem:[#allocation14 + $0x2e8] sm:$0xf] }
 0x308   :  { %6008 = vmatpush.bf16.msrb.mxu1 %v8626_v33  ;;  %6092 = vmatpush.bf16.msra.mxu3 %v8182_v30  ;;  %v9159_v33 = vld [vmem:[#allocation14 + $0x9c4] sm:$0xf0]  ;;  %v8826_v30 = vor.u32 %v10268_v20, %v8823_v22  ;;  %v9467_v20 = vld [vmem:[#allocation14 + $0xc2c] sm:$0xf0]  ;;  %v8017_v22 = vld [vmem:[#allocation14 + $0xb8] sm:$0xf] }
 0x30a   :  { %6079 = vmatpush.bf16.msra.mxu2 %v7930_v47  ;;  %6050 = vmatpush.bf16.msra.mxu0 %v9298_v24  ;;  %v8154_v47 = vor.u32 %v10100_v51, %v8151_v29  ;;  %v10097_v24 = vld [vmem:[#allocation14 + $0x1b0] sm:$0xf0]  ;;  %v10460_v51 = vld [vmem:[#allocation14 + $0xd08] sm:$0xf0] }
 0x30b   :  { %v10177_v29 = vld [vmem:[#allocation14 + $0x434] sm:$0xf]  ;;  %v8130_v32 = vor.u32 %v10097_v24, %v8129_v23 }
 0x30c   :  { %6009 = vmatpush.bf16.msrb.mxu1 %v8598_v39  ;;  %6093 = vmatpush.bf16.msra.mxu3 %v8154_v47  ;;  %v8101_v39 = vld [vmem:[#allocation14 + $0x160] sm:$0xf]  ;;  %v8462_v42 = vor.u32 %v10177_v29, %v8459_v53  ;;  %v10170_v47 = vld [vmem:[#allocation14 + $0x3fc] sm:$0xf]  ;;  %v10153_v23 = vld [vmem:[#allocation14 + $0x370] sm:$0xf0] }
 0x30d   :  { %6080 = vmatmul.bf16.vlgmr.msra.gmra.mxu2 %v11051_v62 }
 0x30e   :  { %6128 = vmatpush.bf16.msrb.mxu2 %v9022_v45  ;;  %v8910_v45 = vor.u32 %v10289_v37, %v8907_v41  ;;  %6051 = vmatpush.bf16.msra.mxu0 %v9270_v57  ;;  %v9578_v37 = vor.u32 %v10460_v51, %v9577_v28  ;;  %v10090_v41 = vld [vmem:[#allocation14 + $0x178] sm:$0xf0]  ;;  %v10453_v57 = vld [vmem:[#allocation14 + $0xcd0] sm:$0xf0]  ;;  %v9470_v51 = vor.u32 %v10429_v14, %v9467_v20  ;;  %v9355_v20 = vld [vmem:[#allocation14 + $0xb4c] sm:$0xf0] }
 0x30f   :  { %6010 = vmatmul.bf16.vlgmr.msrb.gmra.mxu1 %v11060_v35  ;;  %6094 = vmatmul.bf16.vlgmr.msra.gmra.mxu3 %v11039_v34  ;;  %v8102_v26 = vor.u32 %v10090_v41, %v8101_v39  ;;  %v8325_v39 = vld [vmem:[#allocation14 + $0x320] sm:$0xf]  ;;  %v10146_v41 = vld [vmem:[#allocation14 + $0x338] sm:$0xf0]  ;;  %v10401_v14 = vld [vmem:[#allocation14 + $0xb34] sm:$0xf] }
 0x310   :  { %6058 = vmatpush.bf16.msra.mxu1 %v9690_v46  ;;  %6142 = vmatpush.bf16.msrb.mxu3 %v9246_v56  ;;  %v9134_v46 = vor.u32 %v10345_v36, %v9131_v40  ;;  %v9550_v56 = vor.u32 %v10453_v57, %v9549_v52  ;;  %v9439_v36 = vld [vmem:[#allocation14 + $0xbf4] sm:$0xf0]  ;;  %v7989_v40 = vld [vmem:[#allocation14 + $0x80] sm:$0xf]  ;;  %v10247_v57 = vld [vmem:[#allocation14 + $0x664] sm:$0xf] }
 0x311   :  { %6052 = vmatmul.bf16.vlgmr.msra.gmra.mxu0 %v11081_v19 }
 0x312   :  { %6129 = vmatpush.bf16.msrb.mxu2 %v8994_v38  ;;  %6100 = vmatpush.bf16.msrb.mxu0 %v8574_v50  ;;  %v8882_v38 = vor.u32 %v10282_v16, %v8879_v0  ;;  %v8431_v50 = vld [vmem:[#allocation14 + $0x414] sm:$0xf0]  ;;  %v9521_v0 = vld [vmem:[#allocation14 + $0xc80] sm:$0xf] }
 0x313   :  { %v8434_v16 = vor.u32 %v10170_v47, %v8431_v50  ;;  %v9522_v7 = vor.u32 %v10446_v1, %v9521_v0  ;;  %v11103_v47 = vpop.f32.mrf.mxu2  ;;  %v11107_v0 = vpop.f32.mrf.mxu3 }
 0x314   :  { %6059 = vmatpush.bf16.msra.mxu1 %v9662_v43  ;;  %6143 = vmatpush.bf16.msrb.mxu3 %v9218_v25  ;;  %v10163_v43 = vld [vmem:[#allocation14 + $0x3c4] sm:$0xf]  ;;  %v8045_v25 = vld [vmem:[#allocation14 + $0xf0] sm:$0xf] }
 0x315   :  { %v8046_v12 = vor.u32 %v10076_v3, %v8045_v25  ;;  %v9383_v25 = vld [vmem:[#allocation14 + $0xb84] sm:$0xf0]  ;;  %v10048_v3 = vld [vmem:[#allocation14 + $0x28] sm:$0xf0] }
 0x316   :  { %6130 = vmatpush.bf16.msrb.mxu2 %v8966_v21  ;;  %6101 = vmatpush.bf16.msrb.mxu0 %v8546_v8  ;;  %v8854_v21 = vor.u32 %v10275_v5, %v8851_v6  ;;  %v8403_v8 = vld [vmem:[#allocation14 + $0x3dc] sm:$0xf0]  ;;  %v9493_v5 = vld [vmem:[#allocation14 + $0xc48] sm:$0xf]  ;;  %v10439_v6 = vld [vmem:[#allocation14 + $0xc60] sm:$0xf0] }
 0x317   :  { %v8406_v9 = vor.u32 %v10163_v43, %v8403_v8  ;;  %v10240_v43 = vld [vmem:[#allocation14 + $0x62c] sm:$0xf]  ;;  %v8711_v8 = vld [vmem:[#allocation14 + $0x644] sm:$0xf0] }
 0x318   :  { %6060 = vmatpush.bf16.msra.mxu1 %v9634_v13  ;;  %6144 = vmatpush.bf16.msrb.mxu3 %v9190_v18  ;;  %v8375_v13 = vld [vmem:[#allocation14 + $0x3a4] sm:$0xf0]  ;;  %v8795_v18 = vld [vmem:[#allocation14 + $0x6ec] sm:$0xf0] }
 0x319   :  { %v8378_v24 = vor.u32 %v10156_v10, %v8375_v13  ;;  %v8714_v10 = vor.u32 %v10240_v43, %v8711_v8  ;;  %v9025_v13 = vld [vmem:[#allocation14 + $0x898] sm:$0xf]  ;;  %v8941_v43 = vld [vmem:[#allocation14 + $0x7f0] sm:$0xf] }
 0x31a   :  { %6131 = vmatpush.bf16.msrb.mxu2 %v8938_v44  ;;  %6102 = vmatpush.bf16.msrb.mxu0 %v8518_v15  ;;  %v9162_v44 = vor.u32 %v10352_v11, %v9159_v33  ;;  %v10324_v15 = vld [vmem:[#allocation14 + $0x8cc] sm:$0xf]  ;;  %v9494_v11 = vor.u32 %v10439_v6, %v9493_v5  ;;  %v10069_v33 = vld [vmem:[#allocation14 + $0xd0] sm:$0xf0]  ;;  %v8269_v5 = vld [vmem:[#allocation14 + $0x2b0] sm:$0xf] }
 0x31b   :  { %v9050_v28 = vor.u32 %v10324_v15, %v9047_v17  ;;  %v8018_v29 = vor.u32 %v10069_v33, %v8017_v22  ;;  %v10132_v6 = vld [vmem:[#allocation14 + $0x2c8] sm:$0xf0]  ;;  %v10321_v15 = vld [vmem:[#allocation14 + $0x8b0] sm:$0xf0] }
 0x31c   :  { %6061 = vmatpush.bf16.msra.mxu1 %v9606_v31  ;;  %6145 = vmatpush.bf16.msrb.mxu3 %v9162_v44  ;;  %v8353_v31 = vld [vmem:[#allocation14 + $0x358] sm:$0xf]  ;;  %v10233_v17 = vld [vmem:[#allocation14 + $0x5f4] sm:$0xf]  ;;  %v9026_v22 = vor.u32 %v10321_v15, %v9025_v13 }
 0x31d   :  { %v8767_v44 = vld [vmem:[#allocation14 + $0x6b4] sm:$0xf0]  ;;  %v8354_v53 = vor.u32 %v10153_v23, %v8353_v31  ;;  %v10125_v33 = vld [vmem:[#allocation14 + $0x290] sm:$0xf0]  ;;  %v11112_v31 = vpop.f32.mrf.mxu2 }
 0x31e   :  { %6132 = vmatpush.bf16.msrb.mxu2 %v8910_v45  ;;  %6103 = vmatpush.bf16.msrb.mxu0 %v8490_v27  ;;  %v9103_v45 = vld [vmem:[#allocation14 + $0x954] sm:$0xf0] }
 0x31f   :  { %v9106_v59 = vor.u32 %v10338_v54, %v9103_v45  ;;  %v10415_v54 = vld [vmem:[#allocation14 + $0xba4] sm:$0xf]  ;;  %v9411_v45 = vld [vmem:[#allocation14 + $0xbbc] sm:$0xf0] }
 0x320   :  { %6062 = vmatpush.bf16.msra.mxu1 %v9578_v37  ;;  %6146 = vmatpush.bf16.msrb.mxu3 %v9134_v46  ;;  %v10062_v37 = vld [vmem:[#allocation14 + $0x98] sm:$0xf0]  ;;  %v8739_v46 = vld [vmem:[#allocation14 + $0x67c] sm:$0xf0] }
 0x321   :  { %v7990_v50 = vor.u32 %v10062_v37, %v7989_v40  ;;  %v8742_v1 = vor.u32 %v10247_v57, %v8739_v46  ;;  %v8213_v37 = vld [vmem:[#allocation14 + $0x240] sm:$0xf]  ;;  %v10307_v57 = vld [vmem:[#allocation14 + $0x840] sm:$0xf0] }
 0x322   :  { %6133 = vmatpush.bf16.msrb.mxu2 %v8882_v38  ;;  %6104 = vmatpush.bf16.msrb.mxu0 %v8462_v42  ;;  %v9075_v38 = vld [vmem:[#allocation14 + $0x91c] sm:$0xf0] }
 0x323   :  { %v9078_v63 = vor.u32 %v10331_v2, %v9075_v38  ;;  %v10408_v38 = vld [vmem:[#allocation14 + $0xb6c] sm:$0xf] }
 0x324   :  { %6063 = vmatpush.bf16.msra.mxu1 %v9550_v56  ;;  %6147 = vmatpush.bf16.msrb.mxu3 %v9106_v59  ;;  %v7961_v56 = vld [vmem:[#allocation14 + $0x48] sm:$0xf]  ;;  %v9414_v59 = vor.u32 %v10415_v54, %v9411_v45 }
 0x326   :  { %6134 = vmatpush.bf16.msrb.mxu2 %v8854_v21  ;;  %6105 = vmatpush.bf16.msrb.mxu0 %v8434_v16  ;;  %v10261_v21 = vld [vmem:[#allocation14 + $0x6d4] sm:$0xf]  ;;  %v10139_v16 = vld [vmem:[#allocation14 + $0x300] sm:$0xf0] }
 0x327   :  { %v8798_v27 = vor.u32 %v10261_v21, %v8795_v18  ;;  %v8298_v2 = vor.u32 %v10139_v16, %v8297_v61  ;;  %v8683_v21 = vld [vmem:[#allocation14 + $0x60c] sm:$0xf0]  ;;  %v5787_v61 = vpop.f32.mrf.mxu1 }
 0x328   :  { %6064 = vmatpush.bf16.msra.mxu1 %v9522_v7  ;;  %6148 = vmatpush.bf16.msrb.mxu3 %v9078_v63  ;;  %v7933_v7 = vld [vmem:[#allocation14 + $0x10] sm:$0xf]  ;;  %v9386_v63 = vor.u32 %v10408_v38, %v9383_v25  ;;  %v8686_v23 = vor.u32 %v10233_v17, %v8683_v21  ;;  %v10300_v38 = vld [vmem:[#allocation14 + $0x808] sm:$0xf0]  ;;  %v10485_v17 = vld [vmem:[#allocation14 + $0xdd4] sm:$0xf] }
 0x329   :  { %v7934_v18 = vor.u32 %v10048_v3, %v7933_v7  ;;  %v10212_v25 = vld [vmem:[#allocation14 + $0x54c] sm:$0xf]  ;;  %v8599_v7 = vld [vmem:[#allocation14 + $0x564] sm:$0xf0]  ;;  %v9691_v21 = vld [vmem:[#allocation14 + $0xdec] sm:$0xf0] }
 0x32a   :  { %6135 = vmatpush.bf16.msrb.mxu2 %v8826_v30  ;;  %6106 = vmatpush.bf16.msrb.mxu0 %v8406_v9  ;;  %v10254_v30 = vld [vmem:[#allocation14 + $0x69c] sm:$0xf]  ;;  %v11110_v9 = vpop.f32.mrf.mxu0 }
 0x32b   :  { %v8770_v42 = vor.u32 %v10254_v30, %v8767_v44  ;;  %v10226_v30 = vld [vmem:[#allocation14 + $0x5bc] sm:$0xf]  ;;  %v8655_v44 = vld [vmem:[#allocation14 + $0x5d4] sm:$0xf0] }
 0x32c   :  { %6065 = vmatpush.bf16.msra.mxu1 %v9494_v11  ;;  %6149 = vmatpush.bf16.msrb.mxu3 %v9050_v28  ;;  %v8241_v11 = vld [vmem:[#allocation14 + $0x278] sm:$0xf]  ;;  %v11114_v28 = vld [vmem:[#allocation16] sm:$0xff] }
 0x32d   :  { %6136 = vmatmul.bf16.vlgmr.msrb.gmra.mxu2 %v11068_v55 }
 0x32e   :  { %6184 = vmatpush.bf16.msra.mxu2 %v8130_v32  ;;  %v10422_v32 = vld [vmem:[#allocation14 + $0xbdc] sm:$0xf]  ;;  %6107 = vmatpush.bf16.msrb.mxu0 %v8378_v24  ;;  %v8997_v24 = vld [vmem:[#allocation14 + $0x860] sm:$0xf] }
 0x32f   :  { %v9442_v52 = vor.u32 %v10422_v32, %v9439_v36  ;;  %6066 = vmatmul.bf16.vlgmr.msra.gmra.mxu1 %v11088_v4  ;;  %6150 = vmatmul.bf16.vlgmr.msrb.gmra.mxu3 %v11073_v49  ;;  %v10394_v32 = vld [vmem:[#allocation14 + $0xafc] sm:$0xf]  ;;  %v9327_v36 = vld [vmem:[#allocation14 + $0xb14] sm:$0xf0] }
 0x330   :  { %6114 = vmatpush.bf16.msrb.mxu1 %v8798_v27  ;;  %6198 = vmatpush.bf16.msra.mxu3 %v8354_v53  ;;  %v10314_v27 = vld [vmem:[#allocation14 + $0x878] sm:$0xf0]  ;;  %v8242_v53 = vor.u32 %v10125_v33, %v8241_v11  ;;  %v9330_v46 = vor.u32 %v10394_v32, %v9327_v36  ;;  %v10293_v11 = vld [vmem:[#allocation14 + $0x7d0] sm:$0xf0]  ;;  %v9249_v33 = vld [vmem:[#allocation14 + $0xa58] sm:$0xf] }
 0x331   :  { %6108 = vmatmul.bf16.vlgmr.msrb.gmra.mxu0 %v11064_v58  ;;  %v8998_v40 = vor.u32 %v10314_v27, %v8997_v24  ;;  %v9694_v27 = vor.u32 %v10485_v17, %v9691_v21  ;;  %v10478_v32 = vld [vmem:[#allocation14 + $0xd9c] sm:$0xf]  ;;  %v9663_v36 = vld [vmem:[#allocation14 + $0xdb4] sm:$0xf0]  ;;  %v8493_v21 = vld [vmem:[#allocation14 + $0x470] sm:$0xf] }
 0x332   :  { %6185 = vmatpush.bf16.msra.mxu2 %v8102_v26  ;;  %6156 = vmatpush.bf16.msra.mxu0 %v9470_v51  ;;  %v8326_v26 = vor.u32 %v10146_v41, %v8325_v39  ;;  %v9358_v51 = vor.u32 %v10401_v14, %v9355_v20  ;;  %v10118_v39 = vld [vmem:[#allocation14 + $0x258] sm:$0xf0]  ;;  %v3418_v41 = vperm.slane %v11114_v28, 0  ;;  %v11120_v54 = vpop.f32.mrf.mxu0  ;;  %v8913_v14 = vld [vmem:[#allocation14 + $0x7b8] sm:$0xf] }
 0x333   :  { %v8214_v45 = vor.u32 %v10118_v39, %v8213_v37  ;;  %v10202_v39 = vld [vmem:[#allocation14 + $0x4f8] sm:$0xf0] }
 0x334   :  { %6115 = vmatpush.bf16.msrb.mxu1 %v8770_v42  ;;  %6199 = vmatpush.bf16.msra.mxu3 %v8326_v26  ;;  %v8658_v42 = vor.u32 %v10226_v30, %v8655_v44  ;;  %v8627_v26 = vld [vmem:[#allocation14 + $0x59c] sm:$0xf0]  ;;  %v5746_v8 = vadd.f32 %v11103_v47, %v3418_v41  ;;  %v8942_v47 = vor.u32 %v10300_v38, %v8941_v43 }
 0x336   :  { %6186 = vmatpush.bf16.msra.mxu2 %v8074_v48  ;;  %6157 = vmatpush.bf16.msra.mxu0 %v9442_v52  ;;  %v7962_v48 = vor.u32 %v10055_v60, %v7961_v56  ;;  %v8969_v52 = vld [vmem:[#allocation14 + $0x828] sm:$0xf]  ;;  %v10387_v56 = vld [vmem:[#allocation14 + $0xac4] sm:$0xf]  ;;  %v9299_v60 = vld [vmem:[#allocation14 + $0xadc] sm:$0xf0]  ;;  %v5760_v20 = vadd.f32 %v11107_v0, %v5746_v8 }
 0x337   :  { %v8970_v16 = vor.u32 %v10307_v57, %v8969_v52  ;;  %v9302_v3 = vor.u32 %v10387_v56, %v9299_v60  ;;  %v8549_v0 = vld [vmem:[#allocation14 + $0x4e0] sm:$0xf]  ;;  %v5748_v52 = vadd.f32 %v11112_v31, %v3418_v41  ;;  %v10286_v57 = vld [vmem:[#allocation14 + $0x798] sm:$0xf0]  ;;  %v8521_v31 = vld [vmem:[#allocation14 + $0x4a8] sm:$0xf] }
 0x338   :  { %6116 = vmatpush.bf16.msrb.mxu1 %v8742_v1  ;;  %6200 = vmatpush.bf16.msra.mxu3 %v8298_v2  ;;  %v8185_v1 = vld [vmem:[#allocation14 + $0x208] sm:$0xf]  ;;  %v8550_v60 = vor.u32 %v10202_v39, %v8549_v0  ;;  %v10195_v41 = vld [vmem:[#allocation14 + $0x4c0] sm:$0xf0] }
 0x339   :  { %v8857_v8 = vld [vmem:[#allocation14 + $0x748] sm:$0xf] }
 0x33a   :  { %6187 = vmatpush.bf16.msra.mxu2 %v8046_v12  ;;  %6158 = vmatpush.bf16.msra.mxu0 %v9414_v59  ;;  %v8270_v12 = vor.u32 %v10132_v6, %v8269_v5  ;;  %v10111_v59 = vld [vmem:[#allocation14 + $0x220] sm:$0xf0]  ;;  %v10380_v5 = vld [vmem:[#allocation14 + $0xa8c] sm:$0xf]  ;;  %v9271_v6 = vld [vmem:[#allocation14 + $0xaa4] sm:$0xf0]  ;;  %v5829_v30 = vpop.f32.mrf.mxu0 }
 0x33b   :  { %v8186_v15 = vor.u32 %v10111_v59, %v8185_v1  ;;  %v9274_v24 = vor.u32 %v10380_v5, %v9271_v6  ;;  %v9635_v1 = vld [vmem:[#allocation14 + $0xd7c] sm:$0xf0] }
 0x33c   :  { %6117 = vmatpush.bf16.msrb.mxu1 %v8714_v10  ;;  %6201 = vmatpush.bf16.msra.mxu3 %v8270_v12  ;;  %v8157_v10 = vld [vmem:[#allocation14 + $0x1d0] sm:$0xf]  ;;  %v10209_v12 = vld [vmem:[#allocation14 + $0x530] sm:$0xf0] }
 0x33e   :  { %6188 = vmatpush.bf16.msra.mxu2 %v8018_v29  ;;  %6159 = vmatpush.bf16.msra.mxu0 %v9386_v63  ;;  %v11116_v29 = vpop.f32.mrf.mxu3  ;;  %v10104_v63 = vld [vmem:[#allocation14 + $0x1e8] sm:$0xf0] }
 0x33f   :  { %v8158_v44 = vor.u32 %v10104_v63, %v8157_v10 }
 0x340   :  { %6118 = vmatpush.bf16.msrb.mxu1 %v8686_v23  ;;  %6202 = vmatpush.bf16.msra.mxu3 %v8242_v53  ;;  %v10377_v23 = vld [vmem:[#allocation14 + $0xa70] sm:$0xf0] }
 0x341   :  { %v9250_v37 = vor.u32 %v10377_v23, %v9249_v33  ;;  %v8131_v23 = vld [vmem:[#allocation14 + $0x1b4] sm:$0xf0] }
 0x342   :  { %6189 = vmatpush.bf16.msra.mxu2 %v7990_v50  ;;  %6160 = vmatpush.bf16.msra.mxu0 %v9358_v51  ;;  %v10219_v50 = vld [vmem:[#allocation14 + $0x584] sm:$0xf]  ;;  %v5774_v51 = vadd.f32 %v11110_v9, %v5760_v20  ;;  %v10370_v9 = vld [vmem:[#allocation14 + $0xa38] sm:$0xf0]  ;;  %v10272_v20 = vld [vmem:[#allocation14 + $0x728] sm:$0xf0] }
 0x343   :  { %v8630_v2 = vor.u32 %v10219_v50, %v8627_v26  ;;  %v5789_v50 = vpop.f32.mrf.mxu1  ;;  %v9666_v26 = vor.u32 %v10478_v32, %v9663_v36 }
 0x344   :  { %6119 = vmatpush.bf16.msrb.mxu1 %v8658_v42  ;;  %6203 = vmatpush.bf16.msra.mxu3 %v8214_v45  ;;  %v8885_v42 = vld [vmem:[#allocation14 + $0x780] sm:$0xf]  ;;  %v5788_v45 = vadd.f32 %v5787_v61, %v5774_v51  ;;  %v10279_v61 = vld [vmem:[#allocation14 + $0x760] sm:$0xf0] }
 0x345   :  { %v8886_v59 = vor.u32 %v10286_v57, %v8885_v42  ;;  %v8858_v63 = vor.u32 %v10279_v61, %v8857_v8  ;;  %v9137_v42 = vld [vmem:[#allocation14 + $0x978] sm:$0xf]  ;;  %v10342_v8 = vld [vmem:[#allocation14 + $0x958] sm:$0xf0]  ;;  %v8075_v61 = vld [vmem:[#allocation14 + $0x144] sm:$0xf0] }
 0x346   :  { %6190 = vmatpush.bf16.msra.mxu2 %v7962_v48  ;;  %v11125_v48 = vpop.f32.mrf.mxu2  ;;  %6161 = vmatpush.bf16.msra.mxu0 %v9330_v46  ;;  %v11127_v13 = vpop.f32.mrf.mxu3  ;;  %v9221_v46 = vld [vmem:[#allocation14 + $0xa20] sm:$0xf] }
 0x347   :  { %v9222_v43 = vor.u32 %v10370_v9, %v9221_v46  ;;  %v5802_v38 = vadd.f32 %v11125_v48, %v5788_v45  ;;  %v9607_v48 = vld [vmem:[#allocation14 + $0xd44] sm:$0xf0]  ;;  %v10087_v46 = vld [vmem:[#allocation14 + $0x164] sm:$0xf]  ;;  %v8103_v9 = vld [vmem:[#allocation14 + $0x17c] sm:$0xf0] }
 0x348   :  { %6120 = vmatpush.bf16.msrb.mxu1 %v8630_v2  ;;  %6204 = vmatpush.bf16.msra.mxu3 %v8186_v15  ;;  %v5762_v2 = vadd.f32 %v11116_v29, %v5748_v52  ;;  %v8522_v29 = vor.u32 %v10195_v41, %v8521_v31  ;;  %v10464_v15 = vld [vmem:[#allocation14 + $0xd2c] sm:$0xf]  ;;  %v10349_v52 = vld [vmem:[#allocation14 + $0x990] sm:$0xf0]  ;;  %v8106_v31 = vor.u32 %v10087_v46, %v8103_v9  ;;  %v9109_v41 = vld [vmem:[#allocation14 + $0x940] sm:$0xf] }
 0x349   :  { %v5816_v10 = vadd.f32 %v11127_v13, %v5802_v38  ;;  %v9610_v33 = vor.u32 %v10464_v15, %v9607_v48  ;;  %v10094_v13 = vld [vmem:[#allocation14 + $0x19c] sm:$0xf]  ;;  %v3419_v15 = vperm.slane %v11114_v28, 1  ;;  %v9110_v48 = vor.u32 %v10342_v8, %v9109_v41  ;;  %v8019_v46 = vld [vmem:[#allocation14 + $0xd4] sm:$0xf0] }
 0x34a   :  { %6191 = vmatpush.bf16.msra.mxu2 %v7934_v18  ;;  %v8577_v18 = vld [vmem:[#allocation14 + $0x518] sm:$0xf]  ;;  %6162 = vmatpush.bf16.msra.mxu0 %v9302_v3  ;;  %v10363_v3 = vld [vmem:[#allocation14 + $0xa00] sm:$0xf0]  ;;  %v5776_v6 = vadd.f32 %v11120_v54, %v5762_v2  ;;  %v8134_v39 = vor.u32 %v10094_v13, %v8131_v23  ;;  %v8381_v13 = vld [vmem:[#allocation14 + $0x390] sm:$0xf] }
 0x34b   :  { %v8578_v53 = vor.u32 %v10209_v12, %v8577_v18  ;;  %v8829_v18 = vld [vmem:[#allocation14 + $0x710] sm:$0xf]  ;;  %v5830_v12 = vadd.f32 %v5829_v30, %v5816_v10  ;;  %v5843_v54 = vpop.f32.mrf.mxu1  ;;  %v8465_v30 = vld [vmem:[#allocation14 + $0x438] sm:$0xf]  ;;  %v10443_v10 = vld [vmem:[#allocation14 + $0xc84] sm:$0xf] }
 0x34c   :  { %6205 = vmatpush.bf16.msra.mxu3 %v8158_v44  ;;  %v10457_v44 = vld [vmem:[#allocation14 + $0xcf4] sm:$0xf]  ;;  %v8830_v32 = vor.u32 %v10272_v20, %v8829_v18  ;;  %v10335_v18 = vld [vmem:[#allocation14 + $0x920] sm:$0xf0]  ;;  %v8047_v20 = vld [vmem:[#allocation14 + $0x10c] sm:$0xf0] }
 0x34d   :  { %6192 = vmatmul.bf16.vlgmr.msra.gmra.mxu2 %v11051_v62  ;;  %v10160_v23 = vld [vmem:[#allocation14 + $0x3a8] sm:$0xf0]  ;;  %v10150_v9 = vld [vmem:[#allocation14 + $0x35c] sm:$0xf]  ;;  %v9445_v8 = vld [vmem:[#allocation14 + $0xbe0] sm:$0xf] }
 0x34e   :  { %6240 = vmatpush.bf16.msrb.mxu2 %v9026_v22  ;;  %v8602_v22 = vor.u32 %v10212_v25, %v8599_v7  ;;  %6163 = vmatpush.bf16.msra.mxu0 %v9274_v24  ;;  %v5803_v56 = vpop.f32.mrf.mxu2  ;;  %v5817_v25 = vpop.f32.mrf.mxu3  ;;  %v9193_v7 = vld [vmem:[#allocation14 + $0x9e8] sm:$0xf]  ;;  %v5790_v24 = vadd.f32 %v5789_v50, %v5776_v6 }
 0x34f   :  { %6206 = vmatmul.bf16.vlgmr.msra.gmra.mxu3 %v11039_v34  ;;  %v9194_v17 = vor.u32 %v10363_v3, %v9193_v7 }
 0x350   :  { %6121 = vmatpush.bf16.msrb.mxu1 %v8602_v22  ;;  %6254 = vmatpush.bf16.msrb.mxu3 %v9250_v37  ;;  %v9165_v22 = vld [vmem:[#allocation14 + $0x9b0] sm:$0xf]  ;;  %v5804_v37 = vadd.f32 %v5803_v56, %v5790_v24  ;;  %v8437_v56 = vld [vmem:[#allocation14 + $0x400] sm:$0xf] }
 0x351   :  { %6164 = vmatmul.bf16.vlgmr.msra.gmra.mxu0 %v11081_v19  ;;  %v9053_v24 = vld [vmem:[#allocation14 + $0x8d0] sm:$0xf] }
 0x352   :  { %6241 = vmatpush.bf16.msrb.mxu2 %v8998_v40  ;;  %v8914_v40 = vor.u32 %v10293_v11, %v8913_v14  ;;  %6212 = vmatpush.bf16.msrb.mxu0 %v8578_v53  ;;  %v5831_v14 = vpop.f32.mrf.mxu0  ;;  %v10356_v11 = vld [vmem:[#allocation14 + $0x9c8] sm:$0xf0]  ;;  %v9579_v53 = vld [vmem:[#allocation14 + $0xd0c] sm:$0xf0]  ;;  %v5818_v50 = vadd.f32 %v5817_v25, %v5804_v37  ;;  %v10433_v37 = vld [vmem:[#allocation14 + $0xc30] sm:$0xf0] }
 0x353   :  { %6122 = vmatmul.bf16.vlgmr.msrb.gmra.mxu1 %v11060_v35  ;;  %v9166_v36 = vor.u32 %v10356_v11, %v9165_v22  ;;  %v9582_v57 = vor.u32 %v10457_v44, %v9579_v53  ;;  %v5845_v2 = vpop.f32.mrf.mxu1  ;;  %v10080_v25 = vld [vmem:[#allocation14 + $0x12c] sm:$0xf]  ;;  %v9495_v11 = vld [vmem:[#allocation14 + $0xc64] sm:$0xf0]  ;;  %v8801_v53 = vld [vmem:[#allocation14 + $0x6d8] sm:$0xf] }
 0x354   :  { %6170 = vmatpush.bf16.msra.mxu1 %v9694_v27  ;;  %6255 = vmatpush.bf16.msrb.mxu3 %v9222_v43  ;;  %v5844_v27 = vadd.f32 %v5843_v54, %v5830_v12  ;;  %v5832_v43 = vadd.f32 %v5831_v14, %v5818_v50  ;;  %v10073_v12 = vld [vmem:[#allocation14 + $0xf4] sm:$0xf]  ;;  %v10436_v22 = vld [vmem:[#allocation14 + $0xc4c] sm:$0xf]  ;;  %v8355_v50 = vld [vmem:[#allocation14 + $0x374] sm:$0xf0] }
 0x355   :  { %v10328_v44 = vld [vmem:[#allocation14 + $0x8e8] sm:$0xf0]  ;;  %v8358_v41 = vor.u32 %v10150_v9, %v8355_v50  ;;  %v10318_v9 = vld [vmem:[#allocation14 + $0x89c] sm:$0xf]  ;;  %v9027_v50 = vld [vmem:[#allocation14 + $0x8b4] sm:$0xf0] }
 0x356   :  { %6242 = vmatpush.bf16.msrb.mxu2 %v8970_v16  ;;  %v10471_v16 = vld [vmem:[#allocation14 + $0xd64] sm:$0xf]  ;;  %6213 = vmatpush.bf16.msrb.mxu0 %v8550_v60  ;;  %v5857_v0 = vpop.f32.mrf.mxu2  ;;  %10511 = vtanh.f32 %v5844_v27  ;;  %v10450_v60 = vld [vmem:[#allocation14 + $0xcbc] sm:$0xf] }
 0x357   :  { %v9638_v5 = vor.u32 %v10471_v16, %v9635_v1  ;;  %v9551_v16 = vld [vmem:[#allocation14 + $0xcd4] sm:$0xf0]  ;;  %v9138_v1 = vor.u32 %v10349_v52, %v9137_v42  ;;  %v5858_v27 = vadd.f32 %v5857_v0, %v3419_v15 }
 0x358   :  { %6171 = vmatpush.bf16.msra.mxu1 %v9666_v26  ;;  %6256 = vmatpush.bf16.msrb.mxu3 %v9194_v17  ;;  %v11141_v26 = vpop.f32.mrf.mxu3  ;;  %v9554_v38 = vor.u32 %v10450_v60, %v9551_v16  ;;  %v10167_v17 = vld [vmem:[#allocation14 + $0x3e0] sm:$0xf0] }
 0x359   :  { %v5872_v42 = vadd.f32 %v11141_v26, %v5858_v27  ;;  %v8717_v27 = vld [vmem:[#allocation14 + $0x630] sm:$0xf] }
 0x35a   :  { %6243 = vmatpush.bf16.msrb.mxu2 %v8942_v47  ;;  %v10188_v47 = vld [vmem:[#allocation14 + $0x488] sm:$0xf0]  ;;  %6214 = vmatpush.bf16.msrb.mxu0 %v8522_v29  ;;  %v5885_v3 = vpop.f32.mrf.mxu0  ;;  %v9523_v29 = vld [vmem:[#allocation14 + $0xc9c] sm:$0xf0] }
 0x35b   :  { %v8494_v51 = vor.u32 %v10188_v47, %v8493_v21  ;;  %v8078_v21 = vor.u32 %v10080_v25, %v8075_v61  ;;  %v9081_v47 = vld [vmem:[#allocation14 + $0x908] sm:$0xf]  ;;  %v9526_v14 = vor.u32 %v10443_v10, %v9523_v29  ;;  %v5899_v52 = vpop.f32.mrf.mxu1  ;;  %v5886_v16 = vadd.f32 %v5885_v3, %v5872_v42  ;;  %v7991_v61 = vld [vmem:[#allocation14 + $0x9c] sm:$0xf0]  ;;  %v10129_v42 = vld [vmem:[#allocation14 + $0x2b4] sm:$0xf] }
 0x35c   :  { %6172 = vmatpush.bf16.msra.mxu1 %v9638_v5  ;;  %6257 = vmatpush.bf16.msrb.mxu3 %v9166_v36  ;;  %v10512_v7 = vpop.eup %10511  ;;  %v5846_v5 = vadd.f32 %v5845_v2, %v5832_v43  ;;  %v10258_v43 = vld [vmem:[#allocation14 + $0x6b8] sm:$0xf0] }
 0x35d   :  { %6534 = vst [vmem:[#allocation17] sm:$0xff] %v10512_v7  ;;  %v10426_v2 = vld [vmem:[#allocation14 + $0xbf8] sm:$0xf0]  ;;  %v5900_v25 = vadd.f32 %v5899_v52, %v5886_v16  ;;  %v10143_v7 = vld [vmem:[#allocation14 + $0x324] sm:$0xf] }
 0x35e   :  { %6244 = vmatpush.bf16.msrb.mxu2 %v8914_v40  ;;  %v10181_v40 = vld [vmem:[#allocation14 + $0x450] sm:$0xf0]  ;;  %6215 = vmatpush.bf16.msrb.mxu0 %v8494_v51  ;;  %10513 = vtanh.f32 %v5846_v5  ;;  %v5859_v54 = vpop.f32.mrf.mxu2  ;;  %v9082_v51 = vor.u32 %v10335_v18, %v9081_v47  ;;  %v8327_v5 = vld [vmem:[#allocation14 + $0x33c] sm:$0xf0]  ;;  %v9446_v29 = vor.u32 %v10426_v2, %v9445_v8  ;;  %v9417_v47 = vld [vmem:[#allocation14 + $0xba8] sm:$0xf] }
 0x35f   :  { %v8466_v45 = vor.u32 %v10181_v40, %v8465_v30  ;;  %v8050_v30 = vor.u32 %v10073_v12, %v8047_v20  ;;  %v9473_v40 = vld [vmem:[#allocation14 + $0xc18] sm:$0xf]  ;;  %v5860_v10 = vadd.f32 %v5859_v54, %v3419_v15  ;;  %v10419_v18 = vld [vmem:[#allocation14 + $0xbc0] sm:$0xf0]  ;;  %v10052_v12 = vld [vmem:[#allocation14 + $0x4c] sm:$0xf] }
 0x360   :  { %6173 = vmatpush.bf16.msra.mxu1 %v9610_v33  ;;  %6258 = vmatpush.bf16.msrb.mxu3 %v9138_v1  ;;  %v5873_v36 = vpop.f32.mrf.mxu3  ;;  %v9054_v1 = vor.u32 %v10328_v44, %v9053_v24  ;;  %v7963_v15 = vld [vmem:[#allocation14 + $0x64] sm:$0xf0]  ;;  %v9418_v24 = vor.u32 %v10419_v18, %v9417_v47  ;;  %v8271_v52 = vld [vmem:[#allocation14 + $0x2cc] sm:$0xf0]  ;;  %v10122_v8 = vld [vmem:[#allocation14 + $0x27c] sm:$0xf] }
 0x361   :  { %v8299_v54 = vld [vmem:[#allocation14 + $0x304] sm:$0xf0]  ;;  %v7966_v44 = vor.u32 %v10052_v12, %v7963_v15  ;;  %v8243_v2 = vld [vmem:[#allocation14 + $0x294] sm:$0xf0]  ;;  %v10115_v18 = vld [vmem:[#allocation14 + $0x244] sm:$0xf] }
 0x362   :  { %6245 = vmatpush.bf16.msrb.mxu2 %v8886_v59  ;;  %v10174_v59 = vld [vmem:[#allocation14 + $0x418] sm:$0xf0]  ;;  %6216 = vmatpush.bf16.msrb.mxu0 %v8466_v45  ;;  %v8382_v45 = vor.u32 %v10160_v23, %v8381_v13  ;;  %v8215_v12 = vld [vmem:[#allocation14 + $0x25c] sm:$0xf0] }
 0x363   :  { %v8438_v6 = vor.u32 %v10174_v59, %v8437_v56  ;;  %v9474_v56 = vor.u32 %v10433_v37, %v9473_v40  ;;  %v8773_v59 = vld [vmem:[#allocation14 + $0x6a0] sm:$0xf] }
 0x364   :  { %6174 = vmatpush.bf16.msra.mxu1 %v9582_v57  ;;  %6259 = vmatpush.bf16.msrb.mxu3 %v9110_v48  ;;  %v9498_v57 = vor.u32 %v10436_v22, %v9495_v11  ;;  %v10514_v0 = vpop.eup %10513  ;;  %v8774_v3 = vor.u32 %v10258_v43, %v8773_v59  ;;  %v8745_v48 = vld [vmem:[#allocation14 + $0x668] sm:$0xf]  ;;  %v5901_v22 = vpop.f32.mrf.mxu1  ;;  %v10136_v11 = vld [vmem:[#allocation14 + $0x2ec] sm:$0xf]  ;;  %v9361_v59 = vld [vmem:[#allocation14 + $0xb38] sm:$0xf] }
 0x365   :  { %6541 = vst [vmem:[#allocation17 + $0x38] sm:$0xff] %v10514_v0  ;;  %v10405_v43 = vld [vmem:[#allocation14 + $0xb50] sm:$0xf0] }
 0x366   :  { %6246 = vmatpush.bf16.msrb.mxu2 %v8858_v63  ;;  %v8409_v63 = vld [vmem:[#allocation14 + $0x3c8] sm:$0xf]  ;;  %6217 = vmatpush.bf16.msrb.mxu0 %v8438_v6  ;;  %v5913_v6 = vpop.f32.mrf.mxu2 }
 0x367   :  { %v8410_v33 = vor.u32 %v10167_v17, %v8409_v63  ;;  %v10251_v63 = vld [vmem:[#allocation14 + $0x680] sm:$0xf0]  ;;  %v5914_v20 = vadd.f32 %v5913_v6, %v5900_v25  ;;  %v9362_v6 = vor.u32 %v10405_v43, %v9361_v59  ;;  %v8579_v59 = vld [vmem:[#allocation14 + $0x534] sm:$0xf0]  ;;  %v10290_v43 = vld [vmem:[#allocation14 + $0x7bc] sm:$0xf] }
 0x368   :  { %6175 = vmatpush.bf16.msra.mxu1 %v9554_v38  ;;  %6260 = vmatpush.bf16.msrb.mxu3 %v9082_v51  ;;  %v10059_v38 = vld [vmem:[#allocation14 + $0x84] sm:$0xf]  ;;  %v8746_v13 = vor.u32 %v10251_v63, %v8745_v48  ;;  %v10244_v51 = vld [vmem:[#allocation14 + $0x648] sm:$0xf0]  ;;  %v8246_v48 = vor.u32 %v10122_v8, %v8243_v2  ;;  %v9333_v63 = vld [vmem:[#allocation14 + $0xb00] sm:$0xf] }
 0x369   :  { %v7994_v17 = vor.u32 %v10059_v38, %v7991_v61  ;;  %v10311_v61 = vld [vmem:[#allocation14 + $0x864] sm:$0xf]  ;;  %v9251_v8 = vld [vmem:[#allocation14 + $0xa74] sm:$0xf0] }
 0x36a   :  { %6247 = vmatpush.bf16.msrb.mxu2 %v8830_v32  ;;  %v10265_v32 = vld [vmem:[#allocation14 + $0x6f0] sm:$0xf0]  ;;  %6218 = vmatpush.bf16.msrb.mxu0 %v8410_v33  ;;  %v5927_v33 = vpop.f32.mrf.mxu3 }
 0x36b   :  { %v8802_v60 = vor.u32 %v10265_v32, %v8801_v53  ;;  %v8302_v53 = vor.u32 %v10136_v11, %v8299_v54  ;;  %v9389_v32 = vld [vmem:[#allocation14 + $0xb70] sm:$0xf]  ;;  %v5928_v37 = vadd.f32 %v5927_v33, %v5914_v20  ;;  %v10304_v20 = vld [vmem:[#allocation14 + $0x82c] sm:$0xf]  ;;  %v8633_v11 = vld [vmem:[#allocation14 + $0x588] sm:$0xf] }
 0x36c   :  { %6176 = vmatpush.bf16.msra.mxu1 %v9526_v14  ;;  %6261 = vmatpush.bf16.msrb.mxu3 %v9054_v1  ;;  %v5874_v14 = vadd.f32 %v5873_v36, %v5860_v10  ;;  %v10412_v36 = vld [vmem:[#allocation14 + $0xb88] sm:$0xf0]  ;;  %v5955_v38 = vpop.f32.mrf.mxu1  ;;  %v10230_v10 = vld [vmem:[#allocation14 + $0x5d8] sm:$0xf0]  ;;  %v10223_v54 = vld [vmem:[#allocation14 + $0x5a0] sm:$0xf0] }
 0x36d   :  { %6248 = vmatmul.bf16.vlgmr.msrb.gmra.mxu2 %v11068_v55  ;;  %v9390_v0 = vor.u32 %v10412_v36, %v9389_v32  ;;  %v10297_v32 = vld [vmem:[#allocation14 + $0x7f4] sm:$0xf]  ;;  %v8943_v36 = vld [vmem:[#allocation14 + $0x80c] sm:$0xf0] }
 0x36e   :  { %6296 = vmatpush.bf16.msra.mxu2 %v8134_v39  ;;  %v10066_v39 = vld [vmem:[#allocation14 + $0xbc] sm:$0xf]  ;;  %6219 = vmatpush.bf16.msrb.mxu0 %v8382_v45  ;;  %v8689_v45 = vld [vmem:[#allocation14 + $0x5f8] sm:$0xf]  ;;  %v5915_v16 = vpop.f32.mrf.mxu2 }
 0x36f   :  { %v8022_v26 = vor.u32 %v10066_v39, %v8019_v46  ;;  %6262 = vmatmul.bf16.vlgmr.msrb.gmra.mxu3 %v11073_v49  ;;  %v7935_v39 = vld [vmem:[#allocation14 + $0x2c] sm:$0xf0]  ;;  %v8718_v46 = vor.u32 %v10244_v51, %v8717_v27  ;;  %v10108_v27 = vld [vmem:[#allocation14 + $0x20c] sm:$0xf] }
 0x370   :  { %6177 = vmatpush.bf16.msra.mxu1 %v9498_v57  ;;  %6310 = vmatpush.bf16.msra.mxu3 %v8358_v41  ;;  %v9030_v41 = vor.u32 %v10318_v9, %v9027_v50  ;;  %v10384_v9 = vld [vmem:[#allocation14 + $0xaa8] sm:$0xf0]  ;;  %v10101_v50 = vld [vmem:[#allocation14 + $0x1d4] sm:$0xf] }
 0x371   :  { %6220 = vmatmul.bf16.vlgmr.msrb.gmra.mxu0 %v11064_v58 }
 0x372   :  { %6297 = vmatpush.bf16.msra.mxu2 %v8106_v31  ;;  %v5887_v31 = vpop.f32.mrf.mxu0  ;;  %6268 = vmatpush.bf16.msra.mxu0 %v9474_v56  ;;  %v8274_v56 = vor.u32 %v10129_v42, %v8271_v52  ;;  %v9277_v42 = vld [vmem:[#allocation14 + $0xa90] sm:$0xf] }
 0x373   :  { %6178 = vmatmul.bf16.vlgmr.msra.gmra.mxu1 %v11088_v4  ;;  %v5888_v23 = vadd.f32 %v5887_v31, %v5874_v14  ;;  %v9278_v2 = vor.u32 %v10384_v9, %v9277_v42  ;;  %v10353_v42 = vld [vmem:[#allocation14 + $0x9b4] sm:$0xf]  ;;  %v10098_v9 = vld [vmem:[#allocation14 + $0x1b8] sm:$0xf0] }
 0x374   :  { %6226 = vmatpush.bf16.msrb.mxu1 %v8802_v60  ;;  %v10237_v60 = vld [vmem:[#allocation14 + $0x610] sm:$0xf0] }
 0x375   :  { %v5902_v40 = vadd.f32 %v5901_v22, %v5888_v23  ;;  %v8690_v25 = vor.u32 %v10237_v60, %v8689_v45  ;;  %v8971_v22 = vld [vmem:[#allocation14 + $0x844] sm:$0xf0]  ;;  %v9697_v60 = vld [vmem:[#allocation14 + $0xdd8] sm:$0xf] }
 0x376   :  { %6298 = vmatpush.bf16.msra.mxu2 %v8078_v21  ;;  %v8330_v21 = vor.u32 %v10143_v7, %v8327_v5  ;;  %6269 = vmatpush.bf16.msra.mxu0 %v9446_v29  ;;  %v8999_v7 = vld [vmem:[#allocation14 + $0x87c] sm:$0xf0]  ;;  %v5929_v29 = vpop.f32.mrf.mxu3  ;;  %v9305_v23 = vld [vmem:[#allocation14 + $0xac8] sm:$0xf] }
 0x377   :  { %v5916_v31 = vadd.f32 %v5915_v16, %v5902_v40  ;;  %v8634_v40 = vor.u32 %v10223_v54, %v8633_v11  ;;  %v10489_v16 = vld [vmem:[#allocation14 + $0xdf0] sm:$0xf0]  ;;  %v10192_v11 = vld [vmem:[#allocation14 + $0x4ac] sm:$0xf]  ;;  %v8523_v54 = vld [vmem:[#allocation14 + $0x4c4] sm:$0xf0] }
 0x378   :  { %6227 = vmatpush.bf16.msrb.mxu1 %v8774_v3  ;;  %6311 = vmatpush.bf16.msra.mxu3 %v8330_v21  ;;  %v8661_v3 = vld [vmem:[#allocation14 + $0x5c0] sm:$0xf]  ;;  %v9002_v21 = vor.u32 %v10311_v61, %v8999_v7 }
 0x379   :  { %v5930_v47 = vadd.f32 %v5929_v29, %v5916_v31  ;;  %v8662_v14 = vor.u32 %v10230_v10, %v8661_v3  ;;  %v9669_v7 = vld [vmem:[#allocation14 + $0xda0] sm:$0xf]  ;;  %v10199_v10 = vld [vmem:[#allocation14 + $0x4e4] sm:$0xf] }
 0x37a   :  { %6299 = vmatpush.bf16.msra.mxu2 %v8050_v30  ;;  %v10045_v30 = vld [vmem:[#allocation14 + $0x14] sm:$0xf]  ;;  %v5941_v57 = vpop.f32.mrf.mxu0  ;;  %6270 = vmatpush.bf16.msra.mxu0 %v9418_v24  ;;  %v10391_v24 = vld [vmem:[#allocation14 + $0xae0] sm:$0xf0]  ;;  %v8551_v29 = vld [vmem:[#allocation14 + $0x4fc] sm:$0xf0] }
 0x37b   :  { %v7938_v1 = vor.u32 %v10045_v30, %v7935_v39  ;;  %v5957_v30 = vpop.f32.mrf.mxu1  ;;  %v10216_v39 = vld [vmem:[#allocation14 + $0x568] sm:$0xf0] }
 0x37c   :  { %6228 = vmatpush.bf16.msrb.mxu1 %v8746_v13  ;;  %6312 = vmatpush.bf16.msra.mxu3 %v8302_v53  ;;  %v8218_v13 = vor.u32 %v10115_v18, %v8215_v12  ;;  %v8187_v53 = vld [vmem:[#allocation14 + $0x224] sm:$0xf0]  ;;  %v8554_v12 = vor.u32 %v10199_v10, %v8551_v29  ;;  %v10339_v29 = vld [vmem:[#allocation14 + $0x944] sm:$0xf] }
 0x37d   :  { %v8190_v45 = vor.u32 %v10108_v27, %v8187_v53  ;;  %v10468_v53 = vld [vmem:[#allocation14 + $0xd48] sm:$0xf0] }
 0x37e   :  { %6300 = vmatpush.bf16.msra.mxu2 %v8022_v26  ;;  %v5942_v26 = vadd.f32 %v5941_v57, %v5928_v37  ;;  %6271 = vmatpush.bf16.msra.mxu0 %v9390_v0  ;;  %v8605_v37 = vld [vmem:[#allocation14 + $0x550] sm:$0xf] }
 0x37f   :  { %v8159_v0 = vld [vmem:[#allocation14 + $0x1ec] sm:$0xf0]  ;;  %v8606_v31 = vor.u32 %v10216_v39, %v8605_v37  ;;  %v10269_v37 = vld [vmem:[#allocation14 + $0x714] sm:$0xf] }
 0x380   :  { %6229 = vmatpush.bf16.msrb.mxu1 %v8718_v46  ;;  %v5956_v5 = vadd.f32 %v5955_v38, %v5942_v26  ;;  %6313 = vmatpush.bf16.msra.mxu3 %v8274_v56  ;;  %v9306_v46 = vor.u32 %v10391_v24, %v9305_v23  ;;  %v10206_v56 = vld [vmem:[#allocation14 + $0x51c] sm:$0xf]  ;;  %v8915_v26 = vld [vmem:[#allocation14 + $0x7d4] sm:$0xf0]  ;;  %v9698_v38 = vor.u32 %v10489_v16, %v9697_v60  ;;  %v10360_v23 = vld [vmem:[#allocation14 + $0x9ec] sm:$0xf] }
 0x381   :  { %v8582_v61 = vor.u32 %v10206_v56, %v8579_v59  ;;  %v9195_v24 = vld [vmem:[#allocation14 + $0xa04] sm:$0xf0]  ;;  %v8831_v39 = vld [vmem:[#allocation14 + $0x72c] sm:$0xf0]  ;;  %v8467_v56 = vld [vmem:[#allocation14 + $0x454] sm:$0xf0]  ;;  %v5969_v59 = vpop.f32.mrf.mxu2 }
 0x382   :  { %6301 = vmatpush.bf16.msra.mxu2 %v7994_v17  ;;  %v10398_v17 = vld [vmem:[#allocation14 + $0xb18] sm:$0xf0]  ;;  %10515 = vtanh.f32 %v5956_v5  ;;  %6272 = vmatpush.bf16.msra.mxu0 %v9362_v6  ;;  %v5943_v33 = vpop.f32.mrf.mxu0  ;;  %v8918_v6 = vor.u32 %v10290_v43, %v8915_v26  ;;  %v8834_v60 = vor.u32 %v10269_v37, %v8831_v39  ;;  %v9139_v26 = vld [vmem:[#allocation14 + $0x994] sm:$0xf0] }
 0x383   :  { %v9334_v15 = vor.u32 %v10398_v17, %v9333_v63  ;;  %v5944_v51 = vadd.f32 %v5943_v33, %v5930_v47  ;;  %v10482_v5 = vld [vmem:[#allocation14 + $0xdb8] sm:$0xf0]  ;;  %v8887_v63 = vld [vmem:[#allocation14 + $0x79c] sm:$0xf0]  ;;  %v10367_v17 = vld [vmem:[#allocation14 + $0xa24] sm:$0xf] }
 0x384   :  { %6230 = vmatpush.bf16.msrb.mxu1 %v8690_v25  ;;  %6314 = vmatpush.bf16.msra.mxu3 %v8246_v48  ;;  %v8162_v25 = vor.u32 %v10101_v50, %v8159_v0  ;;  %v10283_v48 = vld [vmem:[#allocation14 + $0x784] sm:$0xf]  ;;  %v9670_v18 = vor.u32 %v10482_v5, %v9669_v7  ;;  %v10276_v33 = vld [vmem:[#allocation14 + $0x74c] sm:$0xf]  ;;  %v9585_v0 = vld [vmem:[#allocation14 + $0xcf8] sm:$0xf] }
 0x385   :  { %v5958_v57 = vadd.f32 %v5957_v30, %v5944_v51  ;;  %v8526_v51 = vor.u32 %v10192_v11, %v8523_v54  ;;  %v10185_v30 = vld [vmem:[#allocation14 + $0x474] sm:$0xf]  ;;  %v10171_v5 = vld [vmem:[#allocation14 + $0x404] sm:$0xf] }
 0x386   :  { %6302 = vmatpush.bf16.msra.mxu2 %v7966_v44  ;;  %v8974_v44 = vor.u32 %v10304_v20, %v8971_v22  ;;  %6273 = vmatpush.bf16.msra.mxu0 %v9334_v15  ;;  %v10475_v20 = vld [vmem:[#allocation14 + $0xd80] sm:$0xf0]  ;;  %v8890_v22 = vor.u32 %v10283_v48, %v8887_v63  ;;  %v9111_v48 = vld [vmem:[#allocation14 + $0x95c] sm:$0xf0] }
 0x387   :  { %10517 = vtanh.f32 %v5958_v57 }
 0x388   :  { %6231 = vmatpush.bf16.msrb.mxu1 %v8662_v14  ;;  %v10516_v52 = vpop.eup %10515  ;;  %6315 = vmatpush.bf16.msra.mxu3 %v8218_v13  ;;  %v9641_v14 = vld [vmem:[#allocation14 + $0xd68] sm:$0xf] }
 0x389   :  { %6535 = vst [vmem:[#allocation17 + $0x8] sm:$0xff] %v10516_v52  ;;  %v8859_v13 = vld [vmem:[#allocation14 + $0x764] sm:$0xf0]  ;;  %v9642_v27 = vor.u32 %v10475_v20, %v9641_v14  ;;  %v9167_v52 = vld [vmem:[#allocation14 + $0x9cc] sm:$0xf0]  ;;  %v3420_v14 = vperm.slane %v11114_v28, 2  ;;  %v9114_v20 = vor.u32 %v10339_v29, %v9111_v48 }
 0x38a   :  { %6303 = vmatpush.bf16.msra.mxu2 %v7938_v1  ;;  %v8946_v1 = vor.u32 %v10297_v32, %v8943_v36  ;;  %6274 = vmatpush.bf16.msra.mxu0 %v9306_v46  ;;  %v8862_v32 = vor.u32 %v10276_v33, %v8859_v13  ;;  %v9198_v36 = vor.u32 %v10360_v23, %v9195_v24  ;;  %v8137_v46 = vld [vmem:[#allocation14 + $0x1a0] sm:$0xf]  ;;  %v5997_v11 = vpop.f32.mrf.mxu0  ;;  %v10332_v33 = vld [vmem:[#allocation14 + $0x90c] sm:$0xf]  ;;  %v9083_v13 = vld [vmem:[#allocation14 + $0x924] sm:$0xf0] }
 0x38b   :  { %v9170_v16 = vor.u32 %v10353_v42, %v9167_v52  ;;  %v8138_v43 = vor.u32 %v10098_v9, %v8137_v46  ;;  %v8053_v23 = vld [vmem:[#allocation14 + $0xf8] sm:$0xf]  ;;  %v5970_v37 = vadd.f32 %v5969_v59, %v3420_v14  ;;  %v9086_v39 = vor.u32 %v10332_v33, %v9083_v13  ;;  %v9055_v42 = vld [vmem:[#allocation14 + $0x8ec] sm:$0xf0]  ;;  %v10262_v52 = vld [vmem:[#allocation14 + $0x6dc] sm:$0xf] }
 0x38c   :  { %6232 = vmatpush.bf16.msrb.mxu1 %v8634_v40  ;;  %6316 = vmatpush.bf16.msra.mxu3 %v8190_v45  ;;  %v8495_v40 = vld [vmem:[#allocation14 + $0x48c] sm:$0xf0]  ;;  %v10461_v45 = vld [vmem:[#allocation14 + $0xd10] sm:$0xf0]  ;;  %v6011_v46 = vpop.f32.mrf.mxu1  ;;  %v10063_v29 = vld [vmem:[#allocation14 + $0xa0] sm:$0xf0] }
 0x38d   :  { %6304 = vmatmul.bf16.vlgmr.msra.gmra.mxu2 %v11051_v62  ;;  %v10518_v47 = vpop.eup %10517  ;;  %v8498_v50 = vor.u32 %v10185_v30, %v8495_v40  ;;  %v8383_v30 = vld [vmem:[#allocation14 + $0x3ac] sm:$0xf0]  ;;  %v10325_v40 = vld [vmem:[#allocation14 + $0x8d4] sm:$0xf]  ;;  %v8333_v48 = vld [vmem:[#allocation14 + $0x328] sm:$0xf] }
 0x38e   :  { %6352 = vmatpush.bf16.msrb.mxu2 %v9030_v41  ;;  %v10374_v41 = vld [vmem:[#allocation14 + $0xa5c] sm:$0xf]  ;;  %6275 = vmatpush.bf16.msra.mxu0 %v9278_v2  ;;  %6542 = vst [vmem:[#allocation17 + $0x40] sm:$0xff] %v10518_v47  ;;  %v10091_v2 = vld [vmem:[#allocation14 + $0x180] sm:$0xf0] }
 0x38f   :  { %v9254_v3 = vor.u32 %v10374_v41, %v9251_v8  ;;  %v9586_v41 = vor.u32 %v10461_v45, %v9585_v0  ;;  %v8109_v8 = vld [vmem:[#allocation14 + $0x168] sm:$0xf]  ;;  %v9475_v0 = vld [vmem:[#allocation14 + $0xc34] sm:$0xf0]  ;;  %v8025_v45 = vld [vmem:[#allocation14 + $0xc0] sm:$0xf] }
 0x390   :  { %6233 = vmatpush.bf16.msrb.mxu1 %v8606_v31  ;;  %6317 = vmatpush.bf16.msra.mxu3 %v8162_v25  ;;  %v10346_v31 = vld [vmem:[#allocation14 + $0x97c] sm:$0xf]  ;;  %v9557_v25 = vld [vmem:[#allocation14 + $0xcc0] sm:$0xf]  ;;  %v8110_v10 = vor.u32 %v10091_v2, %v8109_v8  ;;  %v9058_v8 = vor.u32 %v10325_v40, %v9055_v42  ;;  %v9419_v33 = vld [vmem:[#allocation14 + $0xbc4] sm:$0xf0] }
 0x391   :  { %6276 = vmatmul.bf16.vlgmr.msra.gmra.mxu0 %v11081_v19  ;;  %v9142_v7 = vor.u32 %v10346_v31, %v9139_v26  ;;  %v7969_v13 = vld [vmem:[#allocation14 + $0x50] sm:$0xf]  ;;  %v10056_v28 = vld [vmem:[#allocation14 + $0x68] sm:$0xf0]  ;;  %v10409_v42 = vld [vmem:[#allocation14 + $0xb74] sm:$0xf] }
 0x392   :  { %6353 = vmatpush.bf16.msrb.mxu2 %v9002_v21  ;;  %v9223_v21 = vld [vmem:[#allocation14 + $0xa3c] sm:$0xf0]  ;;  %6324 = vmatpush.bf16.msrb.mxu0 %v8582_v61  ;;  %v10454_v61 = vld [vmem:[#allocation14 + $0xcd8] sm:$0xf0]  ;;  %v8719_v40 = vld [vmem:[#allocation14 + $0x64c] sm:$0xf0] }
 0x393   :  { %v9226_v15 = vor.u32 %v10367_v17, %v9223_v21  ;;  %6234 = vmatmul.bf16.vlgmr.msrb.gmra.mxu1 %v11060_v35  ;;  %6318 = vmatmul.bf16.vlgmr.msra.gmra.mxu3 %v11039_v34  ;;  %v9558_v63 = vor.u32 %v10454_v61, %v9557_v25  ;;  %v8081_v17 = vld [vmem:[#allocation14 + $0x130] sm:$0xf]  ;;  %v10084_v21 = vld [vmem:[#allocation14 + $0x148] sm:$0xf0]  ;;  %v8775_v25 = vld [vmem:[#allocation14 + $0x6bc] sm:$0xf0] }
 0x394   :  { %6282 = vmatpush.bf16.msra.mxu1 %v9698_v38  ;;  %6366 = vmatpush.bf16.msrb.mxu3 %v9254_v3  ;;  %v5983_v3 = vpop.f32.mrf.mxu3  ;;  %v8082_v54 = vor.u32 %v10084_v21, %v8081_v17  ;;  %v5999_v21 = vpop.f32.mrf.mxu0 }
 0x396   :  { %6354 = vmatpush.bf16.msrb.mxu2 %v8974_v44  ;;  %6325 = vmatpush.bf16.msrb.mxu0 %v8554_v12  ;;  %v9613_v44 = vld [vmem:[#allocation14 + $0xd30] sm:$0xf]  ;;  %v10447_v12 = vld [vmem:[#allocation14 + $0xca0] sm:$0xf0] }
 0x397   :  { %v9614_v57 = vor.u32 %v10468_v53, %v9613_v44  ;;  %v10440_v44 = vld [vmem:[#allocation14 + $0xc68] sm:$0xf0]  ;;  %v5971_v53 = vpop.f32.mrf.mxu2 }
 0x398   :  { %6283 = vmatpush.bf16.msra.mxu1 %v9670_v18  ;;  %6367 = vmatpush.bf16.msrb.mxu3 %v9226_v15  ;;  %v9529_v18 = vld [vmem:[#allocation14 + $0xc88] sm:$0xf] }
 0x399   :  { %v8411_v15 = vld [vmem:[#allocation14 + $0x3e4] sm:$0xf0]  ;;  %v9530_v24 = vor.u32 %v10447_v12, %v9529_v18  ;;  %v5972_v18 = vadd.f32 %v5971_v53, %v3420_v14  ;;  %v8305_v14 = vld [vmem:[#allocation14 + $0x2f0] sm:$0xf] }
 0x39a   :  { %6355 = vmatpush.bf16.msrb.mxu2 %v8946_v1  ;;  %6326 = vmatpush.bf16.msrb.mxu0 %v8526_v51  ;;  %v10178_v1 = vld [vmem:[#allocation14 + $0x43c] sm:$0xf]  ;;  %v9501_v51 = vld [vmem:[#allocation14 + $0xc50] sm:$0xf] }
 0x39b   :  { %v8470_v38 = vor.u32 %v10178_v1, %v8467_v56  ;;  %v10070_v1 = vld [vmem:[#allocation14 + $0xd8] sm:$0xf0]  ;;  %v8361_v56 = vld [vmem:[#allocation14 + $0x360] sm:$0xf] }
 0x39c   :  { %6284 = vmatpush.bf16.msra.mxu1 %v9642_v27  ;;  %6368 = vmatpush.bf16.msrb.mxu3 %v9198_v36  ;;  %v10077_v27 = vld [vmem:[#allocation14 + $0x110] sm:$0xf0]  ;;  %v5985_v31 = vpop.f32.mrf.mxu3  ;;  %v8026_v61 = vor.u32 %v10070_v1, %v8025_v45  ;;  %v9033_v1 = vld [vmem:[#allocation14 + $0x8a0] sm:$0xf] }
 0x39d   :  { %v10157_v36 = vld [vmem:[#allocation14 + $0x394] sm:$0xf]  ;;  %v8054_v9 = vor.u32 %v10077_v27, %v8053_v23  ;;  %v5986_v23 = vadd.f32 %v5985_v31, %v5972_v18  ;;  %v10140_v27 = vld [vmem:[#allocation14 + $0x308] sm:$0xf0]  ;;  %v10234_v31 = vld [vmem:[#allocation14 + $0x5fc] sm:$0xf] }
 0x39e   :  { %6356 = vmatpush.bf16.msrb.mxu2 %v8918_v6  ;;  %6327 = vmatpush.bf16.msrb.mxu0 %v8498_v50  ;;  %v8439_v6 = vld [vmem:[#allocation14 + $0x41c] sm:$0xf0]  ;;  %v10430_v50 = vld [vmem:[#allocation14 + $0xc1c] sm:$0xf]  ;;  %v8386_v59 = vor.u32 %v10157_v36, %v8383_v30  ;;  %v10241_v30 = vld [vmem:[#allocation14 + $0x634] sm:$0xf] }
 0x39f   :  { %v8442_v47 = vor.u32 %v10171_v5, %v8439_v6  ;;  %v9478_v2 = vor.u32 %v10430_v50, %v9475_v0  ;;  %v10423_v5 = vld [vmem:[#allocation14 + $0xbe4] sm:$0xf]  ;;  %v9447_v6 = vld [vmem:[#allocation14 + $0xbfc] sm:$0xf0]  ;;  %v6025_v17 = vpop.f32.mrf.mxu2  ;;  %v10049_v50 = vld [vmem:[#allocation14 + $0x30] sm:$0xf0] }
 0x3a0   :  { %6285 = vmatpush.bf16.msra.mxu1 %v9614_v57  ;;  %6369 = vmatpush.bf16.msrb.mxu3 %v9170_v16  ;;  %v8803_v57 = vld [vmem:[#allocation14 + $0x6f4] sm:$0xf0]  ;;  %v9502_v16 = vor.u32 %v10440_v44, %v9501_v51  ;;  %v9450_v12 = vor.u32 %v10423_v5, %v9447_v6  ;;  %v6013_v44 = vpop.f32.mrf.mxu1  ;;  %v10133_v45 = vld [vmem:[#allocation14 + $0x2d0] sm:$0xf0]  ;;  %v8249_v5 = vld [vmem:[#allocation14 + $0x280] sm:$0xf] }
 0x3a1   :  { %v8806_v26 = vor.u32 %v10262_v52, %v8803_v57  ;;  %v9391_v52 = vld [vmem:[#allocation14 + $0xb8c] sm:$0xf0]  ;;  %v7941_v57 = vld [vmem:[#allocation14 + $0x18] sm:$0xf]  ;;  %v10126_v6 = vld [vmem:[#allocation14 + $0x298] sm:$0xf0] }
 0x3a2   :  { %6357 = vmatpush.bf16.msrb.mxu2 %v8890_v22  ;;  %6328 = vmatpush.bf16.msrb.mxu0 %v8470_v38  ;;  %v10164_v22 = vld [vmem:[#allocation14 + $0x3cc] sm:$0xf]  ;;  %v10255_v38 = vld [vmem:[#allocation14 + $0x6a4] sm:$0xf]  ;;  %v8277_v0 = vld [vmem:[#allocation14 + $0x2b8] sm:$0xf] }
 0x3a4   :  { %6286 = vmatpush.bf16.msra.mxu1 %v9586_v41  ;;  %6370 = vmatpush.bf16.msrb.mxu3 %v9142_v7  ;;  %v6039_v51 = vpop.f32.mrf.mxu3 }
 0x3a6   :  { %6358 = vmatpush.bf16.msrb.mxu2 %v8862_v32  ;;  %6329 = vmatpush.bf16.msrb.mxu0 %v8442_v47  ;;  %v8414_v32 = vor.u32 %v10164_v22, %v8411_v15  ;;  %v8778_v47 = vor.u32 %v10255_v38, %v8775_v25  ;;  %v8747_v22 = vld [vmem:[#allocation14 + $0x684] sm:$0xf0]  ;;  %v9363_v38 = vld [vmem:[#allocation14 + $0xb54] sm:$0xf0] }
 0x3a8   :  { %6287 = vmatpush.bf16.msra.mxu1 %v9558_v63  ;;  %6371 = vmatpush.bf16.msrb.mxu3 %v9114_v20  ;;  %v10147_v63 = vld [vmem:[#allocation14 + $0x340] sm:$0xf0]  ;;  %v10248_v20 = vld [vmem:[#allocation14 + $0x66c] sm:$0xf] }
 0x3a9   :  { %v8750_v53 = vor.u32 %v10248_v20, %v8747_v22  ;;  %v10395_v20 = vld [vmem:[#allocation14 + $0xb04] sm:$0xf]  ;;  %v9335_v22 = vld [vmem:[#allocation14 + $0xb1c] sm:$0xf0] }
 0x3aa   :  { %6359 = vmatpush.bf16.msrb.mxu2 %v8834_v60  ;;  %v5984_v60 = vadd.f32 %v5983_v3, %v5970_v37  ;;  %6330 = vmatpush.bf16.msrb.mxu0 %v8414_v32  ;;  %v7997_v3 = vld [vmem:[#allocation14 + $0x88] sm:$0xf]  ;;  %v6000_v32 = vadd.f32 %v5999_v21, %v5986_v23  ;;  %v7970_v37 = vor.u32 %v10056_v28, %v7969_v13  ;;  %v10227_v21 = vld [vmem:[#allocation14 + $0x5c4] sm:$0xf]  ;;  %v8977_v23 = vld [vmem:[#allocation14 + $0x830] sm:$0xf] }
 0x3ab   :  { %v7998_v15 = vor.u32 %v10063_v29, %v7997_v3  ;;  %v9005_v29 = vld [vmem:[#allocation14 + $0x868] sm:$0xf]  ;;  %v9338_v28 = vor.u32 %v10395_v20, %v9335_v22  ;;  %v10371_v20 = vld [vmem:[#allocation14 + $0xa40] sm:$0xf0] }
 0x3ac   :  { %6288 = vmatpush.bf16.msra.mxu1 %v9530_v24  ;;  %v5998_v41 = vadd.f32 %v5997_v11, %v5984_v60  ;;  %6372 = vmatpush.bf16.msrb.mxu3 %v9086_v39  ;;  %v8334_v11 = vor.u32 %v10147_v63, %v8333_v48  ;;  %v8306_v39 = vor.u32 %v10140_v27, %v8305_v14  ;;  %v6053_v60 = vpop.f32.mrf.mxu0  ;;  %v6067_v3 = vpop.f32.mrf.mxu1  ;;  %v10315_v48 = vld [vmem:[#allocation14 + $0x880] sm:$0xf0]  ;;  %v10220_v14 = vld [vmem:[#allocation14 + $0x58c] sm:$0xf]  ;;  %v8635_v27 = vld [vmem:[#allocation14 + $0x5a4] sm:$0xf0] }
 0x3ad   :  { %6360 = vmatmul.bf16.vlgmr.msrb.gmra.mxu2 %v11068_v55  ;;  %v6041_v18 = vpop.f32.mrf.mxu3 }
 0x3ae   :  { %6408 = vmatpush.bf16.msra.mxu2 %v8138_v43  ;;  %v10154_v43 = vld [vmem:[#allocation14 + $0x378] sm:$0xf0]  ;;  %6331 = vmatpush.bf16.msrb.mxu0 %v8386_v59  ;;  %v8691_v59 = vld [vmem:[#allocation14 + $0x614] sm:$0xf0] }
 0x3af   :  { %v8362_v7 = vor.u32 %v10154_v43, %v8361_v56  ;;  %v10322_v56 = vld [vmem:[#allocation14 + $0x8b8] sm:$0xf0]  ;;  %v9394_v43 = vor.u32 %v10409_v42, %v9391_v52  ;;  %v10301_v42 = vld [vmem:[#allocation14 + $0x810] sm:$0xf0] }
 0x3b0   :  { %6289 = vmatpush.bf16.msra.mxu1 %v9502_v16  ;;  %6373 = vmatpush.bf16.msrb.mxu3 %v9058_v8  ;;  %v8722_v16 = vor.u32 %v10241_v30, %v8719_v40  ;;  %v8278_v8 = vor.u32 %v10133_v45, %v8277_v0 }
 0x3b1   :  { %6332 = vmatmul.bf16.vlgmr.msrb.gmra.mxu0 %v11064_v58 }
 0x3b2   :  { %6409 = vmatpush.bf16.msra.mxu2 %v8110_v10  ;;  %v6012_v10 = vadd.f32 %v6011_v46, %v5998_v41  ;;  %6380 = vmatpush.bf16.msra.mxu0 %v9478_v2  ;;  %v7942_v41 = vor.u32 %v10049_v50, %v7941_v57  ;;  %v10402_v2 = vld [vmem:[#allocation14 + $0xb3c] sm:$0xf]  ;;  %v8638_v57 = vor.u32 %v10220_v14, %v8635_v27  ;;  %v8865_v14 = vld [vmem:[#allocation14 + $0x750] sm:$0xf]  ;;  %v10280_v27 = vld [vmem:[#allocation14 + $0x768] sm:$0xf0] }
 0x3b3   :  { %6290 = vmatmul.bf16.vlgmr.msra.gmra.mxu1 %v11088_v4  ;;  %6374 = vmatmul.bf16.vlgmr.msrb.gmra.mxu3 %v11073_v49 }
 0x3b4   :  { %6338 = vmatpush.bf16.msrb.mxu1 %v8806_v26  ;;  %6422 = vmatpush.bf16.msra.mxu3 %v8362_v7  ;;  %v6026_v24 = vadd.f32 %v6025_v17, %v6012_v10  ;;  %v6027_v26 = vpop.f32.mrf.mxu2  ;;  %v9034_v7 = vor.u32 %v10322_v56, %v9033_v1  ;;  %v8694_v10 = vor.u32 %v10234_v31, %v8691_v59  ;;  %v6069_v52 = vpop.f32.mrf.mxu1  ;;  %v10105_v1 = vld [vmem:[#allocation14 + $0x1f0] sm:$0xf0]  ;;  %v9699_v31 = vld [vmem:[#allocation14 + $0xdf4] sm:$0xf0] }
 0x3b5   :  { %v9366_v17 = vor.u32 %v10402_v2, %v9363_v38  ;;  %v10294_v38 = vld [vmem:[#allocation14 + $0x7d8] sm:$0xf0] }
 0x3b6   :  { %6410 = vmatpush.bf16.msra.mxu2 %v8082_v54  ;;  %v10416_v54 = vld [vmem:[#allocation14 + $0xbac] sm:$0xf]  ;;  %6381 = vmatpush.bf16.msra.mxu0 %v9450_v12  ;;  %v6040_v46 = vadd.f32 %v6039_v51, %v6026_v24  ;;  %v8250_v12 = vor.u32 %v10126_v6, %v8249_v5  ;;  %v6055_v51 = vpop.f32.mrf.mxu0 }
 0x3b7   :  { %v9422_v36 = vor.u32 %v10416_v54, %v9419_v33  ;;  %v8221_v54 = vld [vmem:[#allocation14 + $0x248] sm:$0xf]  ;;  %v10119_v33 = vld [vmem:[#allocation14 + $0x260] sm:$0xf0]  ;;  %v10308_v24 = vld [vmem:[#allocation14 + $0x848] sm:$0xf0] }
 0x3b8   :  { %6339 = vmatpush.bf16.msrb.mxu1 %v8778_v47  ;;  %6423 = vmatpush.bf16.msra.mxu3 %v8334_v11  ;;  %v6054_v25 = vadd.f32 %v6053_v60, %v6040_v46  ;;  %v8663_v47 = vld [vmem:[#allocation14 + $0x5dc] sm:$0xf0]  ;;  %v9006_v11 = vor.u32 %v10315_v48, %v9005_v29  ;;  %v8978_v40 = vor.u32 %v10308_v24, %v8977_v23  ;;  %v8607_v46 = vld [vmem:[#allocation14 + $0x56c] sm:$0xf0] }
 0x3b9   :  { %v8666_v13 = vor.u32 %v10227_v21, %v8663_v47  ;;  %v9279_v60 = vld [vmem:[#allocation14 + $0xaac] sm:$0xf0]  ;;  %v9671_v29 = vld [vmem:[#allocation14 + $0xdbc] sm:$0xf0]  ;;  %v10203_v21 = vld [vmem:[#allocation14 + $0x500] sm:$0xf0] }
 0x3ba   :  { %6411 = vmatpush.bf16.msra.mxu2 %v8054_v9  ;;  %v6014_v9 = vadd.f32 %v6013_v44, %v6000_v32  ;;  %6382 = vmatpush.bf16.msra.mxu0 %v9422_v36  ;;  %v6068_v63 = vadd.f32 %v6067_v3, %v6054_v25  ;;  %v8222_v44 = vor.u32 %v10119_v33, %v8221_v54  ;;  %v9307_v32 = vld [vmem:[#allocation14 + $0xae4] sm:$0xf0]  ;;  %v8193_v36 = vld [vmem:[#allocation14 + $0x210] sm:$0xf]  ;;  %v9257_v25 = vld [vmem:[#allocation14 + $0xa60] sm:$0xf] }
 0x3bb   :  { %v8893_v47 = vld [vmem:[#allocation14 + $0x788] sm:$0xf]  ;;  %v10472_v54 = vld [vmem:[#allocation14 + $0xd6c] sm:$0xf]  ;;  %v8529_v24 = vld [vmem:[#allocation14 + $0x4b0] sm:$0xf] }
 0x3bc   :  { %6340 = vmatpush.bf16.msrb.mxu1 %v8750_v53  ;;  %6424 = vmatpush.bf16.msra.mxu3 %v8306_v39  ;;  %10519 = vtanh.f32 %v6068_v63  ;;  %v10388_v53 = vld [vmem:[#allocation14 + $0xacc] sm:$0xf]  ;;  %v8949_v39 = vld [vmem:[#allocation14 + $0x7f8] sm:$0xf]  ;;  %v9643_v33 = vld [vmem:[#allocation14 + $0xd84] sm:$0xf0] }
 0x3bd   :  { %v9310_v45 = vor.u32 %v10388_v53, %v9307_v32  ;;  %v8950_v59 = vor.u32 %v10301_v42, %v8949_v39  ;;  %v9646_v53 = vor.u32 %v10472_v54, %v9643_v33  ;;  %v8501_v39 = vld [vmem:[#allocation14 + $0x478] sm:$0xf]  ;;  %v10189_v42 = vld [vmem:[#allocation14 + $0x490] sm:$0xf0]  ;;  %v9503_v54 = vld [vmem:[#allocation14 + $0xc6c] sm:$0xf0] }
 0x3be   :  { %6412 = vmatpush.bf16.msra.mxu2 %v8026_v61  ;;  %v6028_v61 = vadd.f32 %v6027_v26, %v6014_v9  ;;  %6383 = vmatpush.bf16.msra.mxu0 %v9394_v43  ;;  %v10381_v9 = vld [vmem:[#allocation14 + $0xa94] sm:$0xf]  ;;  %v10486_v43 = vld [vmem:[#allocation14 + $0xddc] sm:$0xf]  ;;  %v8585_v26 = vld [vmem:[#allocation14 + $0x520] sm:$0xf] }
 0x3bf   :  { %v9702_v5 = vor.u32 %v10486_v43, %v9699_v31  ;;  %v9145_v43 = vld [vmem:[#allocation14 + $0x980] sm:$0xf]  ;;  %v10350_v31 = vld [vmem:[#allocation14 + $0x998] sm:$0xf0]  ;;  %v8389_v33 = vld [vmem:[#allocation14 + $0x398] sm:$0xf] }
 0x3c0   :  { %6341 = vmatpush.bf16.msrb.mxu1 %v8722_v16  ;;  %6425 = vmatpush.bf16.msra.mxu3 %v8278_v8  ;;  %v8165_v16 = vld [vmem:[#allocation14 + $0x1d8] sm:$0xf]  ;;  %v8921_v8 = vld [vmem:[#allocation14 + $0x7c0] sm:$0xf] }
 0x3c1   :  { %v8166_v6 = vor.u32 %v10105_v1, %v8165_v16  ;;  %v8922_v48 = vor.u32 %v10294_v38, %v8921_v8  ;;  %v8473_v16 = vld [vmem:[#allocation14 + $0x440] sm:$0xf]  ;;  %v10182_v1 = vld [vmem:[#allocation14 + $0x458] sm:$0xf0]  ;;  %v8445_v38 = vld [vmem:[#allocation14 + $0x408] sm:$0xf] }
 0x3c2   :  { %6413 = vmatpush.bf16.msra.mxu2 %v7998_v15  ;;  %v6042_v15 = vadd.f32 %v6041_v18, %v6028_v61  ;;  %6384 = vmatpush.bf16.msra.mxu0 %v9366_v17  ;;  %v10520_v50 = vpop.eup %10519  ;;  %v10378_v61 = vld [vmem:[#allocation14 + $0xa78] sm:$0xf0]  ;;  %v8557_v17 = vld [vmem:[#allocation14 + $0x4e8] sm:$0xf]  ;;  %v10287_v18 = vld [vmem:[#allocation14 + $0x7a0] sm:$0xf0] }
 0x3c3   :  { %6536 = vst [vmem:[#allocation17 + $0x10] sm:$0xff] %v10520_v50  ;;  %v9258_v63 = vor.u32 %v10378_v61, %v9257_v25  ;;  %v10458_v50 = vld [vmem:[#allocation14 + $0xcfc] sm:$0xf]  ;;  %v9559_v8 = vld [vmem:[#allocation14 + $0xcdc] sm:$0xf0]  ;;  %v6095_v61 = vpop.f32.mrf.mxu3 }
 0x3c4   :  { %6342 = vmatpush.bf16.msrb.mxu1 %v8694_v10  ;;  %6426 = vmatpush.bf16.msra.mxu3 %v8250_v12  ;;  %v6056_v30 = vadd.f32 %v6055_v51, %v6042_v15  ;;  %v10479_v10 = vld [vmem:[#allocation14 + $0xda4] sm:$0xf]  ;;  %v9229_v12 = vld [vmem:[#allocation14 + $0xa28] sm:$0xf]  ;;  %v9201_v51 = vld [vmem:[#allocation14 + $0x9f0] sm:$0xf] }
 0x3c5   :  { %v9674_v15 = vor.u32 %v10479_v10, %v9671_v29  ;;  %v9230_v23 = vor.u32 %v10371_v20, %v9229_v12  ;;  %v10175_v25 = vld [vmem:[#allocation14 + $0x420] sm:$0xf0]  ;;  %v10444_v10 = vld [vmem:[#allocation14 + $0xc8c] sm:$0xf]  ;;  %v9531_v29 = vld [vmem:[#allocation14 + $0xca4] sm:$0xf0] }
 0x3c6   :  { %6414 = vmatpush.bf16.msra.mxu2 %v7970_v37  ;;  %v10112_v37 = vld [vmem:[#allocation14 + $0x228] sm:$0xf0]  ;;  %v6070_v0 = vadd.f32 %v6069_v52, %v6056_v30  ;;  %6385 = vmatpush.bf16.msra.mxu0 %v9338_v28  ;;  %v9615_v30 = vld [vmem:[#allocation14 + $0xd4c] sm:$0xf0]  ;;  %v8837_v52 = vld [vmem:[#allocation14 + $0x718] sm:$0xf] }
 0x3c7   :  { %v8194_v56 = vor.u32 %v10112_v37, %v8193_v36  ;;  %v10196_v28 = vld [vmem:[#allocation14 + $0x4c8] sm:$0xf0]  ;;  %v10465_v36 = vld [vmem:[#allocation14 + $0xd34] sm:$0xf]  ;;  %v9089_v12 = vld [vmem:[#allocation14 + $0x910] sm:$0xf] }
 0x3c8   :  { %6343 = vmatpush.bf16.msrb.mxu1 %v8666_v13  ;;  %6427 = vmatpush.bf16.msra.mxu3 %v8222_v44  ;;  %10521 = vtanh.f32 %v6070_v0  ;;  %v8894_v13 = vor.u32 %v10287_v18, %v8893_v47  ;;  %v10364_v44 = vld [vmem:[#allocation14 + $0xa08] sm:$0xf0]  ;;  %v8530_v32 = vor.u32 %v10196_v28, %v8529_v24  ;;  %v9587_v0 = vld [vmem:[#allocation14 + $0xd14] sm:$0xf0]  ;;  %v6109_v18 = vpop.f32.mrf.mxu0 }
 0x3c9   :  { %v9202_v37 = vor.u32 %v10364_v44, %v9201_v51  ;;  %v10168_v47 = vld [vmem:[#allocation14 + $0x3e8] sm:$0xf0]  ;;  %v9061_v28 = vld [vmem:[#allocation14 + $0x8d8] sm:$0xf]  ;;  %v10329_v44 = vld [vmem:[#allocation14 + $0x8f0] sm:$0xf0] }
 0x3ca   :  { %6415 = vmatpush.bf16.msra.mxu2 %v7942_v41  ;;  %v10210_v41 = vld [vmem:[#allocation14 + $0x538] sm:$0xf0]  ;;  %6386 = vmatpush.bf16.msra.mxu0 %v9310_v45  ;;  %v10336_v20 = vld [vmem:[#allocation14 + $0x928] sm:$0xf0] }
 0x3cb   :  { %v8586_v3 = vor.u32 %v10210_v41, %v8585_v26  ;;  %v8474_v26 = vor.u32 %v10182_v1, %v8473_v16  ;;  %v10451_v41 = vld [vmem:[#allocation14 + $0xcc4] sm:$0xf]  ;;  %v9090_v24 = vor.u32 %v10336_v20, %v9089_v12  ;;  %v10406_v12 = vld [vmem:[#allocation14 + $0xb58] sm:$0xf0] }
 0x3cc   :  { %6344 = vmatpush.bf16.msrb.mxu1 %v8638_v57  ;;  %6428 = vmatpush.bf16.msra.mxu3 %v8194_v56  ;;  %v10273_v57 = vld [vmem:[#allocation14 + $0x730] sm:$0xf0]  ;;  %v6081_v56 = vpop.f32.mrf.mxu2 }
 0x3cd   :  { %6416 = vmatmul.bf16.vlgmr.msra.gmra.mxu2 %v11051_v62  ;;  %v10213_v62 = vld [vmem:[#allocation14 + $0x554] sm:$0xf]  ;;  %v8838_v45 = vor.u32 %v10273_v57, %v8837_v52  ;;  %v9062_v52 = vor.u32 %v10329_v44, %v9061_v28  ;;  %v10399_v28 = vld [vmem:[#allocation14 + $0xb20] sm:$0xf0]  ;;  %v8641_v44 = vld [vmem:[#allocation14 + $0x590] sm:$0xf] }
 0x3ce   :  { %6464 = vmatpush.bf16.msrb.mxu2 %v9034_v7  ;;  %v8610_v2 = vor.u32 %v10213_v62, %v8607_v46  ;;  %v9282_v7 = vor.u32 %v10381_v9, %v9279_v60  ;;  %v10522_v22 = vpop.eup %10521  ;;  %v9173_v62 = vld [vmem:[#allocation14 + $0x9b8] sm:$0xf]  ;;  %v10357_v46 = vld [vmem:[#allocation14 + $0x9d0] sm:$0xf0]  ;;  %v9618_v9 = vor.u32 %v10465_v36, %v9615_v30 }
 0x3cf   :  { %6543 = vst [vmem:[#allocation17 + $0x48] sm:$0xff] %v10522_v22  ;;  %v9174_v60 = vor.u32 %v10357_v46, %v9173_v62  ;;  %v9534_v22 = vor.u32 %v10444_v10, %v9531_v29  ;;  %v8781_v62 = vld [vmem:[#allocation14 + $0x6a8] sm:$0xf]  ;;  %v10259_v46 = vld [vmem:[#allocation14 + $0x6c0] sm:$0xf0] }
 0x3d0   :  { %6345 = vmatpush.bf16.msrb.mxu1 %v8610_v2  ;;  %6387 = vmatpush.bf16.msra.mxu0 %v9282_v7  ;;  %v9146_v2 = vor.u32 %v10350_v31, %v9145_v43  ;;  %v9117_v7 = vld [vmem:[#allocation14 + $0x948] sm:$0xf]  ;;  %v6123_v51 = vpop.f32.mrf.mxu1  ;;  %v10252_v43 = vld [vmem:[#allocation14 + $0x688] sm:$0xf0]  ;;  %v9425_v31 = vld [vmem:[#allocation14 + $0xbb0] sm:$0xf] }
 0x3d1   :  { %6429 = vmatpush.bf16.msra.mxu3 %v8166_v6  ;;  %v9562_v6 = vor.u32 %v10451_v41, %v9559_v8 }
 0x3d2   :  { %6465 = vmatpush.bf16.msrb.mxu2 %v9006_v11  ;;  %v8558_v11 = vor.u32 %v10203_v21, %v8557_v17  ;;  %v8417_v21 = vld [vmem:[#allocation14 + $0x3d0] sm:$0xf] }
 0x3d3   :  { %6346 = vmatmul.bf16.vlgmr.msrb.gmra.mxu1 %v11060_v35  ;;  %6388 = vmatmul.bf16.vlgmr.msra.gmra.mxu0 %v11081_v19 }
 0x3d4   :  { %6394 = vmatpush.bf16.msra.mxu1 %v9702_v5  ;;  %6436 = vmatpush.bf16.msrb.mxu0 %v8586_v3  ;;  %v10343_v5 = vld [vmem:[#allocation14 + $0x960] sm:$0xf0]  ;;  %v8446_v3 = vor.u32 %v10175_v25, %v8445_v38 }
 0x3d5   :  { %6478 = vmatpush.bf16.msrb.mxu3 %v9258_v63  ;;  %v9118_v17 = vor.u32 %v10343_v5, %v9117_v7  ;;  %v8725_v7 = vld [vmem:[#allocation14 + $0x638] sm:$0xf]  ;;  %v10245_v5 = vld [vmem:[#allocation14 + $0x650] sm:$0xf0] }
 0x3d6   :  { %6466 = vmatpush.bf16.msrb.mxu2 %v8978_v40  ;;  %6430 = vmatmul.bf16.vlgmr.msra.gmra.mxu3 %v11039_v34  ;;  %v8866_v40 = vor.u32 %v10280_v27, %v8865_v14  ;;  %v8502_v34 = vor.u32 %v10189_v42, %v8501_v39  ;;  %v8809_v14 = vld [vmem:[#allocation14 + $0x6e0] sm:$0xf]  ;;  %v10266_v27 = vld [vmem:[#allocation14 + $0x6f8] sm:$0xf0] }
 0x3d7   :  { %v8810_v39 = vor.u32 %v10266_v27, %v8809_v14 }
 0x3d8   :  { %6395 = vmatpush.bf16.msra.mxu1 %v9674_v15  ;;  %6437 = vmatpush.bf16.msrb.mxu0 %v8558_v11  ;;  %v10437_v15 = vld [vmem:[#allocation14 + $0xc54] sm:$0xf]  ;;  %v6083_v11 = vpop.f32.mrf.mxu2 }
 0x3d9   :  { %6479 = vmatpush.bf16.msrb.mxu3 %v9230_v23  ;;  %v9506_v30 = vor.u32 %v10437_v15, %v9503_v54 }
 0x3da   :  { %6467 = vmatpush.bf16.msrb.mxu2 %v8950_v59  ;;  %v9590_v59 = vor.u32 %v10458_v50, %v9587_v0 }
 0x3dc   :  { %6396 = vmatpush.bf16.msra.mxu1 %v9646_v53  ;;  %6438 = vmatpush.bf16.msrb.mxu0 %v8530_v32  ;;  %v9481_v53 = vld [vmem:[#allocation14 + $0xc20] sm:$0xf]  ;;  %v10434_v32 = vld [vmem:[#allocation14 + $0xc38] sm:$0xf0] }
 0x3dd   :  { %6480 = vmatpush.bf16.msrb.mxu3 %v9202_v37  ;;  %v9482_v57 = vor.u32 %v10434_v32, %v9481_v53  ;;  %v10224_v53 = vld [vmem:[#allocation14 + $0x5a8] sm:$0xf0] }
 0x3de   :  { %6468 = vmatpush.bf16.msrb.mxu2 %v8922_v48  ;;  %v11171_v48 = vld [vmem:[#allocation16] sm:$0xff] }
 0x3df   :  { %v3421_v63 = vperm.slane %v11171_v48, 3 }
 0x3e0   :  { %6397 = vmatpush.bf16.msra.mxu1 %v9618_v9  ;;  %6439 = vmatpush.bf16.msrb.mxu0 %v8502_v34  ;;  %v9453_v9 = vld [vmem:[#allocation14 + $0xbe8] sm:$0xf]  ;;  %v10427_v34 = vld [vmem:[#allocation14 + $0xc00] sm:$0xf0]  ;;  %v6137_v0 = vpop.f32.mrf.mxu2 }
 0x3e1   :  { %6481 = vmatpush.bf16.msrb.mxu3 %v9174_v60  ;;  %v6082_v23 = vadd.f32 %v6081_v56, %v3421_v63  ;;  %v8782_v60 = vor.u32 %v10259_v46, %v8781_v62  ;;  %v6084_v16 = vadd.f32 %v6083_v11, %v3421_v63  ;;  %v9454_v1 = vor.u32 %v10427_v34, %v9453_v9  ;;  %v8753_v56 = vld [vmem:[#allocation14 + $0x670] sm:$0xf]  ;;  %v10217_v46 = vld [vmem:[#allocation14 + $0x570] sm:$0xf0]  ;;  %v9285_v9 = vld [vmem:[#allocation14 + $0xa98] sm:$0xf] }
 0x3e2   :  { %6469 = vmatpush.bf16.msrb.mxu2 %v8894_v13  ;;  %v10161_v13 = vld [vmem:[#allocation14 + $0x3b0] sm:$0xf0]  ;;  %v8754_v38 = vor.u32 %v10252_v43, %v8753_v56  ;;  %v10483_v56 = vld [vmem:[#allocation14 + $0xdc0] sm:$0xf0] }
 0x3e3   :  { %v6096_v36 = vadd.f32 %v6095_v61, %v6082_v23  ;;  %v8390_v37 = vor.u32 %v10161_v13, %v8389_v33  ;;  %v8669_v33 = vld [vmem:[#allocation14 + $0x5c8] sm:$0xf]  ;;  %v10231_v13 = vld [vmem:[#allocation14 + $0x5e0] sm:$0xf0]  ;;  %v10385_v34 = vld [vmem:[#allocation14 + $0xab0] sm:$0xf0] }
 0x3e4   :  { %6398 = vmatpush.bf16.msra.mxu1 %v9590_v59  ;;  %6440 = vmatpush.bf16.msrb.mxu0 %v8474_v26  ;;  %v10420_v59 = vld [vmem:[#allocation14 + $0xbc8] sm:$0xf0]  ;;  %v8670_v27 = vor.u32 %v10231_v13, %v8669_v33 }
 0x3e5   :  { %6482 = vmatpush.bf16.msrb.mxu3 %v9146_v2  ;;  %v6110_v42 = vadd.f32 %v6109_v18, %v6096_v36  ;;  %v6125_v2 = vpop.f32.mrf.mxu1  ;;  %v9426_v61 = vor.u32 %v10420_v59, %v9425_v31  ;;  %v9313_v36 = vld [vmem:[#allocation14 + $0xad0] sm:$0xf] }
 0x3e6   :  { %6470 = vmatpush.bf16.msrb.mxu2 %v8866_v40  ;;  %v6097_v40 = vpop.f32.mrf.mxu3  ;;  %v9649_v59 = vld [vmem:[#allocation14 + $0xd70] sm:$0xf] }
 0x3e7   :  { %v6124_v50 = vadd.f32 %v6123_v51, %v6110_v42  ;;  %v6098_v26 = vadd.f32 %v6097_v40, %v6084_v16  ;;  %v8613_v42 = vld [vmem:[#allocation14 + $0x558] sm:$0xf] }
 0x3e8   :  { %6399 = vmatpush.bf16.msra.mxu1 %v9562_v6  ;;  %6441 = vmatpush.bf16.msrb.mxu0 %v8446_v3  ;;  %v9397_v6 = vld [vmem:[#allocation14 + $0xb78] sm:$0xf]  ;;  %v10413_v3 = vld [vmem:[#allocation14 + $0xb90] sm:$0xf0]  ;;  %v6139_v18 = vpop.f32.mrf.mxu2 }
 0x3e9   :  { %6483 = vmatpush.bf16.msrb.mxu3 %v9118_v17  ;;  %v6138_v41 = vadd.f32 %v6137_v0, %v6124_v50  ;;  %v8726_v17 = vor.u32 %v10245_v5, %v8725_v7  ;;  %v9705_v50 = vld [vmem:[#allocation14 + $0xde0] sm:$0xf]  ;;  %v10490_v0 = vld [vmem:[#allocation14 + $0xdf8] sm:$0xf0] }
 0x3ea   :  { %6471 = vmatpush.bf16.msrb.mxu2 %v8838_v45  ;;  %v6111_v45 = vpop.f32.mrf.mxu0  ;;  %v9706_v16 = vor.u32 %v10490_v0, %v9705_v50  ;;  %v3423_v0 = vperm.slane %v11171_v48, 5 }
 0x3eb   :  { %v6112_v25 = vadd.f32 %v6111_v45, %v6098_v26  ;;  %v8614_v45 = vor.u32 %v10217_v46, %v8613_v42  ;;  %v10476_v26 = vld [vmem:[#allocation14 + $0xd88] sm:$0xf0] }
 0x3ec   :  { %6400 = vmatpush.bf16.msra.mxu1 %v9534_v22 }
 0x3ed   :  { %6472 = vmatmul.bf16.vlgmr.msrb.gmra.mxu2 %v11068_v55  ;;  %v8418_v55 = vor.u32 %v10168_v47, %v8417_v21  ;;  %6484 = vmatpush.bf16.msrb.mxu3 %v9090_v24  ;;  %v6126_v29 = vadd.f32 %v6125_v2, %v6112_v25  ;;  %v8697_v21 = vld [vmem:[#allocation14 + $0x600] sm:$0xf]  ;;  %v10238_v47 = vld [vmem:[#allocation14 + $0x618] sm:$0xf0]  ;;  %v9341_v24 = vld [vmem:[#allocation14 + $0xb08] sm:$0xf] }
 0x3ee   :  { %v6151_v8 = vpop.f32.mrf.mxu3  ;;  %v8698_v11 = vor.u32 %v10238_v47, %v8697_v21  ;;  %v9342_v51 = vor.u32 %v10399_v28, %v9341_v24  ;;  %v10469_v2 = vld [vmem:[#allocation14 + $0xd50] sm:$0xf0]  ;;  %v9593_v25 = vld [vmem:[#allocation14 + $0xd00] sm:$0xf]  ;;  %v9509_v47 = vld [vmem:[#allocation14 + $0xc58] sm:$0xf] }
 0x3ef   :  { %6442 = vmatpush.bf16.msrb.mxu0 %v8418_v55  ;;  %v6152_v10 = vadd.f32 %v6151_v8, %v6138_v41  ;;  %v6140_v22 = vadd.f32 %v6139_v18, %v6126_v29  ;;  %v9650_v41 = vor.u32 %v10476_v26, %v9649_v59  ;;  %v9621_v8 = vld [vmem:[#allocation14 + $0xd38] sm:$0xf]  ;;  %v10441_v18 = vld [vmem:[#allocation14 + $0xc70] sm:$0xf0] }
 0x3f0   :  { %6401 = vmatpush.bf16.msra.mxu1 %v9506_v30  ;;  %v6179_v15 = vpop.f32.mrf.mxu1  ;;  %v10392_v30 = vld [vmem:[#allocation14 + $0xae8] sm:$0xf0]  ;;  %v6193_v7 = vpop.f32.mrf.mxu2 }
 0x3f1   :  { %6485 = vmatpush.bf16.msrb.mxu3 %v9062_v52  ;;  %v9314_v62 = vor.u32 %v10392_v30, %v9313_v36 }
 0x3f2   :  { %v6165_v63 = vpop.f32.mrf.mxu0 }
 0x3f3   :  { %6443 = vmatpush.bf16.msrb.mxu0 %v8390_v37  ;;  %6402 = vmatmul.bf16.vlgmr.msra.gmra.mxu1 %v11088_v4  ;;  %v6166_v20 = vadd.f32 %v6165_v63, %v6152_v10  ;;  %v9537_v63 = vld [vmem:[#allocation14 + $0xc90] sm:$0xf] }
 0x3f4   :  { %6450 = vmatpush.bf16.msrb.mxu1 %v8810_v39  ;;  %6486 = vmatmul.bf16.vlgmr.msrb.gmra.mxu3 %v11073_v49  ;;  %v9369_v49 = vld [vmem:[#allocation14 + $0xb40] sm:$0xf]  ;;  %v8642_v39 = vor.u32 %v10224_v53, %v8641_v44 }
 0x3f5   :  { %v6180_v55 = vadd.f32 %v6179_v15, %v6166_v20  ;;  %v9370_v54 = vor.u32 %v10406_v12, %v9369_v49 }
 0x3f6   :  { %6444 = vmatmul.bf16.vlgmr.msrb.gmra.mxu0 %v11064_v58  ;;  %v9398_v58 = vor.u32 %v10413_v3, %v9397_v6  ;;  %v6153_v23 = vpop.f32.mrf.mxu3  ;;  %v9565_v6 = vld [vmem:[#allocation14 + $0xcc8] sm:$0xf]  ;;  %v10455_v3 = vld [vmem:[#allocation14 + $0xce0] sm:$0xf0] }
 0x3f7   :  { %6492 = vmatpush.bf16.msra.mxu0 %v9482_v57  ;;  %v6154_v14 = vadd.f32 %v6153_v23, %v6140_v22  ;;  %10523 = vtanh.f32 %v6180_v55  ;;  %v9566_v29 = vor.u32 %v10455_v3, %v9565_v6  ;;  %v9510_v22 = vor.u32 %v10441_v18, %v9509_v47 }
 0x3f8   :  { %6451 = vmatpush.bf16.msrb.mxu1 %v8782_v60  ;;  %v6181_v37 = vpop.f32.mrf.mxu1  ;;  %v9286_v60 = vor.u32 %v10385_v34, %v9285_v9  ;;  %v6195_v21 = vpop.f32.mrf.mxu2 }
 0x3fa   :  { %v6167_v32 = vpop.f32.mrf.mxu0 }
 0x3fb   :  { %6493 = vmatpush.bf16.msra.mxu0 %v9454_v1  ;;  %v6168_v40 = vadd.f32 %v6167_v32, %v6154_v14  ;;  %v9677_v1 = vld [vmem:[#allocation14 + $0xda8] sm:$0xf] }
 0x3fc   :  { %6452 = vmatpush.bf16.msrb.mxu1 %v8754_v38  ;;  %v9678_v31 = vor.u32 %v10483_v56, %v9677_v1  ;;  %v9622_v38 = vor.u32 %v10469_v2, %v9621_v8 }
 0x3fd   :  { %v10524_v52 = vpop.eup %10523  ;;  %v6182_v57 = vadd.f32 %v6181_v37, %v6168_v40 }
 0x3fe   :  { %6537 = vst [vmem:[#allocation17 + $0x18] sm:$0xff] %v10524_v52  ;;  %v6207_v10 = vpop.f32.mrf.mxu3 }
 0x3ff   :  { %6494 = vmatpush.bf16.msra.mxu0 %v9426_v61  ;;  %10525 = vtanh.f32 %v6182_v57  ;;  %v10462_v61 = vld [vmem:[#allocation14 + $0xd18] sm:$0xf0] }
 0x400   :  { %6453 = vmatpush.bf16.msrb.mxu1 %v8726_v17  ;;  %v9594_v5 = vor.u32 %v10462_v61, %v9593_v25 }
 0x402   :  { %v6221_v17 = vpop.f32.mrf.mxu0 }
 0x403   :  { %6495 = vmatpush.bf16.msra.mxu0 %v9398_v58 }
 0x404   :  { %6454 = vmatpush.bf16.msrb.mxu1 %v8698_v11 }
 0x405   :  { %v10526_v43 = vpop.eup %10525 }
 0x406   :  { %6544 = vst [vmem:[#allocation17 + $0x50] sm:$0xff] %v10526_v43  ;;  %v6209_v15 = vpop.f32.mrf.mxu3 }
 0x407   :  { %6496 = vmatpush.bf16.msra.mxu0 %v9370_v54  ;;  %v6249_v54 = vpop.f32.mrf.mxu2 }
 0x408   :  { %6455 = vmatpush.bf16.msrb.mxu1 %v8670_v27 }
 0x40a   :  { %v6223_v33 = vpop.f32.mrf.mxu0 }
 0x40b   :  { %6497 = vmatpush.bf16.msra.mxu0 %v9342_v51 }
 0x40c   :  { %6456 = vmatpush.bf16.msrb.mxu1 %v8642_v39 }
 0x40e   :  { %v6263_v28 = vpop.f32.mrf.mxu3 }
 0x40f   :  { %6498 = vmatpush.bf16.msra.mxu0 %v9314_v62  ;;  %v6251_v32 = vpop.f32.mrf.mxu2 }
 0x410   :  { %6457 = vmatpush.bf16.msrb.mxu1 %v8614_v45  ;;  %v6235_v12 = vpop.f32.mrf.mxu1 }
 0x412   :  { %v6277_v53 = vpop.f32.mrf.mxu0 }
 0x413   :  { %6499 = vmatpush.bf16.msra.mxu0 %v9286_v60  ;;  %6458 = vmatmul.bf16.vlgmr.msrb.gmra.mxu1 %v11060_v35  ;;  %v10448_v35 = vld [vmem:[#allocation14 + $0xca8] sm:$0xf0] }
 0x414   :  { %6506 = vmatpush.bf16.msra.mxu1 %v9706_v16  ;;  %v9538_v58 = vor.u32 %v10448_v35, %v9537_v63 }
 0x416   :  { %6500 = vmatmul.bf16.vlgmr.msra.gmra.mxu0 %v11081_v19  ;;  %v3422_v19 = vperm.slane %v11171_v48, 4  ;;  %v6265_v39 = vpop.f32.mrf.mxu3 }
 0x417   :  { %v6305_v34 = vpop.f32.mrf.mxu2 }
 0x418   :  { %6507 = vmatpush.bf16.msra.mxu1 %v9678_v31  ;;  %v6194_v49 = vadd.f32 %v6193_v7, %v3422_v19  ;;  %v6196_v13 = vadd.f32 %v6195_v21, %v3422_v19  ;;  %v6237_v14 = vpop.f32.mrf.mxu1  ;;  %v6306_v16 = vadd.f32 %v6305_v34, %v3423_v0 }
 0x41a   :  { %v6208_v20 = vadd.f32 %v6207_v10, %v6194_v49  ;;  %v6210_v23 = vadd.f32 %v6209_v15, %v6196_v13  ;;  %v6279_v52 = vpop.f32.mrf.mxu0 }
 0x41c   :  { %6508 = vmatpush.bf16.msra.mxu1 %v9650_v41  ;;  %v6222_v11 = vadd.f32 %v6221_v17, %v6208_v20  ;;  %v6224_v27 = vadd.f32 %v6223_v33, %v6210_v23 }
 0x41e   :  { %v6236_v55 = vadd.f32 %v6235_v12, %v6222_v11  ;;  %v6238_v44 = vadd.f32 %v6237_v14, %v6224_v27  ;;  %v6319_v50 = vpop.f32.mrf.mxu3  ;;  %v3424_v11 = vperm.slane %v11171_v48, 6 }
 0x41f   :  { %v6307_v60 = vpop.f32.mrf.mxu2  ;;  %v6320_v56 = vadd.f32 %v6319_v50, %v6306_v16 }
 0x420   :  { %6509 = vmatpush.bf16.msra.mxu1 %v9622_v38  ;;  %v6250_v24 = vadd.f32 %v6249_v54, %v6236_v55  ;;  %v6252_v30 = vadd.f32 %v6251_v32, %v6238_v44  ;;  %v6308_v8 = vadd.f32 %v6307_v60, %v3423_v0 }
 0x422   :  { %v6264_v51 = vadd.f32 %v6263_v28, %v6250_v24  ;;  %v6266_v42 = vadd.f32 %v6265_v39, %v6252_v30 }
 0x424   :  { %6510 = vmatpush.bf16.msra.mxu1 %v9594_v5  ;;  %v6278_v36 = vadd.f32 %v6277_v53, %v6264_v51  ;;  %v6280_v57 = vadd.f32 %v6279_v52, %v6266_v42 }
 0x426   :  { %v6321_v43 = vpop.f32.mrf.mxu3 }
 0x427   :  { %v6322_v2 = vadd.f32 %v6321_v43, %v6308_v8 }
 0x428   :  { %6511 = vmatpush.bf16.msra.mxu1 %v9566_v29 }
 0x42c   :  { %6512 = vmatpush.bf16.msra.mxu1 %v9538_v58 }
 0x42e   :  { %v6333_v45 = vpop.f32.mrf.mxu0 }
 0x42f   :  { %v6334_v31 = vadd.f32 %v6333_v45, %v6320_v56 }
 0x430   :  { %6513 = vmatpush.bf16.msra.mxu1 %v9510_v22  ;;  %v6291_v40 = vpop.f32.mrf.mxu1  ;;  %v6361_v26 = vpop.f32.mrf.mxu2 }
 0x431   :  { %v6292_v37 = vadd.f32 %v6291_v40, %v6278_v36 }
 0x433   :  { %6514 = vmatmul.bf16.vlgmr.msra.gmra.mxu1 %v11088_v4  ;;  %10527 = vtanh.f32 %v6292_v37 }
 0x436   :  { %v6335_v41 = vpop.f32.mrf.mxu0  ;;  %v6375_v25 = vpop.f32.mrf.mxu3 }
 0x437   :  { %v6336_v7 = vadd.f32 %v6335_v41, %v6322_v2 }
 0x438   :  { %v6293_v62 = vpop.f32.mrf.mxu1  ;;  %v6363_v10 = vpop.f32.mrf.mxu2 }
 0x439   :  { %v10528_v4 = vpop.eup %10527  ;;  %v6294_v46 = vadd.f32 %v6293_v62, %v6280_v57 }
 0x43a   :  { %6538 = vst [vmem:[#allocation17 + $0x20] sm:$0xff] %v10528_v4 }
 0x43b   :  { %10529 = vtanh.f32 %v6294_v46 }
 0x43e   :  { %v6377_v17 = vpop.f32.mrf.mxu3 }
 0x441   :  { %v10530_v9 = vpop.eup %10529 }
 0x442   :  { %6545 = vst [vmem:[#allocation17 + $0x58] sm:$0xff] %v10530_v9 }
 0x450   :  { %v6347_v1 = vpop.f32.mrf.mxu1  ;;  %v6389_v3 = vpop.f32.mrf.mxu0 }
 0x451   :  { %v6348_v59 = vadd.f32 %v6347_v1, %v6334_v31  ;;  %v6417_v22 = vpop.f32.mrf.mxu2 }
 0x452   :  { %v6418_v33 = vadd.f32 %v6417_v22, %v3424_v11 }
 0x453   :  { %v6362_v38 = vadd.f32 %v6361_v26, %v6348_v59 }
 0x455   :  { %v6376_v5 = vadd.f32 %v6375_v25, %v6362_v38 }
 0x457   :  { %v6390_v29 = vadd.f32 %v6389_v3, %v6376_v5 }
 0x458   :  { %v6349_v61 = vpop.f32.mrf.mxu1  ;;  %v6391_v21 = vpop.f32.mrf.mxu0 }
 0x459   :  { %v6350_v6 = vadd.f32 %v6349_v61, %v6336_v7  ;;  %v6431_v15 = vpop.f32.mrf.mxu3  ;;  %v6419_v54 = vpop.f32.mrf.mxu2 }
 0x45a   :  { %v6432_v23 = vadd.f32 %v6431_v15, %v6418_v33  ;;  %v6420_v44 = vadd.f32 %v6419_v54, %v3424_v11 }
 0x45b   :  { %v6364_v63 = vadd.f32 %v6363_v10, %v6350_v6 }
 0x45d   :  { %v6378_v58 = vadd.f32 %v6377_v17, %v6364_v63 }
 0x45f   :  { %v6392_v47 = vadd.f32 %v6391_v21, %v6378_v58 }
 0x461   :  { %v6433_v24 = vpop.f32.mrf.mxu3 }
 0x462   :  { %v6434_v53 = vadd.f32 %v6433_v24, %v6420_v44 }
 0x470   :  { %v6403_v35 = vpop.f32.mrf.mxu1  ;;  %v6473_v27 = vpop.f32.mrf.mxu2 }
 0x471   :  { %v6404_v19 = vadd.f32 %v6403_v35, %v6390_v29 }
 0x473   :  { %10531 = vtanh.f32 %v6404_v19  ;;  %v6445_v55 = vpop.f32.mrf.mxu0 }
 0x474   :  { %v6446_v28 = vadd.f32 %v6445_v55, %v6432_v23 }
 0x477   :  { %v6487_v36 = vpop.f32.mrf.mxu3 }
 0x478   :  { %v6405_v18 = vpop.f32.mrf.mxu1  ;;  %v6475_v48 = vpop.f32.mrf.mxu2 }
 0x479   :  { %v10532_v49 = vpop.eup %10531  ;;  %v6406_v12 = vadd.f32 %v6405_v18, %v6392_v47 }
 0x47a   :  { %6539 = vst [vmem:[#allocation17 + $0x28] sm:$0xff] %v10532_v49 }
 0x47b   :  { %10533 = vtanh.f32 %v6406_v12  ;;  %v6447_v51 = vpop.f32.mrf.mxu0 }
 0x47c   :  { %v6448_v40 = vadd.f32 %v6447_v51, %v6434_v53 }
 0x47f   :  { %v6489_v46 = vpop.f32.mrf.mxu3 }
 0x481   :  { %v10534_v20 = vpop.eup %10533 }
 0x482   :  { %6546 = vst [vmem:[#allocation17 + $0x60] sm:$0xff] %v10534_v20 }
 0x490   :  { %v6459_v13 = vpop.f32.mrf.mxu1 }
 0x491   :  { %v6460_v14 = vadd.f32 %v6459_v13, %v6446_v28 }
 0x493   :  { %v6474_v32 = vadd.f32 %v6473_v27, %v6460_v14  ;;  %v6501_v42 = vpop.f32.mrf.mxu0 }
 0x495   :  { %v6488_v37 = vadd.f32 %v6487_v36, %v6474_v32 }
 0x497   :  { %v6502_v52 = vadd.f32 %v6501_v42, %v6488_v37 }
 0x498   :  { %v6461_v30 = vpop.f32.mrf.mxu1 }
 0x499   :  { %v6462_v39 = vadd.f32 %v6461_v30, %v6448_v40 }
 0x49b   :  { %v6476_v57 = vadd.f32 %v6475_v48, %v6462_v39  ;;  %v6503_v34 = vpop.f32.mrf.mxu0 }
 0x49d   :  { %v6490_v9 = vadd.f32 %v6489_v46, %v6476_v57 }
 0x49f   :  { %v6504_v50 = vadd.f32 %v6503_v34, %v6490_v9 }
 0x4b0   :  { %v6515_v62 = vpop.f32.mrf.mxu1 }
 0x4b1   :  { %v6516_v4 = vadd.f32 %v6515_v62, %v6502_v52 }
 0x4b3   :  { %10535 = vtanh.f32 %v6516_v4 }
 0x4b8   :  { %v6517_v0 = vpop.f32.mrf.mxu1 }
 0x4b9   :  { %v10536_v45 = vpop.eup %10535  ;;  %v6518_v60 = vadd.f32 %v6517_v0, %v6504_v50 }
 0x4ba   :  { %6540 = vst [vmem:[#allocation17 + $0x30] sm:$0xff] %v10536_v45 }
 0x4bb   :  { %10537 = vtanh.f32 %v6518_v60 }
 0x4c1   :  { %v10538_v16 = vpop.eup %10537 }
 0x4c2   :  { %6547 = vst [vmem:[#allocation17 + $0x68] sm:$0xff] %v10538_v16 }
 0x4c3   :  { %6560 = dma.vmem_to_hbm [thread:$0]  %s6553_s8, 1792, %s6555_s13, [#allocation4], %s10811_s14, %s10811_s14, %s10812_s5  }
 0x4c4   :  { %10791 = dma.done.wait [#allocation4], 1792  }
 0x4c5   :  { %10792 = vsyncadd [#allocation4], 4294965504 }
 0x4c6   :  { %6565 = vsyncpa [#allocation3], 1 }
 0x4c7   :  { %6566 = vsyncpa [#allocation6], 1 }
 0x4c8   :  { %6567 = vsyncpa [#allocation9], 1 }
 0x4c9   :  { %6568 = vsyncpa [#allocation12], 1 }
 0x4ca   :  { %6569 = vsyncpa [#allocation15], 1 }
 0x4cb   :  { %6570 = vsyncpa [#allocation4], 1 }

</bundles_post_ra>
